<compile_context>
chip_gen: v6e
topology: v6e:2x2x1
jax: 0.10.0
libtpu: 0.0.40
codegen_flags: <defaults>
</compile_context>

<pallas_src>
import functools

import jax
import jax.numpy as jnp
from jax import lax
from jax.experimental import pallas as pl
from jax.experimental.pallas import tpu as pltpu

# Keep the XLA-side projections (and the pure-JAX reference) in full f32 so the
# correctness check is tight.
jax.config.update("jax_default_matmul_precision", "highest")


def _pair_feature_kernel(ti, tj, c_p, relpos_k, eps,
                         pi_ref, pj_ref, tri_ref, trj_ref, mask_ref,
                         wrel_ref, wt_ref, out_ref):
    n_bin = 2 * relpos_k + 1

    p_i = pi_ref[0]          # [ti, c_p]  (all biases already folded in)
    p_j = pj_ref[0]          # [tj, c_p]
    mask = mask_ref[0]       # [ti, tj]
    w_rel = wrel_ref[...]    # [n_bin, c_p]
    w_t = wt_ref[...]        # [1, c_p]

    # --- template 'v1': pairwise distance between trans rows (i) and cols (j) ---
    t_i = tri_ref[0]         # [ti, 3]
    t_j = trj_ref[0]         # [3, tj]
    sq = jnp.zeros((ti, tj), jnp.float32)
    for c in range(3):       # static unroll over x,y,z
        dc = t_i[:, c:c + 1] - t_j[c:c + 1, :]      # [ti,1]-[1,tj] -> [ti,tj]
        sq = sq + dc * dc
    dist = jnp.sqrt(eps + sq)                       # EUP sqrt (free slot)

    mask3 = mask[:, :, None]                        # [ti, tj, 1]

    def base():
        # Single fused producer chain; biases live in p_i only.
        return p_i[:, None, :] + p_j[None, :, :] + dist[:, :, None] * w_t

    # --- relpos: rel[i,j,:] = W_rel[clip(i-j+k, 0, 2k), :] (exact, no argmin ties) ---
    i0 = pl.program_id(1) * ti
    j0 = pl.program_id(2) * tj
    d_min = i0 - (j0 + tj - 1)
    d_max = (i0 + ti - 1) - j0
    sat_hi = d_min >= relpos_k        # every (i,j) in tile clips to bin n_bin-1
    sat_lo = d_max <= -relpos_k       # every (i,j) in tile clips to bin 0
    is_const = jnp.logical_or(sat_hi, sat_lo)

    @pl.when(is_const)
    def _fast():
        hi = sat_hi.astype(jnp.float32)
        row = w_rel[n_bin - 1:n_bin, :] * hi + w_rel[0:1, :] * (1.0 - hi)   # [1, c_p]
        out_ref[0] = ((base() + row) * mask3).astype(out_ref.dtype)

    @pl.when(jnp.logical_not(is_const))
    def _general():
        ii = lax.broadcasted_iota(jnp.int32, (ti, tj), 0) + i0
        jj = lax.broadcasted_iota(jnp.int32, (ti, tj), 1) + j0
        bin_idx = jnp.clip(ii - jj + relpos_k, 0, n_bin - 1)                # [ti, tj]
        rel = jnp.zeros((ti, tj, c_p), jnp.float32)
        for b in range(n_bin):                                              # static unroll
            sel = (bin_idx == b).astype(jnp.float32)[:, :, None]            # [ti, tj, 1]
            rel = rel + sel * w_rel[b:b + 1, :]                             # bcast [1, c_p]
        out_ref[0] = ((base() + rel) * mask3).astype(out_ref.dtype)


def _pick_tile_i(n, pref=128):
    for t in (pref, 64, 32, 16, 8):
        if n % t == 0:
            return t
    return n


def _pick_tile_j(n, pref=128):
    # Last (lane-adjacent) tiled dim: multiple of 128 or the full extent.
    if n % pref == 0:
        return pref
    return n


def pair_feature_net(s, trans, p_mask, params, relpos_k, eps=1e-10,
                     tile_i=None, tile_j=None, out_dtype=jnp.float32,
                     vmem_limit_bytes=None):
    B, N, _ = s.shape
    c_p = params["w_i"].shape[1]
    n_bin = 2 * relpos_k + 1

    ti = tile_i if tile_i is not None else _pick_tile_i(N)
    tj = tile_j if tile_j is not None else _pick_tile_j(N)
    assert N % ti == 0 and N % tj == 0, "tile sizes must divide N"

    # --- XLA-side prep: fused projection, folded biases, trans transpose ---
    w_ij = jnp.concatenate([params["w_i"], params["w_j"]], axis=1)   # [c_s, 2*c_p]
    proj = jnp.einsum("bnc,cd->bnd", s, w_ij)                        # [B, N, 2*c_p]
    bias_all = (params["b_i"] + params["b_j"]
                + params["b_rel"] + params["b_t"])                   # [1, c_p]
    p_i = proj[..., :c_p] + bias_all                                 # carries all biases
    p_j = proj[..., c_p:]
    trans_t = jnp.transpose(trans, (0, 2, 1))                        # [B, 3, N]

    kernel = functools.partial(_pair_feature_kernel, ti, tj, c_p, relpos_k, eps)

    out_tile_bytes = ti * tj * c_p * 4
    if vmem_limit_bytes is None:
        # out tile (double-buffered) + in-kernel temporaries + small inputs,
        # clamped to stay valid on v7x's 64 MiB physical VMEM.
        vmem_limit_bytes = min(max(6 * out_tile_bytes + (4 << 20), 32 << 20), 64 << 20)

    grid = (B, N // ti, N // tj)
    return pl.pallas_call(
        kernel,
        out_shape=jax.ShapeDtypeStruct((B, N, N, c_p), out_dtype),
        grid=grid,
        in_specs=[
            pl.BlockSpec((1, ti, c_p), lambda b, i, j: (b, i, 0)),   # p_i (+ folded bias)
            pl.BlockSpec((1, tj, c_p), lambda b, i, j: (b, j, 0)),   # p_j
            pl.BlockSpec((1, ti, 3),   lambda b, i, j: (b, i, 0)),   # trans rows (i side)
            pl.BlockSpec((1, 3, tj),   lambda b, i, j: (b, 0, j)),   # trans^T cols (j side)
            pl.BlockSpec((1, ti, tj),  lambda b, i, j: (b, i, j)),   # p_mask tile
            pl.BlockSpec((n_bin, c_p), lambda b, i, j: (0, 0)),      # W_rel table
            pl.BlockSpec((1, c_p),     lambda b, i, j: (0, 0)),      # w_template
        ],
        out_specs=pl.BlockSpec((1, ti, tj, c_p), lambda b, i, j: (b, i, j, 0)),
        compiler_params=pltpu.CompilerParams(
            dimension_semantics=("parallel", "parallel", "parallel"),
            vmem_limit_bytes=vmem_limit_bytes,
        ),
    )(p_i, p_j, trans, trans_t, p_mask, params["w_rel"], params["w_t"])


def reference(s, trans, p_mask, params, relpos_k, eps=1e-10):
    """Pure-JAX mirror of the PyTorch forward (for correctness checking)."""
    B, N, _ = s.shape
    p_i = s @ params["w_i"] + params["b_i"][0]
    p_j = s @ params["w_j"] + params["b_j"][0]
    p = p_i[:, :, None, :] + p_j[:, None, :, :]
    r = jnp.arange(N)
    d = r[:, None] - r[None, :]
    v = jnp.arange(-relpos_k, relpos_k + 1)
    b = jnp.argmin(jnp.abs(d[:, :, None] - v[None, None, :]), axis=-1)
    oh = jax.nn.one_hot(b, 2 * relpos_k + 1, dtype=jnp.float32)
    rel = oh @ params["w_rel"] + params["b_rel"][0]
    p = p + rel[None]
    diff = trans[:, :, None, :] - trans[:, None, :, :]
    dist = jnp.sqrt(eps + jnp.sum(diff * diff, axis=-1))
    p = p + dist[..., None] * params["w_t"][0] + params["b_t"][0]
    return p * p_mask[..., None]


def _run_case(case_idx, B, N, c_s, c_p, relpos_k, tile_i, tile_j):
    n_bin = 2 * relpos_k + 1
    key = jax.random.fold_in(jax.random.PRNGKey(0), case_idx)
    ks = jax.random.split(key, 11)
    s = jax.random.normal(ks[0], (B, N, c_s), jnp.float32)
    trans = jax.random.normal(ks[1], (B, N, 3), jnp.float32)       # t.trans
    p_mask = jax.random.bernoulli(ks[2], 0.8, (B, N, N)).astype(jnp.float32)
    params = {
        "w_i":   0.1 * jax.random.normal(ks[3], (c_s, c_p), jnp.float32),
        "b_i":   0.1 * jax.random.normal(ks[4], (1, c_p), jnp.float32),
        "w_j":   0.1 * jax.random.normal(ks[5], (c_s, c_p), jnp.float32),
        "b_j":   0.1 * jax.random.normal(ks[6], (1, c_p), jnp.float32),
        "w_rel": 0.1 * jax.random.normal(ks[7], (n_bin, c_p), jnp.float32),
        "b_rel": 0.1 * jax.random.normal(ks[8], (1, c_p), jnp.float32),
        "w_t":   0.1 * jax.random.normal(ks[9], (1, c_p), jnp.float32),
        "b_t":   0.1 * jax.random.normal(ks[10], (1, c_p), jnp.float32),
    }

    out = jax.block_until_ready(
        pair_feature_net(s, trans, p_mask, params, relpos_k,
                         tile_i=tile_i, tile_j=tile_j))
    ref = reference(s, trans, p_mask, params, relpos_k)

    assert out.shape == (B, N, N, c_p)
    max_err = float(jnp.max(jnp.abs(out - ref)))
    assert jnp.allclose(out, ref, atol=1e-3, rtol=1e-3), \
        f"case {case_idx}: max abs err {max_err}"


if __name__ == "__main__":
    # Case 1: small shapes, multi-tile along i, whole row along j
    # (exercises the general relpos path, batching, masking).
    _run_case(0, B=2, N=32, c_s=16, c_p=32, relpos_k=3, tile_i=8, tile_j=32)
    # Case 2: production-like 2-D tiling (64 x 128 tiles) — exercises both the
    # constant-bin fast path (off-diagonal tiles) and the general path.
    _run_case(1, B=1, N=256, c_s=16, c_p=32, relpos_k=3, tile_i=64, tile_j=128)
    print("KERNEL_OK")
</pallas_src>

<mosaic_0001>
module attributes {stable_mosaic.version = 11 : i64} {
  func.func @_pair_feature_kernel(%arg0: i32, %arg1: i32, %arg2: i32, %arg3: memref<1x8x32xf32, #tpu.memory_space<vmem>>, %arg4: memref<1x32x32xf32, #tpu.memory_space<vmem>>, %arg5: memref<1x8x3xf32, #tpu.memory_space<vmem>>, %arg6: memref<1x3x32xf32, #tpu.memory_space<vmem>>, %arg7: memref<1x8x32xf32, #tpu.memory_space<vmem>>, %arg8: memref<7x32xf32, #tpu.memory_space<vmem>>, %arg9: memref<1x32xf32, #tpu.memory_space<vmem>>, %arg10: memref<1x8x32x32xf32, #tpu.memory_space<vmem>>) attributes {dimension_semantics = [#tpu.dimension_semantics<parallel>, #tpu.dimension_semantics<parallel>, #tpu.dimension_semantics<parallel>], iteration_bounds = array<i64: 2, 4, 1>, scalar_prefetch = 0 : i64, scratch_operands = 0 : i64, tpu.core_type = #tpu.core_type<tc>, window_params = [{transform_indices = @transform_0, window_bounds = array<i64: 1, 8, 32>}, {transform_indices = @transform_1, window_bounds = array<i64: 1, 32, 32>}, {transform_indices = @transform_2, window_bounds = array<i64: 1, 8, 3>}, {transform_indices = @transform_3, window_bounds = array<i64: 1, 3, 32>}, {transform_indices = @transform_4, window_bounds = array<i64: 1, 8, 32>}, {pipeline_mode = #tpu.pipeline_mode<synchronous>, transform_indices = @transform_5, window_bounds = array<i64: 7, 32>}, {pipeline_mode = #tpu.pipeline_mode<synchronous>, transform_indices = @transform_6, window_bounds = array<i64: 1, 32>}, {transform_indices = @transform_7, window_bounds = array<i64: 1, 8, 32, 32>}]} {
    %c0 = arith.constant 0 : index
    %c0_0 = arith.constant 0 : index
    %c0_1 = arith.constant 0 : index
    %0 = vector.load %arg3[%c0, %c0_0, %c0_1] : memref<1x8x32xf32, #tpu.memory_space<vmem>>, vector<1x8x32xf32>
    %1 = vector.shape_cast %0 : vector<1x8x32xf32> to vector<8x32xf32>
    %c0_2 = arith.constant 0 : index
    %c0_3 = arith.constant 0 : index
    %c0_4 = arith.constant 0 : index
    %2 = vector.load %arg4[%c0_2, %c0_3, %c0_4] : memref<1x32x32xf32, #tpu.memory_space<vmem>>, vector<1x32x32xf32>
    %3 = vector.shape_cast %2 : vector<1x32x32xf32> to vector<32x32xf32>
    %c0_5 = arith.constant 0 : index
    %c0_6 = arith.constant 0 : index
    %c0_7 = arith.constant 0 : index
    %4 = vector.load %arg7[%c0_5, %c0_6, %c0_7] : memref<1x8x32xf32, #tpu.memory_space<vmem>>, vector<1x8x32xf32>
    %5 = vector.shape_cast %4 : vector<1x8x32xf32> to vector<8x32xf32>
    %c0_8 = arith.constant 0 : index
    %c0_9 = arith.constant 0 : index
    %6 = vector.load %arg8[%c0_8, %c0_9] : memref<7x32xf32, #tpu.memory_space<vmem>>, vector<7x32xf32>
    %c0_10 = arith.constant 0 : index
    %c0_11 = arith.constant 0 : index
    %7 = vector.load %arg9[%c0_10, %c0_11] : memref<1x32xf32, #tpu.memory_space<vmem>>, vector<1x32xf32>
    %c0_12 = arith.constant 0 : index
    %c0_13 = arith.constant 0 : index
    %c0_14 = arith.constant 0 : index
    %8 = vector.load %arg5[%c0_12, %c0_13, %c0_14] : memref<1x8x3xf32, #tpu.memory_space<vmem>>, vector<1x8x3xf32>
    %9 = vector.shape_cast %8 : vector<1x8x3xf32> to vector<8x3xf32>
    %c0_15 = arith.constant 0 : index
    %c0_16 = arith.constant 0 : index
    %c0_17 = arith.constant 0 : index
    %10 = vector.load %arg6[%c0_15, %c0_16, %c0_17] : memref<1x3x32xf32, #tpu.memory_space<vmem>>, vector<1x3x32xf32>
    %11 = vector.shape_cast %10 : vector<1x3x32xf32> to vector<3x32xf32>
    %cst = arith.constant 0.000000e+00 : f32
    %12 = vector.broadcast %cst : f32 to vector<8x32xf32>
    %13 = vector.extract_strided_slice %9 {offsets = [0, 0], sizes = [8, 1], strides = [1, 1]} : vector<8x3xf32> to vector<8x1xf32>
    %14 = vector.extract_strided_slice %11 {offsets = [0, 0], sizes = [1, 32], strides = [1, 1]} : vector<3x32xf32> to vector<1x32xf32>
    %15 = vector.broadcast %13 : vector<8x1xf32> to vector<8x32xf32>
    %16 = vector.broadcast %14 : vector<1x32xf32> to vector<8x32xf32>
    %17 = arith.subf %15, %16 : vector<8x32xf32>
    %18 = arith.mulf %17, %17 : vector<8x32xf32>
    %19 = arith.addf %12, %18 : vector<8x32xf32>
    %20 = vector.extract_strided_slice %9 {offsets = [0, 1], sizes = [8, 1], strides = [1, 1]} : vector<8x3xf32> to vector<8x1xf32>
    %21 = vector.extract_strided_slice %11 {offsets = [1, 0], sizes = [1, 32], strides = [1, 1]} : vector<3x32xf32> to vector<1x32xf32>
    %22 = vector.broadcast %20 : vector<8x1xf32> to vector<8x32xf32>
    %23 = vector.broadcast %21 : vector<1x32xf32> to vector<8x32xf32>
    %24 = arith.subf %22, %23 : vector<8x32xf32>
    %25 = arith.mulf %24, %24 : vector<8x32xf32>
    %26 = arith.addf %19, %25 : vector<8x32xf32>
    %27 = vector.extract_strided_slice %9 {offsets = [0, 2], sizes = [8, 1], strides = [1, 1]} : vector<8x3xf32> to vector<8x1xf32>
    %28 = vector.extract_strided_slice %11 {offsets = [2, 0], sizes = [1, 32], strides = [1, 1]} : vector<3x32xf32> to vector<1x32xf32>
    %29 = vector.broadcast %27 : vector<8x1xf32> to vector<8x32xf32>
    %30 = vector.broadcast %28 : vector<1x32xf32> to vector<8x32xf32>
    %31 = arith.subf %29, %30 : vector<8x32xf32>
    %32 = arith.mulf %31, %31 : vector<8x32xf32>
    %33 = arith.addf %26, %32 : vector<8x32xf32>
    %cst_18 = arith.constant 1.000000e-10 : f32
    %34 = vector.broadcast %cst_18 : f32 to vector<8x32xf32>
    %35 = arith.addf %34, %33 : vector<8x32xf32>
    %36 = math.sqrt %35 : vector<8x32xf32>
    %37 = vector.shape_cast %5 : vector<8x32xf32> to vector<8x32x1xf32>
    %c8_i32 = arith.constant 8 : i32
    %38 = arith.muli %arg1, %c8_i32 : i32
    %c32_i32 = arith.constant 32 : i32
    %39 = arith.muli %arg2, %c32_i32 : i32
    %c32_i32_19 = arith.constant 32 : i32
    %40 = arith.addi %39, %c32_i32_19 : i32
    %c1_i32 = arith.constant 1 : i32
    %41 = arith.subi %40, %c1_i32 : i32
    %42 = arith.subi %38, %41 : i32
    %c8_i32_20 = arith.constant 8 : i32
    %43 = arith.addi %38, %c8_i32_20 : i32
    %c1_i32_21 = arith.constant 1 : i32
    %44 = arith.subi %43, %c1_i32_21 : i32
    %45 = arith.subi %44, %39 : i32
    %c3_i32 = arith.constant 3 : i32
    %46 = arith.cmpi sge, %42, %c3_i32 : i32
    %c-3_i32 = arith.constant -3 : i32
    %47 = arith.cmpi sle, %45, %c-3_i32 : i32
    %48 = arith.ori %46, %47 : i1
    %49 = arith.extui %48 : i1 to i32
    %c0_i32 = arith.constant 0 : i32
    %50 = arith.cmpi ne, %49, %c0_i32 : i32
    scf.if %50 {
      %54 = arith.extui %46 : i1 to i32
      %55 = arith.sitofp %54 : i32 to f32
      %56 = vector.extract_strided_slice %6 {offsets = [6, 0], sizes = [1, 32], strides = [1, 1]} : vector<7x32xf32> to vector<1x32xf32>
      %57 = vector.broadcast %55 : f32 to vector<1x32xf32>
      %58 = arith.mulf %56, %57 : vector<1x32xf32>
      %59 = vector.extract_strided_slice %6 {offsets = [0, 0], sizes = [1, 32], strides = [1, 1]} : vector<7x32xf32> to vector<1x32xf32>
      %cst_23 = arith.constant 1.000000e+00 : f32
      %60 = arith.subf %cst_23, %55 : f32
      %61 = vector.broadcast %60 : f32 to vector<1x32xf32>
      %62 = arith.mulf %59, %61 : vector<1x32xf32>
      %63 = arith.addf %58, %62 : vector<1x32xf32>
      %64 = vector.shape_cast %1 : vector<8x32xf32> to vector<8x1x32xf32>
      %65 = vector.shape_cast %3 : vector<32x32xf32> to vector<1x32x32xf32>
      %66 = vector.broadcast %64 : vector<8x1x32xf32> to vector<8x32x32xf32>
      %67 = vector.broadcast %65 : vector<1x32x32xf32> to vector<8x32x32xf32>
      %68 = arith.addf %66, %67 : vector<8x32x32xf32>
      %69 = vector.shape_cast %36 : vector<8x32xf32> to vector<8x32x1xf32>
      %70 = vector.shape_cast %7 : vector<1x32xf32> to vector<1x1x32xf32>
      %71 = vector.broadcast %69 : vector<8x32x1xf32> to vector<8x32x32xf32>
      %72 = vector.broadcast %70 : vector<1x1x32xf32> to vector<8x32x32xf32>
      %73 = arith.mulf %71, %72 : vector<8x32x32xf32>
      %74 = arith.addf %68, %73 : vector<8x32x32xf32>
      %75 = vector.shape_cast %63 : vector<1x32xf32> to vector<1x1x32xf32>
      %76 = vector.broadcast %75 : vector<1x1x32xf32> to vector<8x32x32xf32>
      %77 = arith.addf %74, %76 : vector<8x32x32xf32>
      %78 = vector.broadcast %37 : vector<8x32x1xf32> to vector<8x32x32xf32>
      %79 = arith.mulf %77, %78 : vector<8x32x32xf32>
      %c0_24 = arith.constant 0 : index
      %c0_25 = arith.constant 0 : index
      %c0_26 = arith.constant 0 : index
      %c0_27 = arith.constant 0 : index
      %80 = vector.load %arg10[%c0_24, %c0_25, %c0_26, %c0_27] : memref<1x8x32x32xf32, #tpu.memory_space<vmem>>, vector<1x8x32x32xf32>
      %81 = vector.shape_cast %80 : vector<1x8x32x32xf32> to vector<8x32x32xf32>
      %82 = vector.shape_cast %79 : vector<8x32x32xf32> to vector<1x8x32x32xf32>
      tpu.vector_store %arg10[%c0_24, %c0_25, %c0_26, %c0_27], %82 {strides = array<i32>} : memref<1x8x32x32xf32, #tpu.memory_space<vmem>>, vector<1x8x32x32xf32>,
    } else {
    }
    %true = arith.constant true
    %51 = arith.xori %48, %true : i1
    %52 = arith.extui %51 : i1 to i32
    %c0_i32_22 = arith.constant 0 : i32
    %53 = arith.cmpi ne, %52, %c0_i32_22 : i32
    scf.if %53 {
      %54 = tpu.iota {dimensions = array<i32: 0>} : vector<8x32xi32>
      %55 = vector.broadcast %38 : i32 to vector<8x32xi32>
      %56 = arith.addi %54, %55 : vector<8x32xi32>
      %57 = tpu.iota {dimensions = array<i32: 1>} : vector<8x32xi32>
      %58 = vector.broadcast %39 : i32 to vector<8x32xi32>
      %59 = arith.addi %57, %58 : vector<8x32xi32>
      %60 = arith.subi %56, %59 : vector<8x32xi32>
      %c3_i32_23 = arith.constant 3 : i32
      %61 = vector.broadcast %c3_i32_23 : i32 to vector<8x32xi32>
      %62 = arith.addi %60, %61 : vector<8x32xi32>
      %c0_i32_24 = arith.constant 0 : i32
      %c6_i32 = arith.constant 6 : i32
      %63 = vector.broadcast %c0_i32_24 : i32 to vector<8x32xi32>
      %64 = arith.maxsi %63, %62 : vector<8x32xi32>
      %65 = vector.broadcast %c6_i32 : i32 to vector<8x32xi32>
      %66 = arith.minsi %65, %64 : vector<8x32xi32>
      %cst_25 = arith.constant 0.000000e+00 : f32
      %67 = vector.broadcast %cst_25 : f32 to vector<8x32x32xf32>
      %c0_i32_26 = arith.constant 0 : i32
      %68 = vector.broadcast %c0_i32_26 : i32 to vector<8x32xi32>
      %69 = arith.cmpi eq, %66, %68 : vector<8x32xi32>
      %70 = arith.extui %69 : vector<8x32xi1> to vector<8x32xi32>
      %71 = arith.sitofp %70 : vector<8x32xi32> to vector<8x32xf32>
      %72 = vector.shape_cast %71 : vector<8x32xf32> to vector<8x32x1xf32>
      %73 = vector.extract_strided_slice %6 {offsets = [0, 0], sizes = [1, 32], strides = [1, 1]} : vector<7x32xf32> to vector<1x32xf32>
      %74 = vector.shape_cast %73 : vector<1x32xf32> to vector<1x1x32xf32>
      %75 = vector.broadcast %72 : vector<8x32x1xf32> to vector<8x32x32xf32>
      %76 = vector.broadcast %74 : vector<1x1x32xf32> to vector<8x32x32xf32>
      %77 = arith.mulf %75, %76 : vector<8x32x32xf32>
      %78 = arith.addf %67, %77 : vector<8x32x32xf32>
      %c1_i32_27 = arith.constant 1 : i32
      %79 = vector.broadcast %c1_i32_27 : i32 to vector<8x32xi32>
      %80 = arith.cmpi eq, %66, %79 : vector<8x32xi32>
      %81 = arith.extui %80 : vector<8x32xi1> to vector<8x32xi32>
      %82 = arith.sitofp %81 : vector<8x32xi32> to vector<8x32xf32>
      %83 = vector.shape_cast %82 : vector<8x32xf32> to vector<8x32x1xf32>
      %84 = vector.extract_strided_slice %6 {offsets = [1, 0], sizes = [1, 32], strides = [1, 1]} : vector<7x32xf32> to vector<1x32xf32>
      %85 = vector.shape_cast %84 : vector<1x32xf32> to vector<1x1x32xf32>
      %86 = vector.broadcast %83 : vector<8x32x1xf32> to vector<8x32x32xf32>
      %87 = vector.broadcast %85 : vector<1x1x32xf32> to vector<8x32x32xf32>
      %88 = arith.mulf %86, %87 : vector<8x32x32xf32>
      %89 = arith.addf %78, %88 : vector<8x32x32xf32>
      %c2_i32 = arith.constant 2 : i32
      %90 = vector.broadcast %c2_i32 : i32 to vector<8x32xi32>
      %91 = arith.cmpi eq, %66, %90 : vector<8x32xi32>
      %92 = arith.extui %91 : vector<8x32xi1> to vector<8x32xi32>
      %93 = arith.sitofp %92 : vector<8x32xi32> to vector<8x32xf32>
      %94 = vector.shape_cast %93 : vector<8x32xf32> to vector<8x32x1xf32>
      %95 = vector.extract_strided_slice %6 {offsets = [2, 0], sizes = [1, 32], strides = [1, 1]} : vector<7x32xf32> to vector<1x32xf32>
      %96 = vector.shape_cast %95 : vector<1x32xf32> to vector<1x1x32xf32>
      %97 = vector.broadcast %94 : vector<8x32x1xf32> to vector<8x32x32xf32>
      %98 = vector.broadcast %96 : vector<1x1x32xf32> to vector<8x32x32xf32>
      %99 = arith.mulf %97, %98 : vector<8x32x32xf32>
      %100 = arith.addf %89, %99 : vector<8x32x32xf32>
      %c3_i32_28 = arith.constant 3 : i32
      %101 = vector.broadcast %c3_i32_28 : i32 to vector<8x32xi32>
      %102 = arith.cmpi eq, %66, %101 : vector<8x32xi32>
      %103 = arith.extui %102 : vector<8x32xi1> to vector<8x32xi32>
      %104 = arith.sitofp %103 : vector<8x32xi32> to vector<8x32xf32>
      %105 = vector.shape_cast %104 : vector<8x32xf32> to vector<8x32x1xf32>
      %106 = vector.extract_strided_slice %6 {offsets = [3, 0], sizes = [1, 32], strides = [1, 1]} : vector<7x32xf32> to vector<1x32xf32>
      %107 = vector.shape_cast %106 : vector<1x32xf32> to vector<1x1x32xf32>
      %108 = vector.broadcast %105 : vector<8x32x1xf32> to vector<8x32x32xf32>
      %109 = vector.broadcast %107 : vector<1x1x32xf32> to vector<8x32x32xf32>
      %110 = arith.mulf %108, %109 : vector<8x32x32xf32>
      %111 = arith.addf %100, %110 : vector<8x32x32xf32>
      %c4_i32 = arith.constant 4 : i32
      %112 = vector.broadcast %c4_i32 : i32 to vector<8x32xi32>
      %113 = arith.cmpi eq, %66, %112 : vector<8x32xi32>
      %114 = arith.extui %113 : vector<8x32xi1> to vector<8x32xi32>
      %115 = arith.sitofp %114 : vector<8x32xi32> to vector<8x32xf32>
      %116 = vector.shape_cast %115 : vector<8x32xf32> to vector<8x32x1xf32>
      %117 = vector.extract_strided_slice %6 {offsets = [4, 0], sizes = [1, 32], strides = [1, 1]} : vector<7x32xf32> to vector<1x32xf32>
      %118 = vector.shape_cast %117 : vector<1x32xf32> to vector<1x1x32xf32>
      %119 = vector.broadcast %116 : vector<8x32x1xf32> to vector<8x32x32xf32>
      %120 = vector.broadcast %118 : vector<1x1x32xf32> to vector<8x32x32xf32>
      %121 = arith.mulf %119, %120 : vector<8x32x32xf32>
      %122 = arith.addf %111, %121 : vector<8x32x32xf32>
      %c5_i32 = arith.constant 5 : i32
      %123 = vector.broadcast %c5_i32 : i32 to vector<8x32xi32>
      %124 = arith.cmpi eq, %66, %123 : vector<8x32xi32>
      %125 = arith.extui %124 : vector<8x32xi1> to vector<8x32xi32>
      %126 = arith.sitofp %125 : vector<8x32xi32> to vector<8x32xf32>
      %127 = vector.shape_cast %126 : vector<8x32xf32> to vector<8x32x1xf32>
      %128 = vector.extract_strided_slice %6 {offsets = [5, 0], sizes = [1, 32], strides = [1, 1]} : vector<7x32xf32> to vector<1x32xf32>
      %129 = vector.shape_cast %128 : vector<1x32xf32> to vector<1x1x32xf32>
      %130 = vector.broadcast %127 : vector<8x32x1xf32> to vector<8x32x32xf32>
      %131 = vector.broadcast %129 : vector<1x1x32xf32> to vector<8x32x32xf32>
      %132 = arith.mulf %130, %131 : vector<8x32x32xf32>
      %133 = arith.addf %122, %132 : vector<8x32x32xf32>
      %c6_i32_29 = arith.constant 6 : i32
      %134 = vector.broadcast %c6_i32_29 : i32 to vector<8x32xi32>
      %135 = arith.cmpi eq, %66, %134 : vector<8x32xi32>
      %136 = arith.extui %135 : vector<8x32xi1> to vector<8x32xi32>
      %137 = arith.sitofp %136 : vector<8x32xi32> to vector<8x32xf32>
      %138 = vector.shape_cast %137 : vector<8x32xf32> to vector<8x32x1xf32>
      %139 = vector.extract_strided_slice %6 {offsets = [6, 0], sizes = [1, 32], strides = [1, 1]} : vector<7x32xf32> to vector<1x32xf32>
      %140 = vector.shape_cast %139 : vector<1x32xf32> to vector<1x1x32xf32>
      %141 = vector.broadcast %138 : vector<8x32x1xf32> to vector<8x32x32xf32>
      %142 = vector.broadcast %140 : vector<1x1x32xf32> to vector<8x32x32xf32>
      %143 = arith.mulf %141, %142 : vector<8x32x32xf32>
      %144 = arith.addf %133, %143 : vector<8x32x32xf32>
      %145 = vector.shape_cast %1 : vector<8x32xf32> to vector<8x1x32xf32>
      %146 = vector.shape_cast %3 : vector<32x32xf32> to vector<1x32x32xf32>
      %147 = vector.broadcast %145 : vector<8x1x32xf32> to vector<8x32x32xf32>
      %148 = vector.broadcast %146 : vector<1x32x32xf32> to vector<8x32x32xf32>
      %149 = arith.addf %147, %148 : vector<8x32x32xf32>
      %150 = vector.shape_cast %36 : vector<8x32xf32> to vector<8x32x1xf32>
      %151 = vector.shape_cast %7 : vector<1x32xf32> to vector<1x1x32xf32>
      %152 = vector.broadcast %150 : vector<8x32x1xf32> to vector<8x32x32xf32>
      %153 = vector.broadcast %151 : vector<1x1x32xf32> to vector<8x32x32xf32>
      %154 = arith.mulf %152, %153 : vector<8x32x32xf32>
      %155 = arith.addf %149, %154 : vector<8x32x32xf32>
      %156 = arith.addf %155, %144 : vector<8x32x32xf32>
      %157 = vector.broadcast %37 : vector<8x32x1xf32> to vector<8x32x32xf32>
      %158 = arith.mulf %156, %157 : vector<8x32x32xf32>
      %c0_30 = arith.constant 0 : index
      %c0_31 = arith.constant 0 : index
      %c0_32 = arith.constant 0 : index
      %c0_33 = arith.constant 0 : index
      %159 = vector.load %arg10[%c0_30, %c0_31, %c0_32, %c0_33] : memref<1x8x32x32xf32, #tpu.memory_space<vmem>>, vector<1x8x32x32xf32>
      %160 = vector.shape_cast %159 : vector<1x8x32x32xf32> to vector<8x32x32xf32>
      %161 = vector.shape_cast %158 : vector<8x32x32xf32> to vector<1x8x32x32xf32>
      tpu.vector_store %arg10[%c0_30, %c0_31, %c0_32, %c0_33], %161 {strides = array<i32>} : memref<1x8x32x32xf32, #tpu.memory_space<vmem>>, vector<1x8x32x32xf32>,
    } else {
    }
    return
  }
  func.func @transform_0(%arg0: i32, %arg1: i32, %arg2: i32) -> (i32, i32, i32) {
    %c0_i32 = arith.constant 0 : i32
    %c0_i32_0 = arith.constant 0 : i32
    return %arg0, %arg1, %c0_i32 : i32, i32, i32
  }
  func.func @transform_1(%arg0: i32, %arg1: i32, %arg2: i32) -> (i32, i32, i32) {
    %c0_i32 = arith.constant 0 : i32
    %c0_i32_0 = arith.constant 0 : i32
    return %arg0, %arg2, %c0_i32 : i32, i32, i32
  }
  func.func @transform_2(%arg0: i32, %arg1: i32, %arg2: i32) -> (i32, i32, i32) {
    %c0_i32 = arith.constant 0 : i32
    %c0_i32_0 = arith.constant 0 : i32
    return %arg0, %arg1, %c0_i32 : i32, i32, i32
  }
  func.func @transform_3(%arg0: i32, %arg1: i32, %arg2: i32) -> (i32, i32, i32) {
    %c0_i32 = arith.constant 0 : i32
    %c0_i32_0 = arith.constant 0 : i32
    return %arg0, %c0_i32, %arg2 : i32, i32, i32
  }
  func.func @transform_4(%arg0: i32, %arg1: i32, %arg2: i32) -> (i32, i32, i32) {
    %c0_i32 = arith.constant 0 : i32
    return %arg0, %arg1, %arg2 : i32, i32, i32
  }
  func.func @transform_5(%arg0: i32, %arg1: i32, %arg2: i32) -> (i32, i32) {
    %c0_i32 = arith.constant 0 : i32
    %c0_i32_0 = arith.constant 0 : i32
    %c0_i32_1 = arith.constant 0 : i32
    return %c0_i32, %c0_i32_0 : i32, i32
  }
  func.func @transform_6(%arg0: i32, %arg1: i32, %arg2: i32) -> (i32, i32) {
    %c0_i32 = arith.constant 0 : i32
    %c0_i32_0 = arith.constant 0 : i32
    %c0_i32_1 = arith.constant 0 : i32
    return %c0_i32, %c0_i32_0 : i32, i32
  }
  func.func @transform_7(%arg0: i32, %arg1: i32, %arg2: i32) -> (i32, i32, i32, i32) {
    %c0_i32 = arith.constant 0 : i32
    %c0_i32_0 = arith.constant 0 : i32
    return %arg0, %arg1, %arg2, %c0_i32 : i32, i32, i32, i32
  }
}

</mosaic_0001>

<bundles_post_ra>
// kernel: tpu_custom_call.1
= control target key start
LH: loop header
LB: loop body
LE: loop exit
PB: predicated region body
PF: predicated region fallthrough
CT: control target
= control target key end

     0   :  { %s5902_s0 = inlined_call_operand.vmem [shape: f32[2,32,32], index: 0, kind: input, shape index: {}]   ;;  %s5903_s1 = inlined_call_operand.hbm [shape: f32[2,32,32], index: 1, kind: input, shape index: {}]   ;;  %s5904_s2 = inlined_call_operand.vmem [shape: f32[2,32,3], index: 2, kind: input, shape index: {}]   ;;  %s5905_s3 = inlined_call_operand.vmem [shape: f32[2,3,32], index: 3, kind: input, shape index: {}]   ;;  %s5906_s4 = inlined_call_operand.hbm [shape: f32[2,32,32], index: 4, kind: input, shape index: {}]   ;;  %s5907_s5 = inlined_call_operand.vmem [shape: f32[7,32], index: 5, kind: input, shape index: {}]   ;;  %s5908_s6 = inlined_call_operand.vmem [shape: f32[1,32], index: 6, kind: input, shape index: {}]   ;;  %s5909_s7 = inlined_call_operand.hbm [shape: f32[2,32,32,32], index: 7, kind: output, shape index: {}]  }
   0x1   :  { %5988 = sst [smem:[#allocation187_spill]] %s5903_s1 }
   0x2   :  { %5989 = sst [smem:[#allocation188_spill]] %s5905_s3 }
   0x3   :  { %5990 = sst [smem:[#allocation189_spill]] %s5907_s5 }
   0x4   :  { %5991 = sst [smem:[#allocation190_spill]] %s5908_s6 }
   0x5   :  { %5992 = sst [smem:[#allocation191_spill]] %s5909_s7 }
   0x6   :  { %12 = vsyncpa [#allocation3], 0 }
   0x7   :  { %14 = vsyncpa [#allocation3 + $0x1], 0 }
   0x8   :  { %15 = vsyncpa [#allocation6], 0 }
   0x9   :  { %17 = vsyncpa [#allocation6 + $0x1], 0 }
   0xa   :  { %18 = vsyncpa [#allocation4], 0 }
   0xb   :  { %20 = vsyncpa [#allocation4 + $0x1], 0  ;;  %s3738_s24 = smov 0   ;;  %s3740_s25 = smov 0  }
   0xc   :  { %s3742_s26 = smov 0   ;;  %s3744_s27 = smov 0  }
   0xd   :  { %s3746_s28 = smov 0   ;;  %s3748_s29 = smov 0  }
   0xe   :  { %s3750_s30 = smov 0   ;;  %s3752_s8 = smov 0  }
   0xf   :  { %s3754_s9 = smov 0   ;;  %s3756_s10 = smov 0  }
  0x10   :  { %s3758_s11 = smov 0  }
  0x11 LB: > { %5993 = sst [smem:[#allocation11_spill]] %s3643_s24  ;;  %p89_p0 = scmp.ne.s32.totalorder %s3663_s29, %s3659_s28  ;;  %s3683_s11 = sphi %s3758_s11, %s26_s11   ;;  %s3679_s10 = sphi %s3756_s10, %s6418_s10   ;;  %s3675_s9 = sphi %s3754_s9, %s6417_s9   ;;  %s3671_s8 = sphi %s3752_s8, %s6407_s8   ;;  %s3667_s30 = sphi %s3750_s30, %s6416_s30   ;;  %s3663_s29 = sphi %s3748_s29, %s6415_s29   ;;  %s3659_s28 = sphi %s3746_s28, %s6414_s28   ;;  %s3655_s27 = sphi %s3744_s27, %s6413_s27   ;;  %s3651_s26 = sphi %s3742_s26, %s6412_s26   ;;  %s3647_s25 = sphi %s3740_s25, %s6411_s25   ;;  %s3643_s24 = sphi %s3738_s24, %s6410_s24  }
  0x12   : > { %5994 = sst [smem:[#allocation12_spill]] %s3679_s10  ;;  %p90_p1 = scmp.eq.s32.totalorder %s3683_s11, 0 }
  0x13   : > { %p5910_p2 = scmp.lt.s32.totalorder %s3683_s11, 8  ;;  %s294_s13 = sand.u32 1, %s3663_s29  }
  0x14   : > { %p91_p3 = por %p90_p1, %p89_p0  ;;  %s3347_s14 = sshll.u32 %s294_s13, 5 }
  0x15   : > { %s3378_s15 = sshll.u32 %s3679_s10, 9  ;;  %s5995_s1 = sld [smem:[#allocation187_spill]] }
  0x16   : > { %s298_s19 = scalar_lea.vmem [#allocation2], %s3347_s14  ;;  %p3807_p4 = pnand %p5910_p2, %p91_p3 }
  0x17   : > { %s307_s20 = sshll.u32 %s298_s19, 4  ;;  %p3353_p5 = scmp.ge.s32.totalorder %s3683_s11, 1  ;;  %s308_s20 = int_to_ptr.vmem [resolvable:$true] %s307_s20 }
  0x18   : > { %s295_s22 = scalar_lea.sflag [#allocation3], %s294_s13  ;;  %p3505_p6 = pneg %p3807_p4 }
  0x19   : > { %s3516_s23 = scalar_lea.vmem %s308_s20, 512  ;;  %s3685_s12 = smov [#allocation2]  }
  0x1a   : > { %p3517_p7 = scmp.ne.s32.totalorder %s308_s20, %s3516_s23  ;;  %s3521_s16 = sshll.u32 %s3685_s12, 4  ;;  %s3522_s16 = int_to_ptr.vmem [resolvable:$false] %s3521_s16 }
  0x1b   : > { %s306_s18 = scalar_lea.hbm %s5995_s1, %s3378_s15  ;;  %s3523_s14 = scalar_lea.vmem %s3522_s16, 1024 }
  0x1c   : > { %p3519_p8 = pnand %p3517_p7, %p3505_p6  ;;  %p3524_p10 = scmp.lt.s32.totalorder %s308_s20, %s3522_s16 }
  0x1d   : > { %p3525_p11 = scmp.lt.s32.totalorder %s3523_s14, %s3516_s23 }
  0x1e   : > { %p3520_p9 = pneg %p3519_p8 }
  0x1f   : > { %p3526_p12 = por %p3525_p11, %p3524_p10 }
  0x21   : > { %p3527_p13 = pnand %p3526_p12, %p3520_p9 }
  0x23   : > { %3530 = shalt.err (!%p3527_p13)
}
  0x24   : > { %s3686_s15 = smov 128   ;;  %s3687_s12 = smov 8  }
  0x25   : > { %3389 = dma.hbm_to_vmem [thread:$0]  (!%p3807_p4), %s306_s18, 512, %s308_s20, %s295_s22, %s3686_s15, %s3686_s15, %s3687_s12  }
  0x26   : > { %p357_p0 = scmp.lt.s32.totalorder %s3683_s11, 9  ;;  %p95_p6 = scmp.ne.s32.totalorder %s3659_s28, %s3655_s27 }
  0x27   : > { %s3343_s17 = sadd.s32 4294967295, %s3683_s11   ;;  %s41_s19 = sadd.s32 1, %s3675_s9 }
  0x28   : > { %p3819_p3 = pnand %p3353_p5, %p357_p0  ;;  %s45_s23 = sadd.s32 1, %s3679_s10 }
  0x29   : > { %p43_p7 = scmp.ge.s32.totalorder %s41_s19, 4  ;;  %p96_p8 = scmp.eq.s32.totalorder %s3343_s17, 0 }
  0x2a   : > { %s3344_s21 = sadd.s32 4294967294, %s3683_s11   ;;  %s168_s18 = sadd.s32 1, %s3651_s26 }
  0x2b   : > { %s6420_s19 = smov (%p43_p7, %s41_s19), 0  ;;  %s6422_s23 = smov (!%p43_p7, %s45_s23), %s3679_s10 }
  0x2c   : > { %5998 = sst [smem:[#allocation13_spill]] %s6420_s19  ;;  %p3833_p4 = por %p96_p8, %p95_p6 }
  0x2d   : > { %p175_p5 = scmp.ne.s32.totalorder %s3651_s26, %s3647_s25  ;;  %p47_p9 = scmp.ge.s32.totalorder %s6422_s23, 2 }
  0x2e   : > { %s162_s27 = ssub.s32 %s3675_s9, %s6420_s19  ;;  %p181_p10 = scmp.ne.s32.totalorder %s3647_s25, %s3643_s24 }
  0x2f   : > { %p251_p11 = scmp.eq.s32.totalorder %s3343_s17, 7  ;;  %s6424_s23 = smov (%p47_p9, %s6422_s23), 0 }
  0x30   : > { %6000 = sst [smem:[#allocation14_spill]] %s6424_s23  ;;  %p3845_p12 = por %p181_p10, %p96_p8 }
  0x31   : > { %p3852_p13 = por %p251_p11, %p175_p5  ;;  %s77_s14 = ssub.s32 %s3679_s10, %s6424_s23 }
  0x32   : > { %p257_p0 = scmp.eq.s32.totalorder %s3344_s21, 7  ;;  %p80_p6 = scmp.eq.s32.totalorder %s77_s14, 0 }
  0x33   : > { %s6002_s16 = scalar_select %p3852_p13, 1, 0 }
  0x34   : > { %s163_s15 = sor.u32 %s162_s27, %s77_s14  ;;  %p3858_p2 = por %p257_p0, %p181_p10 }
  0x35   : > { %6003 = sst [smem:[#allocation15_spill]] %s6002_s16  ;;  %p166_p7 = scmp.eq.s32.totalorder %s163_s15, 0 }
  0x36   : > { %s6004_s12 = scalar_select %p3858_p2, 1, 0 }
  0x37   : > { %s6005_s17 = sadd.s32 1, %s3663_s29  ;;  %s338_s24 = sand.u32 1, %s3651_s26  }
  0x38   : > { %s3865_s1 = scalar_select %p80_p6, %s3663_s29, %s6005_s17  }
  0x39   : > { %s3868_s19 = scalar_select %p166_p7, %s3651_s26, %s168_s18  }
  0x3a   : > { %s3351_s7 = sshll.u32 %s3679_s10, 2  ;;  %p177_p8 = por %p175_p5, %p90_p1 }
  0x3b   : > { %s3350_s23 = sshll.u32 %s338_s24, 3  ;;  %s348_s21 = sadd.s32 %s3675_s9, %s3351_s7 }
  0x3c   : > { %s3352_s16 = sshll.u32 %s348_s21, 7  ;;  %s342_s6 = scalar_lea.vmem [#allocation5], %s3350_s23 }
  0x3d   : > { %s352_s27 = sshll.u32 %s342_s6, 4  ;;  %s350_s5 = scalar_lea.hbm %s5906_s4, %s3352_s16  ;;  %s353_s27 = int_to_ptr.vmem [resolvable:$true] %s352_s27 }
  0x3e   : > { %p6006_p9 = scmp.lt.s32.totalorder %s3683_s11, 8  ;;  %s339_s18 = scalar_lea.sflag [#allocation6], %s338_s24 }
  0x3f   : > { %s3544_s10 = scalar_lea.vmem %s353_s27, 128  ;;  %s3688_s7 = smov [#allocation5]  }
  0x40   : > { %p3883_p10 = pnand %p6006_p9, %p177_p8  ;;  %p3545_p1 = scmp.ne.s32.totalorder %s353_s27, %s3544_s10 }
  0x41   : > { %s3549_s6 = sshll.u32 %s3688_s7, 4  ;;  %s3550_s6 = int_to_ptr.vmem [resolvable:$false] %s3549_s6 }
  0x42   : > { %p3533_p11 = pneg %p3883_p10  ;;  %s3551_s23 = scalar_lea.vmem %s3550_s6, 256 }
  0x43   : > { %p3552_p6 = scmp.lt.s32.totalorder %s353_s27, %s3550_s6  ;;  %p3553_p7 = scmp.lt.s32.totalorder %s3551_s23, %s3544_s10 }
  0x44   : > { %p3547_p5 = pnand %p3545_p1, %p3533_p11 }
  0x45   : > { %p3554_p2 = por %p3553_p7, %p3552_p6 }
  0x46   : > { %p3548_p0 = pneg %p3547_p5 }
  0x48   : > { %p3555_p13 = pnand %p3554_p2, %p3548_p0 }
  0x4a   : > { %3558 = shalt.err (!%p3555_p13)
}
  0x4b   : > { %3392 = dma.hbm_to_vmem [thread:$0]  (!%p3883_p10), %s350_s5, 128, %s353_s27, %s339_s18  }
  0x4c   : > { %361 = sbr.rel (%p3819_p3) target bundleno = 1123 (0x463), region = 48 }
  0x51   : > { %s363_s24 = sand.u32 1, %s3659_s28  }
  0x52   : > { %s3354_s16 = sshll.u32 %s363_s24, 5  ;;  %s364_s21 = scalar_lea.sflag [#allocation3], %s363_s24 }
  0x53   : > { %s3894_s14 = scalar_lea.vmem [#allocation2], %s3354_s16 }
  0x54   : > { %3630 = dma.done.wait (%p3833_p4), %s364_s21, 512  }
  0x55   : > { %3632 = vsyncadd (%p3833_p4), %s364_s21, 4294966784  ;;  %s3901_s10 = sand.u32 1, %s3647_s25  }
  0x56   : > { %s3355_s5 = sshll.u32 %s3901_s10, 3  ;;  %s373_s13 = scalar_lea.sflag [#allocation6], %s3901_s10 }
  0x57   : > { %s376_s27 = scalar_lea.vmem [#allocation5], %s3355_s5 }
  0x58   : > { %3634 = dma.done.wait (%p3845_p12), %s373_s13, 128  }
  0x59   : > { %3636 = vsyncadd (%p3845_p12), %s373_s13, 4294967168  ;;  %p435_p2 = scmp.lt.s32.totalorder %s3671_s8, 1  ;;  %p437_p3 = scmp.lt.s32.totalorder %s3667_s30, 3  ;;  %v5919_v0 = vlaneseq  ;;  %v3689_v1 = vmov 2   ;;  %v3690_v2 = vmov 0   ;;  %v3923_v5 = vld [vmem:[%s3894_s14] sm:$0xff] }
  0x5a   : > { %3499 = vset.pattern.permute.xlu1 %v3689_v1  ;;  %3497 = vset.pattern.permute.xlu0 %v3690_v2  ;;  %s6010_s3 = sld [smem:[#allocation188_spill]]  ;;  %6011 = vst [vmem:[#allocation18_spill] sm:$0xff] %v3923_v5  ;;  %v3926_v6 = vld [vmem:[%s3894_s14 + $0x8] sm:$0xff]  ;;  %v3929_v7 = vld [vmem:[%s3894_s14 + $0x10] sm:$0xff]  ;;  %v3938_v8 = vld [vmem:[%s3894_s14 + $0x18] sm:$0xff]  ;;  %v3691_v21 = vmov 1  }
  0x5b   : > { %s436_s20 = scalar_select %p435_p2, %s3671_s8, 1  ;;  %v3913_v3 = vshrl.u32 %v5919_v0, 7  ;;  %6012 = vst [vmem:[#allocation19_spill] sm:$0xff] %v3926_v6  ;;  %6013 = vst [vmem:[#allocation20_spill] sm:$0xff] %v3929_v7  ;;  %v466_v13 = vld [vmem:[%s376_s27] sm:$0xff] }
  0x5c   : > { %s438_s22 = scalar_select %p437_p3, %s3667_s30, 3  ;;  %6014 = vst [vmem:[#allocation21_spill] sm:$0xff] %v3938_v8 }
  0x5d   : > { %6008 = vst [vmem:[#allocation16_spill] sm:$0xff] %v3913_v3  ;;  %s3357_s15 = sshll.u32 %s436_s20, 2  ;;  %v3917_v4 = vsub.s32 0, %v3913_v3  ;;  %s6015_s7 = sld [smem:[#allocation189_spill]]  ;;  %v3954_v15 = vsub.s32 1, %v3913_v3  ;;  %v3957_v16 = vsub.s32 2, %v3913_v3 }
  0x5e   : > { %s440_s17 = sadd.s32 %s3357_s15, %s438_s22  ;;  %v3970_v24 = vsub.s32 3, %v3913_v3  ;;  %v3974_v26 = vsub.s32 4, %v3913_v3  ;;  %v3978_v28 = vsub.s32 5, %v3913_v3  ;;  %v3982_v30 = vsub.s32 6, %v3913_v3  ;;  %s3356_s24 = sshll.u32 %s3901_s10, 8 }
  0x5f   : > { %s3358_s18 = sshll.u32 %s440_s17, 3  ;;  %6009 = vst [vmem:[#allocation17_spill] sm:$0xff] %v3917_v4  ;;  %v516_v14 = vrot.slane %v466_v13, %v3917_v4  ;;  %6020 = vst [vmem:[#allocation25_spill] sm:$0xff] %v3957_v16  ;;  %v535_v22 = vrot.slane %v466_v13, %v3954_v15  ;;  %v554_v23 = vrot.slane %v466_v13, %v3957_v16  ;;  %v3986_v32 = vsub.s32 7, %v3913_v3  ;;  %s4078_s16 = scalar_lea.vmem [#allocation7], %s3356_s24 }
  0x60   : > { %s458_s23 = scalar_lea.vmem %s6010_s3, %s3357_s15  ;;  %s442_s21 = scalar_lea.vmem %s5902_s0, %s3358_s18  ;;  %6021 = vst [vmem:[#allocation26_spill] sm:$0xff] %v3970_v24  ;;  %v573_v25 = vrot.slane %v466_v13, %v3970_v24  ;;  %6022 = vst [vmem:[#allocation27_spill] sm:$0xff] %v3974_v26  ;;  %v592_v27 = vrot.slane %v466_v13, %v3974_v26  ;;  %v611_v29 = vrot.slane %v466_v13, %v3978_v28 }
  0x61   : > { %s451_s20 = scalar_lea.vmem %s5904_s2, %s3358_s18  ;;  %s6017_s3 = sld [smem:[#allocation190_spill]]  ;;  %v3950_v12 = vld [vmem:[%s442_s21] sm:$0xff]  ;;  %6023 = vst [vmem:[#allocation28_spill] sm:$0xff] %v3978_v28  ;;  %6024 = vst [vmem:[#allocation29_spill] sm:$0xff] %v3982_v30  ;;  %v630_v31 = vrot.slane %v466_v13, %v3982_v30  ;;  %v649_v33 = vrot.slane %v466_v13, %v3986_v32 }
  0x62   : > { %v469_v11 = vld [vmem:[%s451_s20] sm:$0xff]  ;;  %6019 = vst [vmem:[#allocation24_spill] sm:$0xff] %v3950_v12  ;;  %6025 = vst [vmem:[#allocation30_spill] sm:$0xff] %v3986_v32 }
  0x63   : > { %v3943_v9 = vld [vmem:[%s6015_s7] sm:$0x7f]  ;;  %495 = vperm.xlu1 %3499, %v469_v11   ;;  %473 = vperm.xlu0 %3497, %v469_v11  }
  0x64   : > { %6016 = vst [vmem:[#allocation22_spill] sm:$0xff] %v3943_v9  ;;  %v3959_v17 = vld [vmem:[%s458_s23] sm:$0x7] }
  0x65   : > { %v501_v18 = vrot.slane %v3959_v17, %v3957_v16  ;;  %v479_v19 = vrot.slane %v3959_v17, %v3917_v4  ;;  %v490_v20 = vrot.slane %v3959_v17, %v3954_v15 }
  0x67   : > { %v3948_v10 = vld [vmem:[%s6017_s3] sm:$0x1]  ;;  %3498 = vset.pattern.permute.xlu0 %v3691_v21  ;;  %518 = vbcast.lane.b32.xlu1 %v516_v14, 256  ;;  %s3990_s3 = sshll.u32 %s3667_s30, 3 }
  0x68   : > { %6018 = vst [vmem:[#allocation23_spill] sm:$0xff] %v3948_v10  ;;  %484 = vperm.xlu0 %3498, %v469_v11   ;;  %s3363_s14 = sadd.s32 4294967265, %s3990_s3  ;;  %s669_s27 = sadd.s32 7, %s3990_s3 }
  0x69   : > { %p3994_p4 = scmp.ge.s32.totalorder %s3363_s14, 3  ;;  %p3998_p12 = scmp.le.s32.totalorder %s669_s27, 4294967293 }
  0x6b   : > { %522 = vbcast.lane.b32.xlu1 %v516_v14, 264  ;;  %p673_p13 = por %p3998_p12, %p3994_p4 }
  0x6c   : > { %526 = vbcast.lane.b32.xlu0 %v516_v14, 272  ;;  %vm1100_vm2 = vcmask (%p673_p13), 261120  }
  0x6d   : > { %3500 = vset.pattern.permute.xlu0 %v3689_v1 }
  0x6f   : > { %530 = vbcast.lane.b32.xlu1 %v516_v14, 280 }
  0x70   : > { %537 = vbcast.lane.b32.xlu0 %v535_v22, 256 }
  0x73   : > { %541 = vbcast.lane.b32.xlu1 %v535_v22, 264 }
  0x74   : > { %545 = vbcast.lane.b32.xlu0 %v535_v22, 272 }
  0x77   : > { %549 = vbcast.lane.b32.xlu1 %v535_v22, 280 }
  0x78   : > { %556 = vbcast.lane.b32.xlu0 %v554_v23, 256 }
  0x7b   : > { %560 = vbcast.lane.b32.xlu1 %v554_v23, 264 }
  0x7c   : > { %564 = vbcast.lane.b32.xlu0 %v554_v23, 272 }
  0x7f   : > { %568 = vbcast.lane.b32.xlu1 %v554_v23, 280 }
  0x80   : > { %575 = vbcast.lane.b32.xlu0 %v573_v25, 256 }
  0x83   : > { %579 = vbcast.lane.b32.xlu1 %v573_v25, 264 }
  0x84   : > { %583 = vbcast.lane.b32.xlu0 %v573_v25, 272 }
  0x87   : > { %587 = vbcast.lane.b32.xlu1 %v573_v25, 280 }
  0x88   : > { %594 = vbcast.lane.b32.xlu0 %v592_v27, 256 }
  0x8b   : > { %598 = vbcast.lane.b32.xlu1 %v592_v27, 264 }
  0x8c   : > { %602 = vbcast.lane.b32.xlu0 %v592_v27, 272 }
  0x8f   : > { %606 = vbcast.lane.b32.xlu1 %v592_v27, 280 }
  0x90   : > { %613 = vbcast.lane.b32.xlu0 %v611_v29, 256 }
  0x93   : > { %617 = vbcast.lane.b32.xlu1 %v611_v29, 264 }
  0x94   : > { %621 = vbcast.lane.b32.xlu0 %v611_v29, 272 }
  0x97   : > { %625 = vbcast.lane.b32.xlu1 %v611_v29, 280 }
  0x98   : > { %632 = vbcast.lane.b32.xlu0 %v630_v31, 256 }
  0x9b   : > { %636 = vbcast.lane.b32.xlu1 %v630_v31, 264 }
  0x9c   : > { %640 = vbcast.lane.b32.xlu0 %v630_v31, 272 }
  0x9f   : > { %644 = vbcast.lane.b32.xlu1 %v630_v31, 280 }
  0xa0   : > { %651 = vbcast.lane.b32.xlu0 %v649_v33, 256 }
  0xa3   : > { %655 = vbcast.lane.b32.xlu1 %v649_v33, 264 }
  0xa4   : > { %659 = vbcast.lane.b32.xlu0 %v649_v33, 272 }
  0xa7   : > { %663 = vbcast.lane.b32.xlu1 %v649_v33, 280 }
  0xde   : > { %v496_v34 = vpop.permute.xlu1 %495  ;;  %v474_v35 = vpop.permute.xlu0 %473 }
  0xdf   : > { %v480_v36 = vsub.f32 %v474_v35, %v479_v19  ;;  %v502_v39 = vsub.f32 %v496_v34, %v501_v18 }
  0xe1   : > { %v481_v41 = vmul.f32 %v480_v36, %v480_v36  ;;  %v503_v45 = vmul.f32 %v502_v39, %v502_v39 }
  0xe2   : > { %v4007_v37 = vpop.permute.xlu1 %518 }
  0xe3   : > { %6028 = vst [vmem:[#allocation31_spill] sm:$0xff] %v4007_v37  ;;  %v485_v38 = vpop.permute.xlu0 %484 }
  0xe4   : > { %v491_v40 = vsub.f32 %v485_v38, %v490_v20 }
  0xe6   : > { %v492_v42 = vmul.f32 %v491_v40, %v491_v40  ;;  %v4012_v43 = vpop.permute.xlu1 %522 }
  0xe7   : > { %6029 = vst [vmem:[#allocation32_spill] sm:$0xff] %v4012_v43  ;;  %v4014_v44 = vpop.permute.xlu0 %526 }
  0xe8   : > { %6030 = vst [vmem:[#allocation33_spill] sm:$0xff] %v4014_v44  ;;  %v493_v46 = vadd.f32 %v492_v42, %v481_v41 }
  0xea   : > { %v504_v47 = vadd.f32 %v503_v45, %v493_v46  ;;  %v4016_v48 = vpop.permute.xlu1 %530 }
  0xeb   : > { %6031 = vst [vmem:[#allocation34_spill] sm:$0xff] %v4016_v48  ;;  %v4018_v49 = vpop.permute.xlu0 %537 }
  0xec   : > { %6032 = vst [vmem:[#allocation35_spill] sm:$0xff] %v4018_v49  ;;  %v505_v50 = vadd.f32 1e-10, %v504_v47  ;;  %v3692_v47 = vmov (%p673_p13), 1966171168  }
  0xee   : > { %3501 = vrsqrt.f32 %v505_v50  ;;  %v4020_v51 = vpop.permute.xlu1 %541  ;;  %vm508_vm0 = vcmp.eq.f32.partialorder %v505_v50, inf  ;;  %v511_v61 = vand.u32 2147483648, %v505_v50  ;;  %vm510_vm1 = vcmp.eq.f32.partialorder %v505_v50, 0.0 }
  0xef   : > { %6033 = vst [vmem:[#allocation36_spill] sm:$0xff] %v4020_v51  ;;  %v4022_v52 = vpop.permute.xlu0 %545 }
  0xf0   : > { %6034 = vst [vmem:[#allocation37_spill] sm:$0xff] %v4022_v52 }
  0xf2   : > { %v4024_v53 = vpop.permute.xlu1 %549 }
  0xf3   : > { %6035 = vst [vmem:[#allocation38_spill] sm:$0xff] %v4024_v53  ;;  %v4026_v54 = vpop.permute.xlu0 %556 }
  0xf4   : > { %6036 = vst [vmem:[#allocation39_spill] sm:$0xff] %v4026_v54 }
  0xf6   : > { %v4028_v55 = vpop.permute.xlu1 %560 }
  0xf7   : > { %6037 = vst [vmem:[#allocation40_spill] sm:$0xff] %v4028_v55  ;;  %v4030_v56 = vpop.permute.xlu0 %564 }
  0xf8   : > { %6038 = vst [vmem:[#allocation41_spill] sm:$0xff] %v4030_v56 }
  0xfa   : > { %v4032_v57 = vpop.permute.xlu1 %568 }
  0xfb   : > { %6039 = vst [vmem:[#allocation42_spill] sm:$0xff] %v4032_v57  ;;  %v3502_v58 = vpop.eup %3501  ;;  %v4034_v59 = vpop.permute.xlu0 %575 }
  0xfc   : > { %6040 = vst [vmem:[#allocation43_spill] sm:$0xff] %v4034_v59  ;;  %v507_v60 = vmul.f32 %v3502_v58, %v505_v50 }
  0xfe   : > { %v509_v62 = vsel %vm508_vm0, %v505_v50, %v507_v60  ;;  %v4036_v63 = vpop.permute.xlu1 %579  ;;  %v691_v50 = vunpack.c.l.s4 (%p673_p13), %v3692_v47 }
  0xff   : > { %6041 = vst [vmem:[#allocation44_spill] sm:$0xff] %v4036_v63  ;;  %v4038_v1 = vsel %vm510_vm1, %v511_v61, %v509_v62  ;;  %v4040_v2 = vpop.permute.xlu0 %583 }
 0x100   : > { %6042 = vst [vmem:[#allocation45_spill] sm:$0xff] %v4038_v1  ;;  %6043 = vst [vmem:[#allocation46_spill] sm:$0xff] %v4040_v2  ;;  %v813_v36 = vrot.slane (%p673_p13), %v4038_v1, %v3917_v4  ;;  %v832_v38 = vrot.slane (%p673_p13), %v4038_v1, %v3954_v15  ;;  %v851_v39 = vrot.slane (%p673_p13), %v4038_v1, %v3957_v16  ;;  %v692_v58 = vunpack.c.0.s8 (%p673_p13), %v691_v50 }
 0x101   : > { %v870_v40 = vrot.slane (%p673_p13), %v4038_v1, %v3970_v24  ;;  %v889_v41 = vrot.slane (%p673_p13), %v4038_v1, %v3974_v26  ;;  %v908_v42 = vrot.slane (%p673_p13), %v4038_v1, %v3978_v28  ;;  %v927_v45 = vrot.slane (%p673_p13), %v4038_v1, %v3982_v30 }
 0x102   : > { %v4042_v11 = vpop.permute.xlu1 %587  ;;  %823 = vbcast.lane.b32.xlu1 (%p673_p13), %v813_v36, 272  ;;  %815 = vbcast.lane.b32.xlu0 (%p673_p13), %v813_v36, 256  ;;  %v946_v46 = vrot.slane (%p673_p13), %v4038_v1, %v3986_v32  ;;  %v4104_v60 = vsub.s32 (%p673_p13), %v692_v58, %v3913_v3 }
 0x103   : > { %6044 = vst [vmem:[#allocation47_spill] sm:$0xff] %v4042_v11  ;;  %v4044_v13 = vpop.permute.xlu0 %594 }
 0x104   : > { %6045 = vst [vmem:[#allocation48_spill] sm:$0xff] %v4044_v13  ;;  %v696_v62 = vrot.slane (%p673_p13), %v3950_v12, %v4104_v60 }
 0x106   : > { %v4046_v14 = vpop.permute.xlu1 %598  ;;  %827 = vbcast.lane.b32.xlu1 (%p673_p13), %v813_v36, 280  ;;  %819 = vbcast.lane.b32.xlu0 (%p673_p13), %v813_v36, 264 }
 0x107   : > { %6046 = vst [vmem:[#allocation49_spill] sm:$0xff] %v4046_v14  ;;  %v4048_v17 = vpop.permute.xlu0 %602 }
 0x108   : > { %6047 = vst [vmem:[#allocation50_spill] sm:$0xff] %v4048_v17 }
 0x10a   : > { %v4050_v18 = vpop.permute.xlu1 %606  ;;  %838 = vbcast.lane.b32.xlu1 (%p673_p13), %v832_v38, 264  ;;  %834 = vbcast.lane.b32.xlu0 (%p673_p13), %v832_v38, 256 }
 0x10b   : > { %6048 = vst [vmem:[#allocation51_spill] sm:$0xff] %v4050_v18  ;;  %v4052_v19 = vpop.permute.xlu0 %613 }
 0x10c   : > { %6049 = vst [vmem:[#allocation52_spill] sm:$0xff] %v4052_v19 }
 0x10e   : > { %v4054_v20 = vpop.permute.xlu1 %617  ;;  %846 = vbcast.lane.b32.xlu1 (%p673_p13), %v832_v38, 280  ;;  %842 = vbcast.lane.b32.xlu0 (%p673_p13), %v832_v38, 272 }
 0x10f   : > { %6050 = vst [vmem:[#allocation53_spill] sm:$0xff] %v4054_v20  ;;  %v4056_v21 = vpop.permute.xlu0 %621 }
 0x110   : > { %6051 = vst [vmem:[#allocation54_spill] sm:$0xff] %v4056_v21 }
 0x112   : > { %v4058_v22 = vpop.permute.xlu1 %625  ;;  %857 = vbcast.lane.b32.xlu1 (%p673_p13), %v851_v39, 264  ;;  %853 = vbcast.lane.b32.xlu0 (%p673_p13), %v851_v39, 256 }
 0x113   : > { %6052 = vst [vmem:[#allocation55_spill] sm:$0xff] %v4058_v22  ;;  %v4060_v23 = vpop.permute.xlu0 %632 }
 0x114   : > { %6053 = vst [vmem:[#allocation56_spill] sm:$0xff] %v4060_v23 }
 0x116   : > { %v4062_v25 = vpop.permute.xlu1 %636  ;;  %865 = vbcast.lane.b32.xlu1 (%p673_p13), %v851_v39, 280  ;;  %861 = vbcast.lane.b32.xlu0 (%p673_p13), %v851_v39, 272  ;;  %v712_v39 = vrot.slane (%p673_p13), %v696_v62, %v4104_v60 }
 0x117   : > { %6054 = vst [vmem:[#allocation57_spill] sm:$0xff] %v4062_v25  ;;  %v4064_v27 = vpop.permute.xlu0 %640 }
 0x118   : > { %6055 = vst [vmem:[#allocation58_spill] sm:$0xff] %v4064_v27 }
 0x11a   : > { %v4066_v29 = vpop.permute.xlu1 %644  ;;  %876 = vbcast.lane.b32.xlu1 (%p673_p13), %v870_v40, 264  ;;  %872 = vbcast.lane.b32.xlu0 (%p673_p13), %v870_v40, 256 }
 0x11b   : > { %6056 = vst [vmem:[#allocation59_spill] sm:$0xff] %v4066_v29  ;;  %v4068_v31 = vpop.permute.xlu0 %651 }
 0x11c   : > { %6057 = vst [vmem:[#allocation60_spill] sm:$0xff] %v4068_v31 }
 0x11e   : > { %v4070_v33 = vpop.permute.xlu1 %655  ;;  %884 = vbcast.lane.b32.xlu1 (%p673_p13), %v870_v40, 280  ;;  %880 = vbcast.lane.b32.xlu0 (%p673_p13), %v870_v40, 272 }
 0x11f   : > { %6058 = vst [vmem:[#allocation61_spill] sm:$0xff] %v4070_v33  ;;  %v4072_v34 = vpop.permute.xlu0 %659  ;;  %676 = sbr.rel (!%p673_p13) target bundleno = 442 (0x1ba), region = 60 }
 0x120   : > { %6059 = vst [vmem:[#allocation62_spill] sm:$0xff] %v4072_v34 }
 0x122   : > { %v4074_v35 = vpop.permute.xlu1 %663  ;;  %895 = vbcast.lane.b32.xlu1 (%p673_p13), %v889_v41, 264  ;;  %891 = vbcast.lane.b32.xlu0 (%p673_p13), %v889_v41, 256 }
 0x123   : > { %6060 = vst [vmem:[#allocation63_spill] sm:$0xff] %v4074_v35 }
 0x124   : > { %s677_s21 = scalar_select %p3994_p4, 1, 0 }
 0x126   : > { %903 = vbcast.lane.b32.xlu1 %v889_v41, 280  ;;  %899 = vbcast.lane.b32.xlu0 %v889_v41, 272  ;;  %s678_s5 = scvt.s32.f32 %s677_s21 }
 0x128   : > { %s681_s13 = ssub.f32 1.0, %s678_s5  ;;  %v679_v38 = vstv %s678_s5 }
 0x129   : > { %v680_v40 = vmul.f32 %v679_v38, %v3943_v9 }
 0x12a   : > { %914 = vbcast.lane.b32.xlu1 %v908_v42, 264  ;;  %910 = vbcast.lane.b32.xlu0 %v908_v42, 256  ;;  %v682_v61 = vstv %s681_s13 }
 0x12b   : > { %v683_v36 = vmul.f32 %v682_v61, %v3943_v9 }
 0x12d   : > { %v685_v41 = vrot.slane %v683_v36, 2 }
 0x12e   : > { %922 = vbcast.lane.b32.xlu1 %v908_v42, 280  ;;  %918 = vbcast.lane.b32.xlu0 %v908_v42, 272  ;;  %v704_v42 = vcombine.high %v696_v62, %v696_v62 }
 0x12f   : > { %v687_v47 = vadd.f32 %v685_v41, %v680_v40 }
 0x130   : > { %v4117_v50 = vrot.slane %v704_v42, %v4104_v60 }
 0x131   : > { %v4123_v62 = vrot.slane %v687_v47, %v3982_v30 }
 0x132   : > { %933 = vbcast.lane.b32.xlu1 %v927_v45, 264  ;;  %929 = vbcast.lane.b32.xlu0 %v927_v45, 256 }
 0x136   : > { %941 = vbcast.lane.b32.xlu1 %v927_v45, 280  ;;  %937 = vbcast.lane.b32.xlu0 %v927_v45, 272  ;;  %v741_v45 = vrot.slane %v712_v39, %v3917_v4 }
 0x138   : > { %v780_v58 = vadd.f32 %v741_v45, %v3929_v7  ;;  %v778_v61 = vadd.f32 %v741_v45, %v3923_v5  ;;  %v781_v42 = vadd.f32 %v741_v45, %v3938_v8  ;;  %v779_v9 = vadd.f32 %v741_v45, %v3926_v6 }
 0x13a   : > { %952 = vbcast.lane.b32.xlu1 %v946_v46, 264  ;;  %948 = vbcast.lane.b32.xlu0 %v946_v46, 256 }
 0x13e   : > { %960 = vbcast.lane.b32.xlu1 %v946_v46, 280  ;;  %956 = vbcast.lane.b32.xlu0 %v946_v46, 272  ;;  %v4114_v46 = vrot.slane %v3948_v10, %v3917_v4  ;;  %v745_v10 = vrot.slane %v4117_v50, %v3917_v4 }
 0x174   : > { %v824_v0 = vpop.permute.xlu1 %823  ;;  %v816_v1 = vpop.permute.xlu0 %815 }
 0x175   : > { %v970_v38 = vmul.f32 %v4114_v46, %v824_v0  ;;  %v968_v36 = vmul.f32 %v4114_v46, %v816_v1 }
 0x177   : > { %v1002_v40 = vadd.f32 %v970_v38, %v780_v58  ;;  %v1000_v41 = vadd.f32 %v968_v36, %v778_v61  ;;  %v783_v58 = vadd.f32 %v745_v10, %v3926_v6  ;;  %v782_v61 = vadd.f32 %v745_v10, %v3923_v5 }
 0x178   : > { %v828_v32 = vpop.permute.xlu1 %827  ;;  %v820_v28 = vpop.permute.xlu0 %819  ;;  %v734_v38 = vcombine.high %v712_v39, %v712_v39 }
 0x179   : > { %v1038_v0 = vadd.f32 %v4123_v62, %v1002_v40  ;;  %v1036_v47 = vadd.f32 %v4123_v62, %v1000_v41  ;;  %v971_v30 = vmul.f32 %v4114_v46, %v828_v32  ;;  %v969_v1 = vmul.f32 %v4114_v46, %v820_v28 }
 0x17b   : > { %v1070_v45 = vmul.f32 %v1038_v0, %v4014_v44  ;;  %v1068_v36 = vmul.f32 %v1036_v47, %v4007_v37  ;;  %v1003_v26 = vadd.f32 %v971_v30, %v781_v42  ;;  %v1001_v24 = vadd.f32 %v969_v1, %v779_v9 }
 0x17c   : > { %v839_v16 = vpop.permute.xlu1 %838  ;;  %v835_v40 = vpop.permute.xlu0 %834  ;;  %v785_v0 = vadd.f32 %v745_v10, %v3938_v8  ;;  %v784_v9 = vadd.f32 %v745_v10, %v3929_v7  ;;  %v749_v30 = vrot.slane %v734_v38, %v3917_v4 }
 0x17d   : > { %1103 = vst.msk [vmem:[%s4078_s16 + $0x10] sm:$0xff] %vm1100_vm2, %v1070_v45  ;;  %1101 = vst.msk [vmem:[%s4078_s16] sm:$0xff] %vm1100_vm2, %v1068_v36  ;;  %v1039_v28 = vadd.f32 %v4123_v62, %v1003_v26  ;;  %v1037_v32 = vadd.f32 %v4123_v62, %v1001_v24  ;;  %v973_v39 = vmul.f32 %v4114_v46, %v839_v16 }
 0x17e   : > { %v972_v41 = vmul.f32 %v4114_v46, %v835_v40  ;;  %v787_v40 = vadd.f32 %v749_v30, %v3926_v6 }
 0x17f   : > { %v1071_v42 = vmul.f32 %v1039_v28, %v4016_v48  ;;  %v1069_v47 = vmul.f32 %v1037_v32, %v4012_v43  ;;  %v1005_v1 = vadd.f32 %v973_v39, %v783_v58  ;;  %v786_v58 = vadd.f32 %v749_v30, %v3923_v5 }
 0x180   : > { %v1004_v45 = vadd.f32 %v972_v41, %v782_v61  ;;  %v847_v36 = vpop.permute.xlu1 %846  ;;  %v843_v26 = vpop.permute.xlu0 %842  ;;  %v736_v61 = vcombine.high %v4117_v50, %v4117_v50  ;;  %v689_v28 = vcombine.high %v3950_v12, %v3950_v12 }
 0x181   : > { %1104 = vst.msk [vmem:[%s4078_s16 + $0x18] sm:$0xff] %vm1100_vm2, %v1071_v42  ;;  %1102 = vst.msk [vmem:[%s4078_s16 + $0x8] sm:$0xff] %vm1100_vm2, %v1069_v47  ;;  %v1041_v16 = vadd.f32 %v4123_v62, %v1005_v1  ;;  %v975_v24 = vmul.f32 %v4114_v46, %v847_v36  ;;  %v974_v38 = vmul.f32 %v4114_v46, %v843_v26 }
 0x182   : > { %v1040_v10 = vadd.f32 %v4123_v62, %v1004_v45 }
 0x183   : > { %v1073_v32 = vmul.f32 %v1041_v16, %v4020_v51  ;;  %v1007_v41 = vadd.f32 %v975_v24, %v785_v0  ;;  %v1006_v42 = vadd.f32 %v974_v38, %v784_v9  ;;  %v789_v16 = vadd.f32 %v749_v30, %v3938_v8 }
 0x184   : > { %v1072_v39 = vmul.f32 %v1040_v10, %v4018_v49  ;;  %v858_v47 = vpop.permute.xlu1 %857  ;;  %v854_v1 = vpop.permute.xlu0 %853  ;;  %v788_v0 = vadd.f32 %v749_v30, %v3929_v7  ;;  %v753_v9 = vrot.slane %v736_v61, %v3917_v4  ;;  %v703_v10 = vrot.slane %v689_v28, %v4104_v60 }
 0x185   : > { %1106 = vst.msk [vmem:[%s4078_s16 + $0x28] sm:$0xff] %vm1100_vm2, %v1073_v32  ;;  %v1043_v45 = vadd.f32 %v4123_v62, %v1007_v41  ;;  %v1042_v50 = vadd.f32 %v4123_v62, %v1006_v42  ;;  %v977_v36 = vmul.f32 %v4114_v46, %v858_v47  ;;  %v976_v26 = vmul.f32 %v4114_v46, %v854_v1 }
 0x186   : > { %1105 = vst.msk [vmem:[%s4078_s16 + $0x20] sm:$0xff] %vm1100_vm2, %v1072_v39  ;;  %v791_v1 = vadd.f32 %v753_v9, %v3926_v6 }
 0x187   : > { %v1075_v24 = vmul.f32 %v1043_v45, %v4024_v53  ;;  %v1074_v38 = vmul.f32 %v1042_v50, %v4022_v52  ;;  %v1009_v32 = vadd.f32 %v977_v36, %v787_v40  ;;  %v1008_v39 = vadd.f32 %v976_v26, %v786_v58 }
 0x188   : > { %v866_v41 = vpop.permute.xlu1 %865  ;;  %v862_v42 = vpop.permute.xlu0 %861  ;;  %v790_v40 = vadd.f32 %v753_v9, %v3923_v5  ;;  %v4192_v58 = vrot.slane %v703_v10, %v4104_v60 }
 0x189   : > { %1108 = vst.msk [vmem:[%s4078_s16 + $0x38] sm:$0xff] %vm1100_vm2, %v1075_v24  ;;  %1107 = vst.msk [vmem:[%s4078_s16 + $0x30] sm:$0xff] %vm1100_vm2, %v1074_v38  ;;  %v1045_v30 = vadd.f32 %v4123_v62, %v1009_v32  ;;  %v1044_v61 = vadd.f32 %v4123_v62, %v1008_v39  ;;  %v979_v28 = vmul.f32 %v4114_v46, %v866_v41 }
 0x18a   : > { %v978_v47 = vmul.f32 %v4114_v46, %v862_v42 }
 0x18b   : > { %v1077_v45 = vmul.f32 %v1045_v30, %v4028_v55  ;;  %v1076_v50 = vmul.f32 %v1044_v61, %v4026_v54  ;;  %v1011_v36 = vadd.f32 %v979_v28, %v789_v16  ;;  %v793_v30 = vadd.f32 %v753_v9, %v3938_v8 }
 0x18c   : > { %v1010_v26 = vadd.f32 %v978_v47, %v788_v0  ;;  %v877_v24 = vpop.permute.xlu1 %876  ;;  %v873_v38 = vpop.permute.xlu0 %872  ;;  %v792_v16 = vadd.f32 %v753_v9, %v3929_v7  ;;  %v757_v0 = vrot.slane %v4192_v58, %v3917_v4  ;;  %v705_v61 = vcombine.high %v703_v10, %v703_v10 }
 0x18d   : > { %1110 = vst.msk [vmem:[%s4078_s16 + $0x48] sm:$0xff] %vm1100_vm2, %v1077_v45  ;;  %1109 = vst.msk [vmem:[%s4078_s16 + $0x40] sm:$0xff] %vm1100_vm2, %v1076_v50  ;;  %v1047_v32 = vadd.f32 %v4123_v62, %v1011_v36  ;;  %v981_v41 = vmul.f32 %v4114_v46, %v877_v24  ;;  %v980_v42 = vmul.f32 %v4114_v46, %v873_v38 }
 0x18e   : > { %v1046_v39 = vadd.f32 %v4123_v62, %v1010_v26 }
 0x18f   : > { %v1079_v28 = vmul.f32 %v1047_v32, %v4032_v57  ;;  %v1013_v45 = vadd.f32 %v981_v41, %v791_v1  ;;  %v1012_v50 = vadd.f32 %v980_v42, %v790_v40  ;;  %v795_v32 = vadd.f32 %v757_v0, %v3926_v6 }
 0x190   : > { %v1078_v47 = vmul.f32 %v1046_v39, %v4030_v56  ;;  %v885_v36 = vpop.permute.xlu1 %884  ;;  %v881_v26 = vpop.permute.xlu0 %880  ;;  %v794_v1 = vadd.f32 %v757_v0, %v3923_v5  ;;  %v4221_v40 = vrot.slane %v705_v61, %v4104_v60 }
 0x191   : > { %1112 = vst.msk [vmem:[%s4078_s16 + $0x58] sm:$0xff] %vm1100_vm2, %v1079_v28  ;;  %v1049_v9 = vadd.f32 %v4123_v62, %v1013_v45  ;;  %v1048_v24 = vadd.f32 %v4123_v62, %v1012_v50  ;;  %v983_v10 = vmul.f32 %v4114_v46, %v885_v36  ;;  %v982_v38 = vmul.f32 %v4114_v46, %v881_v26 }
 0x192   : > { %1111 = vst.msk [vmem:[%s4078_s16 + $0x50] sm:$0xff] %vm1100_vm2, %v1078_v47  ;;  %v797_v26 = vadd.f32 %v757_v0, %v3938_v8 }
 0x193   : > { %v1081_v39 = vmul.f32 %v1049_v9, %v4036_v63  ;;  %v1080_v41 = vmul.f32 %v1048_v24, %v4034_v59  ;;  %v1015_v42 = vadd.f32 %v983_v10, %v793_v30  ;;  %v1014_v28 = vadd.f32 %v982_v38, %v792_v16 }
 0x194   : > { %v896_v47 = vpop.permute.xlu1 %895  ;;  %v892_v45 = vpop.permute.xlu0 %891  ;;  %v796_v30 = vadd.f32 %v757_v0, %v3929_v7  ;;  %v761_v16 = vrot.slane %v4221_v40, %v3917_v4 }
 0x195   : > { %1114 = vst.msk [vmem:[%s4078_s16 + $0x68] sm:$0xff] %vm1100_vm2, %v1081_v39  ;;  %1113 = vst.msk [vmem:[%s4078_s16 + $0x60] sm:$0xff] %vm1100_vm2, %v1080_v41  ;;  %v1051_v50 = vadd.f32 %v4123_v62, %v1015_v42  ;;  %v1050_v36 = vadd.f32 %v4123_v62, %v1014_v28  ;;  %v985_v60 = vmul.f32 %v4114_v46, %v896_v47 }
 0x196   : > { %v984_v61 = vmul.f32 %v4114_v46, %v892_v45  ;;  %v799_v45 = vadd.f32 %v761_v16, %v3926_v6 }
 0x197   : > { %v1083_v9 = vmul.f32 %v1051_v50, %v4042_v11  ;;  %v1082_v24 = vmul.f32 %v1050_v36, %v4040_v2  ;;  %v1017_v10 = vadd.f32 %v985_v60, %v795_v32  ;;  %v798_v32 = vadd.f32 %v761_v16, %v3923_v5 }
 0x198   : > { %v1016_v38 = vadd.f32 %v984_v61, %v794_v1  ;;  %v904_v39 = vpop.permute.xlu1 %903  ;;  %v900_v41 = vpop.permute.xlu0 %899  ;;  %v735_v1 = vcombine.high %v4192_v58, %v4192_v58 }
 0x199   : > { %1116 = vst.msk [vmem:[%s4078_s16 + $0x78] sm:$0xff] %vm1100_vm2, %v1083_v9  ;;  %1115 = vst.msk [vmem:[%s4078_s16 + $0x70] sm:$0xff] %vm1100_vm2, %v1082_v24  ;;  %v1053_v42 = vadd.f32 %v4123_v62, %v1017_v10  ;;  %v987_v28 = vmul.f32 %v4114_v46, %v904_v39  ;;  %v986_v47 = vmul.f32 %v4114_v46, %v900_v41 }
 0x19a   : > { %v1052_v0 = vadd.f32 %v4123_v62, %v1016_v38  ;;  %v801_v41 = vadd.f32 %v761_v16, %v3938_v8 }
 0x19b   : > { %v1085_v50 = vmul.f32 %v1053_v42, %v4046_v14  ;;  %v1019_v60 = vadd.f32 %v987_v28, %v797_v26  ;;  %v1018_v61 = vadd.f32 %v986_v47, %v796_v30  ;;  %v800_v26 = vadd.f32 %v761_v16, %v3929_v7 }
 0x19c   : > { %v1084_v36 = vmul.f32 %v1052_v0, %v4044_v13  ;;  %v915_v9 = vpop.permute.xlu1 %914  ;;  %v911_v24 = vpop.permute.xlu0 %910  ;;  %v765_v30 = vrot.slane %v735_v1, %v3917_v4 }
 0x19d   : > { %1118 = vst.msk [vmem:[%s4078_s16 + $0x88] sm:$0xff] %vm1100_vm2, %v1085_v50  ;;  %v1055_v10 = vadd.f32 %v4123_v62, %v1019_v60  ;;  %v1054_v38 = vadd.f32 %v4123_v62, %v1018_v61  ;;  %v989_v58 = vmul.f32 %v4114_v46, %v915_v9  ;;  %v988_v39 = vmul.f32 %v4114_v46, %v911_v24 }
 0x19e   : > { %1117 = vst.msk [vmem:[%s4078_s16 + $0x80] sm:$0xff] %vm1100_vm2, %v1084_v36  ;;  %v803_v9 = vadd.f32 %v765_v30, %v3926_v6 }
 0x19f   : > { %v1087_v42 = vmul.f32 %v1055_v10, %v4050_v18  ;;  %v1086_v0 = vmul.f32 %v1054_v38, %v4048_v17  ;;  %v1021_v28 = vadd.f32 %v989_v58, %v799_v45  ;;  %v1020_v47 = vadd.f32 %v988_v39, %v798_v32 }
 0x1a0   : > { %v923_v50 = vpop.permute.xlu1 %922  ;;  %v919_v36 = vpop.permute.xlu0 %918  ;;  %v802_v45 = vadd.f32 %v765_v30, %v3923_v5  ;;  %v737_v32 = vcombine.high %v4221_v40, %v4221_v40 }
 0x1a1   : > { %1120 = vst.msk [vmem:[%s4078_s16 + $0x98] sm:$0xff] %vm1100_vm2, %v1087_v42  ;;  %1119 = vst.msk [vmem:[%s4078_s16 + $0x90] sm:$0xff] %vm1100_vm2, %v1086_v0  ;;  %v1057_v60 = vadd.f32 %v4123_v62, %v1021_v28  ;;  %v1056_v16 = vadd.f32 %v4123_v62, %v1020_v47  ;;  %v991_v1 = vmul.f32 %v4114_v46, %v923_v50 }
 0x1a2   : > { %v990_v61 = vmul.f32 %v4114_v46, %v919_v36  ;;  %v805_v50 = vadd.f32 %v765_v30, %v3938_v8 }
 0x1a3   : > { %v1089_v24 = vmul.f32 %v1057_v60, %v4054_v20  ;;  %v1088_v10 = vmul.f32 %v1056_v16, %v4052_v19  ;;  %v1023_v38 = vadd.f32 %v991_v1, %v801_v41  ;;  %v804_v41 = vadd.f32 %v765_v30, %v3929_v7 }
 0x1a4   : > { %v1022_v58 = vadd.f32 %v990_v61, %v800_v26  ;;  %v934_v39 = vpop.permute.xlu1 %933  ;;  %v930_v42 = vpop.permute.xlu0 %929  ;;  %v769_v26 = vrot.slane %v737_v32, %v3917_v4 }
 0x1a5   : > { %1122 = vst.msk [vmem:[%s4078_s16 + $0xa8] sm:$0xff] %vm1100_vm2, %v1089_v24  ;;  %1121 = vst.msk [vmem:[%s4078_s16 + $0xa0] sm:$0xff] %vm1100_vm2, %v1088_v10  ;;  %v1059_v0 = vadd.f32 %v4123_v62, %v1023_v38  ;;  %v993_v40 = vmul.f32 %v4114_v46, %v934_v39  ;;  %v992_v47 = vmul.f32 %v4114_v46, %v930_v42 }
 0x1a6   : > { %v1058_v28 = vadd.f32 %v4123_v62, %v1022_v58  ;;  %v807_v58 = vadd.f32 %v769_v26, %v3926_v6 }
 0x1a7   : > { %v1091_v36 = vmul.f32 %v1059_v0, %v4058_v22  ;;  %v1025_v16 = vadd.f32 %v993_v40, %v803_v9  ;;  %v1024_v1 = vadd.f32 %v992_v47, %v802_v45  ;;  %v806_v9 = vadd.f32 %v769_v26, %v3923_v5 }
 0x1a8   : > { %v1090_v60 = vmul.f32 %v1058_v28, %v4056_v21  ;;  %v942_v61 = vpop.permute.xlu1 %941  ;;  %v938_v24 = vpop.permute.xlu0 %937 }
 0x1a9   : > { %1124 = vst.msk [vmem:[%s4078_s16 + $0xb8] sm:$0xff] %vm1100_vm2, %v1091_v36  ;;  %v1061_v10 = vadd.f32 %v4123_v62, %v1025_v16  ;;  %v1060_v30 = vadd.f32 %v4123_v62, %v1024_v1  ;;  %v995_v32 = vmul.f32 %v4114_v46, %v942_v61  ;;  %v994_v38 = vmul.f32 %v4114_v46, %v938_v24 }
 0x1aa   : > { %1123 = vst.msk [vmem:[%s4078_s16 + $0xb0] sm:$0xff] %vm1100_vm2, %v1090_v60  ;;  %v809_v1 = vadd.f32 %v769_v26, %v3938_v8 }
 0x1ab   : > { %v1093_v45 = vmul.f32 %v1061_v10, %v4062_v25  ;;  %v1092_v39 = vmul.f32 %v1060_v30, %v4060_v23  ;;  %v1027_v42 = vadd.f32 %v995_v32, %v805_v50  ;;  %v1026_v0 = vadd.f32 %v994_v38, %v804_v41 }
 0x1ac   : > { %v953_v28 = vpop.permute.xlu1 %952  ;;  %v949_v40 = vpop.permute.xlu0 %948  ;;  %v808_v50 = vadd.f32 %v769_v26, %v3929_v7 }
 0x1ad   : > { %1126 = vst.msk [vmem:[%s4078_s16 + $0xc8] sm:$0xff] %vm1100_vm2, %v1093_v45  ;;  %1125 = vst.msk [vmem:[%s4078_s16 + $0xc0] sm:$0xff] %vm1100_vm2, %v1092_v39  ;;  %v1063_v47 = vadd.f32 %v4123_v62, %v1027_v42  ;;  %v1062_v36 = vadd.f32 %v4123_v62, %v1026_v0  ;;  %v997_v60 = vmul.f32 %v4114_v46, %v953_v28 }
 0x1ae   : > { %v996_v16 = vmul.f32 %v4114_v46, %v949_v40 }
 0x1af   : > { %v1095_v41 = vmul.f32 %v1063_v47, %v4066_v29  ;;  %v1094_v61 = vmul.f32 %v1062_v36, %v4064_v27  ;;  %v1029_v24 = vadd.f32 %v997_v60, %v807_v58 }
 0x1b0   : > { %v1028_v10 = vadd.f32 %v996_v16, %v806_v9  ;;  %v961_v30 = vpop.permute.xlu1 %960  ;;  %v957_v32 = vpop.permute.xlu0 %956 }
 0x1b1   : > { %1128 = vst.msk [vmem:[%s4078_s16 + $0xd8] sm:$0xff] %vm1100_vm2, %v1095_v41  ;;  %1127 = vst.msk [vmem:[%s4078_s16 + $0xd0] sm:$0xff] %vm1100_vm2, %v1094_v61  ;;  %v1065_v38 = vadd.f32 %v4123_v62, %v1029_v24  ;;  %v999_v45 = vmul.f32 %v4114_v46, %v961_v30  ;;  %v998_v39 = vmul.f32 %v4114_v46, %v957_v32 }
 0x1b2   : > { %v1064_v26 = vadd.f32 %v4123_v62, %v1028_v10 }
 0x1b3   : > { %v1097_v42 = vmul.f32 %v1065_v38, %v4070_v33  ;;  %v1031_v9 = vadd.f32 %v999_v45, %v809_v1  ;;  %v1030_v0 = vadd.f32 %v998_v39, %v808_v50 }
 0x1b4   : > { %v1096_v58 = vmul.f32 %v1064_v26, %v4068_v31 }
 0x1b5   : > { %1130 = vst.msk [vmem:[%s4078_s16 + $0xe8] sm:$0xff] %vm1100_vm2, %v1097_v42  ;;  %v1067_v28 = vadd.f32 %v4123_v62, %v1031_v9  ;;  %v1066_v40 = vadd.f32 %v4123_v62, %v1030_v0 }
 0x1b6   : > { %1129 = vst.msk [vmem:[%s4078_s16 + $0xe0] sm:$0xff] %vm1100_vm2, %v1096_v58 }
 0x1b7   : > { %v1099_v47 = vmul.f32 %v1067_v28, %v4074_v35  ;;  %v1098_v36 = vmul.f32 %v1066_v40, %v4072_v34 }
 0x1b9   : > { %1132 = vst.msk [vmem:[%s4078_s16 + $0xf8] sm:$0xff] %vm1100_vm2, %v1099_v47  ;;  %1131 = vst.msk [vmem:[%s4078_s16 + $0xf0] sm:$0xff] %vm1100_vm2, %v1098_v36 }
 0x1ba PF: > { %1135 = sbr.rel (%p673_p13) target bundleno = 1095 (0x447), region = 64 }
 0x1bf   : > { %v1138_v46 = vstv %s3990_s3  ;;  %v6061_v60 = vlaneseq  ;;  %v5937_v24 = vmov 0.0   ;;  %v6062_v38 = vld [vmem:[#allocation25_spill] sm:$0xff]  ;;  %v6063_v45 = vld [vmem:[#allocation26_spill] sm:$0xff]  ;;  %v6064_v42 = vld [vmem:[#allocation27_spill] sm:$0xff]  ;;  %v6068_v54 = vmov 0.0  }
 0x1c0   : > { %v1139_v62 = vadd.s32 %v1138_v46, %v3913_v3  ;;  %v6065_v9 = vld [vmem:[#allocation28_spill] sm:$0xff]  ;;  %v6066_v28 = vld [vmem:[#allocation29_spill] sm:$0xff]  ;;  %v6067_v47 = vld [vmem:[#allocation30_spill] sm:$0xff]  ;;  %vm3119_vm12 = vcmask 261120  }
 0x1c1   : > { %v1141_v16 = vand.u32 127, %v6061_v60 }
 0x1c3   : > { %v1144_v1 = vsub.s32 %v1139_v62, %v1141_v16 }
 0x1c5   : > { %v1145_v50 = vadd.s32 3, %v1144_v1 }
 0x1c7   : > { %vm1146_vm3 = vcmp.gt.s32.totalorder %v1145_v50, 0 }
 0x1c8   : > { %v1147_v41 = vsel %vm1146_vm3, %v1145_v50, 0 }
 0x1c9   : > { %vm1148_vm4 = vcmp.lt.s32.totalorder %v1147_v41, 6 }
 0x1ca   : > { %v4347_v61 = vsel %vm1148_vm4, %v1147_v41, 6 }
 0x1cb   : > { %vm1150_vm5 = vcmp.eq.s32.totalorder %v4347_v61, 0  ;;  %vm1373_vm6 = vcmp.eq.s32.totalorder %v4347_v61, 1  ;;  %vm1596_vm7 = vcmp.eq.s32.totalorder %v4347_v61, 2  ;;  %vm1819_vm8 = vcmp.eq.s32.totalorder %v4347_v61, 3 }
 0x1cc   : > { %v3364_v10 = vsel %vm1150_vm5, 1.0, %v5937_v24  ;;  %v3365_v46 = vsel %vm1373_vm6, 1.0, %v5937_v24  ;;  %v4463_v55 = vsel %vm1819_vm8, 1.0, %v6068_v54  ;;  %vm2042_vm9 = vcmp.eq.s32.totalorder %v4347_v61, 4 }
 0x1cd   : > { %v1156_v30 = vrot.slane %v3364_v10, %v3917_v4  ;;  %v1175_v32 = vrot.slane %v3364_v10, %v3954_v15  ;;  %v1194_v26 = vrot.slane %v3364_v10, %v6062_v38  ;;  %v1213_v39 = vrot.slane %v3364_v10, %v6063_v45 }
 0x1ce   : > { %v1232_v58 = vrot.slane %v3364_v10, %v6064_v42  ;;  %v1251_v0 = vrot.slane %v3364_v10, %v6065_v9  ;;  %v1270_v40 = vrot.slane %v3364_v10, %v6066_v28  ;;  %v1289_v36 = vrot.slane %v3364_v10, %v6067_v47 }
 0x1cf   : > { %1166 = vbcast.lane.b32.xlu1 %v1156_v30, 272  ;;  %1158 = vbcast.lane.b32.xlu0 %v1156_v30, 256  ;;  %v1379_v60 = vrot.slane %v3365_v46, %v3917_v4  ;;  %v1398_v16 = vrot.slane %v3365_v46, %v3954_v15  ;;  %v1417_v62 = vrot.slane %v3365_v46, %v6062_v38  ;;  %vm2265_vm10 = vcmp.eq.s32.totalorder %v4347_v61, 5 }
 0x1d0   : > { %v1436_v1 = vrot.slane %v3365_v46, %v6063_v45  ;;  %v1455_v50 = vrot.slane %v3365_v46, %v6064_v42  ;;  %v1474_v41 = vrot.slane %v3365_v46, %v6065_v9  ;;  %v1493_v10 = vrot.slane %v3365_v46, %v6066_v28 }
 0x1d1   : > { %v1844_v48 = vrot.slane %v4463_v55, %v3954_v15  ;;  %v1863_v8 = vrot.slane %v4463_v55, %v6062_v38  ;;  %v1882_v3 = vrot.slane %v4463_v55, %v6063_v45  ;;  %vm2488_vm11 = vcmp.eq.s32.totalorder %v4347_v61, 6 }
 0x1d3   : > { %1170 = vbcast.lane.b32.xlu1 %v1156_v30, 280  ;;  %1162 = vbcast.lane.b32.xlu0 %v1156_v30, 264 }
 0x1d7   : > { %1181 = vbcast.lane.b32.xlu1 %v1175_v32, 264  ;;  %1177 = vbcast.lane.b32.xlu0 %v1175_v32, 256 }
 0x1db   : > { %1189 = vbcast.lane.b32.xlu1 %v1175_v32, 280  ;;  %1185 = vbcast.lane.b32.xlu0 %v1175_v32, 272 }
 0x1df   : > { %1200 = vbcast.lane.b32.xlu1 %v1194_v26, 264  ;;  %1196 = vbcast.lane.b32.xlu0 %v1194_v26, 256 }
 0x1e3   : > { %1208 = vbcast.lane.b32.xlu1 %v1194_v26, 280  ;;  %1204 = vbcast.lane.b32.xlu0 %v1194_v26, 272  ;;  %v1512_v26 = vrot.slane %v3365_v46, %v6067_v47 }
 0x1e7   : > { %1219 = vbcast.lane.b32.xlu1 %v1213_v39, 264  ;;  %1215 = vbcast.lane.b32.xlu0 %v1213_v39, 256 }
 0x1eb   : > { %1227 = vbcast.lane.b32.xlu1 %v1213_v39, 280  ;;  %1223 = vbcast.lane.b32.xlu0 %v1213_v39, 272 }
 0x1ef   : > { %1238 = vbcast.lane.b32.xlu1 %v1232_v58, 264  ;;  %1234 = vbcast.lane.b32.xlu0 %v1232_v58, 256 }
 0x1f3   : > { %1246 = vbcast.lane.b32.xlu1 %v1232_v58, 280  ;;  %1242 = vbcast.lane.b32.xlu0 %v1232_v58, 272 }
 0x1f7   : > { %1257 = vbcast.lane.b32.xlu1 %v1251_v0, 264  ;;  %1253 = vbcast.lane.b32.xlu0 %v1251_v0, 256 }
 0x1fb   : > { %1265 = vbcast.lane.b32.xlu1 %v1251_v0, 280  ;;  %1261 = vbcast.lane.b32.xlu0 %v1251_v0, 272  ;;  %v4379_v0 = vsel %vm1596_vm7, 1.0, %v5937_v24 }
 0x1fc   : > { %v1602_v46 = vrot.slane %v4379_v0, %v3917_v4  ;;  %v1640_v34 = vrot.slane %v4379_v0, %v6062_v38  ;;  %v1659_v27 = vrot.slane %v4379_v0, %v6063_v45  ;;  %v1678_v21 = vrot.slane %v4379_v0, %v6064_v42 }
 0x1fd   : > { %v1697_v17 = vrot.slane %v4379_v0, %v6065_v9  ;;  %v1716_v2 = vrot.slane %v4379_v0, %v6066_v28  ;;  %v1735_v56 = vrot.slane %v4379_v0, %v6067_v47 }
 0x1ff   : > { %1276 = vbcast.lane.b32.xlu1 %v1270_v40, 264  ;;  %1272 = vbcast.lane.b32.xlu0 %v1270_v40, 256 }
 0x203   : > { %1284 = vbcast.lane.b32.xlu1 %v1270_v40, 280  ;;  %1280 = vbcast.lane.b32.xlu0 %v1270_v40, 272 }
 0x207   : > { %1295 = vbcast.lane.b32.xlu1 %v1289_v36, 264  ;;  %1291 = vbcast.lane.b32.xlu0 %v1289_v36, 256 }
 0x20b   : > { %1303 = vbcast.lane.b32.xlu1 %v1289_v36, 280  ;;  %1299 = vbcast.lane.b32.xlu0 %v1289_v36, 272 }
 0x20f   : > { %1385 = vbcast.lane.b32.xlu1 %v1379_v60, 264  ;;  %1381 = vbcast.lane.b32.xlu0 %v1379_v60, 256 }
 0x213   : > { %1393 = vbcast.lane.b32.xlu1 %v1379_v60, 280  ;;  %1389 = vbcast.lane.b32.xlu0 %v1379_v60, 272 }
 0x217   : > { %1404 = vbcast.lane.b32.xlu1 %v1398_v16, 264  ;;  %1400 = vbcast.lane.b32.xlu0 %v1398_v16, 256 }
 0x21b   : > { %1412 = vbcast.lane.b32.xlu1 %v1398_v16, 280  ;;  %1408 = vbcast.lane.b32.xlu0 %v1398_v16, 272 }
 0x21f   : > { %1423 = vbcast.lane.b32.xlu1 %v1417_v62, 264  ;;  %1419 = vbcast.lane.b32.xlu0 %v1417_v62, 256 }
 0x223   : > { %1431 = vbcast.lane.b32.xlu1 %v1417_v62, 280  ;;  %1427 = vbcast.lane.b32.xlu0 %v1417_v62, 272 }
 0x227   : > { %1442 = vbcast.lane.b32.xlu1 %v1436_v1, 264  ;;  %1438 = vbcast.lane.b32.xlu0 %v1436_v1, 256 }
 0x22b   : > { %1450 = vbcast.lane.b32.xlu1 %v1436_v1, 280  ;;  %1446 = vbcast.lane.b32.xlu0 %v1436_v1, 272 }
 0x22f   : > { %1461 = vbcast.lane.b32.xlu1 %v1455_v50, 264  ;;  %1457 = vbcast.lane.b32.xlu0 %v1455_v50, 256 }
 0x233   : > { %1469 = vbcast.lane.b32.xlu1 %v1455_v50, 280  ;;  %1465 = vbcast.lane.b32.xlu0 %v1455_v50, 272  ;;  %v1621_v50 = vrot.slane %v4379_v0, %v3954_v15 }
 0x237   : > { %1480 = vbcast.lane.b32.xlu1 %v1474_v41, 264  ;;  %1476 = vbcast.lane.b32.xlu0 %v1474_v41, 256 }
 0x23b   : > { %1488 = vbcast.lane.b32.xlu1 %v1474_v41, 280  ;;  %1484 = vbcast.lane.b32.xlu0 %v1474_v41, 272 }
 0x23f   : > { %1499 = vbcast.lane.b32.xlu1 %v1493_v10, 264  ;;  %1495 = vbcast.lane.b32.xlu0 %v1493_v10, 256 }
 0x241   : > { %v4368_v30 = vpop.permute.xlu1 %1166  ;;  %v4370_v32 = vpop.permute.xlu0 %1158 }
 0x243   : > { %1507 = vbcast.lane.b32.xlu1 %v1493_v10, 280  ;;  %1503 = vbcast.lane.b32.xlu0 %v1493_v10, 272 }
 0x245   : > { %v4373_v39 = vpop.permute.xlu1 %1170  ;;  %v4375_v58 = vpop.permute.xlu0 %1162 }
 0x247   : > { %1518 = vbcast.lane.b32.xlu1 %v1512_v26, 264  ;;  %1514 = vbcast.lane.b32.xlu0 %v1512_v26, 256 }
 0x249   : > { %v4381_v40 = vpop.permute.xlu1 %1181  ;;  %v4383_v36 = vpop.permute.xlu0 %1177 }
 0x24b   : > { %1526 = vbcast.lane.b32.xlu1 %v1512_v26, 280  ;;  %1522 = vbcast.lane.b32.xlu0 %v1512_v26, 272 }
 0x24d   : > { %v4387_v60 = vpop.permute.xlu1 %1189  ;;  %v4389_v16 = vpop.permute.xlu0 %1185 }
 0x24f   : > { %1608 = vbcast.lane.b32.xlu1 %v1602_v46, 264  ;;  %1604 = vbcast.lane.b32.xlu0 %v1602_v46, 256 }
 0x251   : > { %v4391_v62 = vpop.permute.xlu1 %1200  ;;  %v4393_v1 = vpop.permute.xlu0 %1196 }
 0x253   : > { %1616 = vbcast.lane.b32.xlu1 %v1602_v46, 280  ;;  %1612 = vbcast.lane.b32.xlu0 %v1602_v46, 272 }
 0x255   : > { %v4397_v41 = vpop.permute.xlu1 %1208  ;;  %v4399_v10 = vpop.permute.xlu0 %1204 }
 0x257   : > { %1627 = vbcast.lane.b32.xlu1 %v1621_v50, 264  ;;  %1623 = vbcast.lane.b32.xlu0 %v1621_v50, 256 }
 0x259   : > { %v4401_v26 = vpop.permute.xlu1 %1219  ;;  %v4403_v24 = vpop.permute.xlu0 %1215 }
 0x25b   : > { %1635 = vbcast.lane.b32.xlu1 %v1621_v50, 280  ;;  %1631 = vbcast.lane.b32.xlu0 %v1621_v50, 272 }
 0x25d   : > { %v4407_v35 = vpop.permute.xlu1 %1227  ;;  %v4409_v46 = vpop.permute.xlu0 %1223 }
 0x25f   : > { %1646 = vbcast.lane.b32.xlu1 %v1640_v34, 264  ;;  %1642 = vbcast.lane.b32.xlu0 %v1640_v34, 256 }
 0x261   : > { %v4411_v31 = vpop.permute.xlu1 %1238  ;;  %v4413_v33 = vpop.permute.xlu0 %1234 }
 0x263   : > { %1654 = vbcast.lane.b32.xlu1 %v1640_v34, 280  ;;  %1650 = vbcast.lane.b32.xlu0 %v1640_v34, 272 }
 0x265   : > { %v4417_v29 = vpop.permute.xlu1 %1246  ;;  %v4419_v50 = vpop.permute.xlu0 %1242 }
 0x267   : > { %1665 = vbcast.lane.b32.xlu1 %v1659_v27, 264  ;;  %1661 = vbcast.lane.b32.xlu0 %v1659_v27, 256 }
 0x269   : > { %v4421_v23 = vpop.permute.xlu1 %1257  ;;  %v4423_v25 = vpop.permute.xlu0 %1253 }
 0x26b   : > { %1673 = vbcast.lane.b32.xlu1 %v1659_v27, 280  ;;  %1669 = vbcast.lane.b32.xlu0 %v1659_v27, 272 }
 0x26d   : > { %v4427_v22 = vpop.permute.xlu1 %1265  ;;  %v4429_v34 = vpop.permute.xlu0 %1261 }
 0x26f   : > { %1684 = vbcast.lane.b32.xlu1 %v1678_v21, 264  ;;  %1680 = vbcast.lane.b32.xlu0 %v1678_v21, 256 }
 0x271   : > { %v4431_v19 = vpop.permute.xlu1 %1276  ;;  %v4433_v20 = vpop.permute.xlu0 %1272 }
 0x273   : > { %1692 = vbcast.lane.b32.xlu1 %v1678_v21, 280  ;;  %1688 = vbcast.lane.b32.xlu0 %v1678_v21, 272 }
 0x275   : > { %v4437_v18 = vpop.permute.xlu1 %1284  ;;  %v4439_v27 = vpop.permute.xlu0 %1280 }
 0x277   : > { %1703 = vbcast.lane.b32.xlu1 %v1697_v17, 264  ;;  %1699 = vbcast.lane.b32.xlu0 %v1697_v17, 256 }
 0x279   : > { %v4441_v13 = vpop.permute.xlu1 %1295  ;;  %v4443_v14 = vpop.permute.xlu0 %1291 }
 0x27b   : > { %1711 = vbcast.lane.b32.xlu1 %v1697_v17, 280  ;;  %1707 = vbcast.lane.b32.xlu0 %v1697_v17, 272 }
 0x27d   : > { %v4447_v11 = vpop.permute.xlu1 %1303  ;;  %v4449_v21 = vpop.permute.xlu0 %1299 }
 0x27f   : > { %1722 = vbcast.lane.b32.xlu1 %v1716_v2, 264  ;;  %1718 = vbcast.lane.b32.xlu0 %v1716_v2, 256 }
 0x281   : > { %v4451_v59 = vpop.permute.xlu1 %1385  ;;  %v4453_v63 = vpop.permute.xlu0 %1381 }
 0x283   : > { %1730 = vbcast.lane.b32.xlu1 %v1716_v2, 280  ;;  %1726 = vbcast.lane.b32.xlu0 %v1716_v2, 272  ;;  %v1825_v2 = vrot.slane %v4463_v55, %v3917_v4 }
 0x285   : > { %v4457_v57 = vpop.permute.xlu1 %1393  ;;  %v4459_v17 = vpop.permute.xlu0 %1389 }
 0x287   : > { %1741 = vbcast.lane.b32.xlu1 %v1735_v56, 264  ;;  %1737 = vbcast.lane.b32.xlu0 %v1735_v56, 256 }
 0x289   : > { %v4465_v52 = vpop.permute.xlu1 %1404  ;;  %v4467_v53 = vpop.permute.xlu0 %1400 }
 0x28b   : > { %1749 = vbcast.lane.b32.xlu1 %v1735_v56, 280  ;;  %1745 = vbcast.lane.b32.xlu0 %v1735_v56, 272 }
 0x28d   : > { %v4471_v0 = vpop.permute.xlu1 %1412  ;;  %v4473_v49 = vpop.permute.xlu0 %1408 }
 0x28f   : > { %1831 = vbcast.lane.b32.xlu1 %v1825_v2, 264  ;;  %1827 = vbcast.lane.b32.xlu0 %v1825_v2, 256 }
 0x291   : > { %v4475_v51 = vpop.permute.xlu1 %1423  ;;  %v4477_v44 = vpop.permute.xlu0 %1419 }
 0x293   : > { %1839 = vbcast.lane.b32.xlu1 %v1825_v2, 280  ;;  %1835 = vbcast.lane.b32.xlu0 %v1825_v2, 272 }
 0x295   : > { %v4481_v37 = vpop.permute.xlu1 %1431  ;;  %v4483_v56 = vpop.permute.xlu0 %1427 }
 0x297   : > { %1850 = vbcast.lane.b32.xlu1 %v1844_v48, 264  ;;  %1846 = vbcast.lane.b32.xlu0 %v1844_v48, 256 }
 0x299   : > { %v4485_v43 = vpop.permute.xlu1 %1442  ;;  %v4487_v7 = vpop.permute.xlu0 %1438 }
 0x29a   : > { %6069 = vst [vmem:[#allocation64_spill] sm:$0xff] %v4487_v7 }
 0x29b   : > { %1858 = vbcast.lane.b32.xlu1 %v1844_v48, 280  ;;  %1854 = vbcast.lane.b32.xlu0 %v1844_v48, 272 }
 0x29d   : > { %v4491_v5 = vpop.permute.xlu1 %1450  ;;  %v4493_v2 = vpop.permute.xlu0 %1446 }
 0x29e   : > { %6070 = vst [vmem:[#allocation65_spill] sm:$0xff] %v4491_v5  ;;  %6071 = vst [vmem:[#allocation66_spill] sm:$0xff] %v4493_v2 }
 0x29f   : > { %1869 = vbcast.lane.b32.xlu1 %v1863_v8, 264  ;;  %1865 = vbcast.lane.b32.xlu0 %v1863_v8, 256 }
 0x2a1   : > { %v4495_v6 = vpop.permute.xlu1 %1461  ;;  %v4497_v12 = vpop.permute.xlu0 %1457 }
 0x2a2   : > { %6072 = vst [vmem:[#allocation67_spill] sm:$0xff] %v4495_v6  ;;  %6073 = vst [vmem:[#allocation68_spill] sm:$0xff] %v4497_v12  ;;  %v1901_v12 = vrot.slane %v4463_v55, %v6064_v42 }
 0x2a3   : > { %1877 = vbcast.lane.b32.xlu1 %v1863_v8, 280  ;;  %1873 = vbcast.lane.b32.xlu0 %v1863_v8, 272 }
 0x2a5   : > { %v4501_v7 = vpop.permute.xlu1 %1469  ;;  %v4503_v48 = vpop.permute.xlu0 %1465 }
 0x2a6   : > { %6074 = vst [vmem:[#allocation69_spill] sm:$0xff] %v4501_v7  ;;  %6075 = vst [vmem:[#allocation70_spill] sm:$0xff] %v4503_v48 }
 0x2a7   : > { %1888 = vbcast.lane.b32.xlu1 %v1882_v3, 264  ;;  %1884 = vbcast.lane.b32.xlu0 %v1882_v3, 256 }
 0x2a9   : > { %v4505_v5 = vpop.permute.xlu1 %1480  ;;  %v4507_v2 = vpop.permute.xlu0 %1476 }
 0x2aa   : > { %6076 = vst [vmem:[#allocation71_spill] sm:$0xff] %v4505_v5  ;;  %6077 = vst [vmem:[#allocation72_spill] sm:$0xff] %v4507_v2  ;;  %v1920_v2 = vrot.slane %v4463_v55, %v6065_v9 }
 0x2ab   : > { %1896 = vbcast.lane.b32.xlu1 %v1882_v3, 280  ;;  %1892 = vbcast.lane.b32.xlu0 %v1882_v3, 272 }
 0x2ad   : > { %v4511_v6 = vpop.permute.xlu1 %1488  ;;  %v4513_v8 = vpop.permute.xlu0 %1484 }
 0x2ae   : > { %6078 = vst [vmem:[#allocation73_spill] sm:$0xff] %v4511_v6  ;;  %6079 = vst [vmem:[#allocation74_spill] sm:$0xff] %v4513_v8 }
 0x2af   : > { %1907 = vbcast.lane.b32.xlu1 %v1901_v12, 264  ;;  %1903 = vbcast.lane.b32.xlu0 %v1901_v12, 256 }
 0x2b1   : > { %v4515_v7 = vpop.permute.xlu1 %1499  ;;  %v4517_v48 = vpop.permute.xlu0 %1495 }
 0x2b2   : > { %6080 = vst [vmem:[#allocation75_spill] sm:$0xff] %v4515_v7  ;;  %6081 = vst [vmem:[#allocation76_spill] sm:$0xff] %v4517_v48  ;;  %v1939_v48 = vrot.slane %v4463_v55, %v6066_v28 }
 0x2b3   : > { %1915 = vbcast.lane.b32.xlu1 %v1901_v12, 280  ;;  %1911 = vbcast.lane.b32.xlu0 %v1901_v12, 272 }
 0x2b5   : > { %v4521_v5 = vpop.permute.xlu1 %1507  ;;  %v4523_v3 = vpop.permute.xlu0 %1503 }
 0x2b6   : > { %6082 = vst [vmem:[#allocation77_spill] sm:$0xff] %v4521_v5  ;;  %6083 = vst [vmem:[#allocation78_spill] sm:$0xff] %v4523_v3 }
 0x2b7   : > { %1926 = vbcast.lane.b32.xlu1 %v1920_v2, 264  ;;  %1922 = vbcast.lane.b32.xlu0 %v1920_v2, 256 }
 0x2b9   : > { %v4525_v6 = vpop.permute.xlu1 %1518  ;;  %v4527_v8 = vpop.permute.xlu0 %1514 }
 0x2ba   : > { %6084 = vst [vmem:[#allocation79_spill] sm:$0xff] %v4525_v6  ;;  %6085 = vst [vmem:[#allocation80_spill] sm:$0xff] %v4527_v8  ;;  %v1958_v8 = vrot.slane %v4463_v55, %v6067_v47 }
 0x2bb   : > { %1934 = vbcast.lane.b32.xlu1 %v1920_v2, 280  ;;  %1930 = vbcast.lane.b32.xlu0 %v1920_v2, 272 }
 0x2bd   : > { %v4531_v7 = vpop.permute.xlu1 %1526  ;;  %v4533_v12 = vpop.permute.xlu0 %1522 }
 0x2be   : > { %6086 = vst [vmem:[#allocation81_spill] sm:$0xff] %v4531_v7  ;;  %6087 = vst [vmem:[#allocation82_spill] sm:$0xff] %v4533_v12  ;;  %v4547_v12 = vsel %vm2042_vm9, 1.0, %v6068_v54 }
 0x2bf   : > { %1945 = vbcast.lane.b32.xlu1 %v1939_v48, 264  ;;  %1941 = vbcast.lane.b32.xlu0 %v1939_v48, 256  ;;  %v2048_v55 = vrot.slane %v4547_v12, %v3917_v4 }
 0x2c1   : > { %v4535_v5 = vpop.permute.xlu1 %1608  ;;  %v4537_v3 = vpop.permute.xlu0 %1604 }
 0x2c2   : > { %6088 = vst [vmem:[#allocation83_spill] sm:$0xff] %v4535_v5  ;;  %6089 = vst [vmem:[#allocation84_spill] sm:$0xff] %v4537_v3 }
 0x2c3   : > { %1953 = vbcast.lane.b32.xlu1 %v1939_v48, 280  ;;  %1949 = vbcast.lane.b32.xlu0 %v1939_v48, 272 }
 0x2c5   : > { %v4541_v6 = vpop.permute.xlu1 %1616  ;;  %v4543_v2 = vpop.permute.xlu0 %1612 }
 0x2c6   : > { %6090 = vst [vmem:[#allocation85_spill] sm:$0xff] %v4541_v6  ;;  %6091 = vst [vmem:[#allocation86_spill] sm:$0xff] %v4543_v2 }
 0x2c7   : > { %1964 = vbcast.lane.b32.xlu1 %v1958_v8, 264  ;;  %1960 = vbcast.lane.b32.xlu0 %v1958_v8, 256 }
 0x2c9   : > { %v4549_v7 = vpop.permute.xlu1 %1627  ;;  %v4551_v5 = vpop.permute.xlu0 %1623 }
 0x2ca   : > { %6092 = vst [vmem:[#allocation87_spill] sm:$0xff] %v4549_v7  ;;  %6093 = vst [vmem:[#allocation88_spill] sm:$0xff] %v4551_v5  ;;  %v2067_v5 = vrot.slane %v4547_v12, %v3954_v15 }
 0x2cb   : > { %1972 = vbcast.lane.b32.xlu1 %v1958_v8, 280  ;;  %1968 = vbcast.lane.b32.xlu0 %v1958_v8, 272 }
 0x2cd   : > { %v4555_v48 = vpop.permute.xlu1 %1635  ;;  %v4557_v6 = vpop.permute.xlu0 %1631 }
 0x2ce   : > { %6094 = vst [vmem:[#allocation89_spill] sm:$0xff] %v4555_v48  ;;  %6095 = vst [vmem:[#allocation90_spill] sm:$0xff] %v4557_v6 }
 0x2cf   : > { %2054 = vbcast.lane.b32.xlu1 %v2048_v55, 264  ;;  %2050 = vbcast.lane.b32.xlu0 %v2048_v55, 256 }
 0x2d1   : > { %v4559_v2 = vpop.permute.xlu1 %1646  ;;  %v4561_v3 = vpop.permute.xlu0 %1642 }
 0x2d2   : > { %6096 = vst [vmem:[#allocation91_spill] sm:$0xff] %v4559_v2  ;;  %6097 = vst [vmem:[#allocation92_spill] sm:$0xff] %v4561_v3  ;;  %v2086_v3 = vrot.slane %v4547_v12, %v6062_v38 }
 0x2d3   : > { %2062 = vbcast.lane.b32.xlu1 %v2048_v55, 280  ;;  %2058 = vbcast.lane.b32.xlu0 %v2048_v55, 272 }
 0x2d5   : > { %v4565_v7 = vpop.permute.xlu1 %1654  ;;  %v4567_v8 = vpop.permute.xlu0 %1650 }
 0x2d6   : > { %6098 = vst [vmem:[#allocation93_spill] sm:$0xff] %v4565_v7  ;;  %6099 = vst [vmem:[#allocation94_spill] sm:$0xff] %v4567_v8 }
 0x2d7   : > { %2073 = vbcast.lane.b32.xlu1 %v2067_v5, 264  ;;  %2069 = vbcast.lane.b32.xlu0 %v2067_v5, 256 }
 0x2d9   : > { %v4569_v48 = vpop.permute.xlu1 %1665  ;;  %v4571_v6 = vpop.permute.xlu0 %1661 }
 0x2da   : > { %6100 = vst [vmem:[#allocation95_spill] sm:$0xff] %v4569_v48  ;;  %6101 = vst [vmem:[#allocation96_spill] sm:$0xff] %v4571_v6  ;;  %v2105_v6 = vrot.slane %v4547_v12, %v6063_v45 }
 0x2db   : > { %2081 = vbcast.lane.b32.xlu1 %v2067_v5, 280  ;;  %2077 = vbcast.lane.b32.xlu0 %v2067_v5, 272 }
 0x2dd   : > { %v4575_v2 = vpop.permute.xlu1 %1673  ;;  %v4577_v55 = vpop.permute.xlu0 %1669 }
 0x2de   : > { %6102 = vst [vmem:[#allocation97_spill] sm:$0xff] %v4575_v2  ;;  %6103 = vst [vmem:[#allocation98_spill] sm:$0xff] %v4577_v55 }
 0x2df   : > { %2092 = vbcast.lane.b32.xlu1 %v2086_v3, 264  ;;  %2088 = vbcast.lane.b32.xlu0 %v2086_v3, 256 }
 0x2e1   : > { %v4579_v7 = vpop.permute.xlu1 %1684  ;;  %v4581_v8 = vpop.permute.xlu0 %1680 }
 0x2e2   : > { %6104 = vst [vmem:[#allocation99_spill] sm:$0xff] %v4579_v7  ;;  %6105 = vst [vmem:[#allocation100_spill] sm:$0xff] %v4581_v8  ;;  %v2124_v8 = vrot.slane %v4547_v12, %v6064_v42 }
 0x2e3   : > { %2100 = vbcast.lane.b32.xlu1 %v2086_v3, 280  ;;  %2096 = vbcast.lane.b32.xlu0 %v2086_v3, 272 }
 0x2e5   : > { %v4585_v48 = vpop.permute.xlu1 %1692  ;;  %v4587_v5 = vpop.permute.xlu0 %1688 }
 0x2e6   : > { %6106 = vst [vmem:[#allocation101_spill] sm:$0xff] %v4585_v48  ;;  %6107 = vst [vmem:[#allocation102_spill] sm:$0xff] %v4587_v5 }
 0x2e7   : > { %2111 = vbcast.lane.b32.xlu1 %v2105_v6, 264  ;;  %2107 = vbcast.lane.b32.xlu0 %v2105_v6, 256 }
 0x2e9   : > { %v4589_v2 = vpop.permute.xlu1 %1703  ;;  %v4591_v55 = vpop.permute.xlu0 %1699 }
 0x2ea   : > { %6108 = vst [vmem:[#allocation103_spill] sm:$0xff] %v4589_v2  ;;  %6109 = vst [vmem:[#allocation104_spill] sm:$0xff] %v4591_v55  ;;  %v2143_v55 = vrot.slane %v4547_v12, %v6065_v9 }
 0x2eb   : > { %2119 = vbcast.lane.b32.xlu1 %v2105_v6, 280  ;;  %2115 = vbcast.lane.b32.xlu0 %v2105_v6, 272 }
 0x2ed   : > { %v4595_v7 = vpop.permute.xlu1 %1711  ;;  %v4597_v3 = vpop.permute.xlu0 %1707 }
 0x2ee   : > { %6110 = vst [vmem:[#allocation105_spill] sm:$0xff] %v4595_v7  ;;  %6111 = vst [vmem:[#allocation106_spill] sm:$0xff] %v4597_v3 }
 0x2ef   : > { %2130 = vbcast.lane.b32.xlu1 %v2124_v8, 264  ;;  %2126 = vbcast.lane.b32.xlu0 %v2124_v8, 256 }
 0x2f1   : > { %v4599_v48 = vpop.permute.xlu1 %1722  ;;  %v4601_v5 = vpop.permute.xlu0 %1718 }
 0x2f2   : > { %6112 = vst [vmem:[#allocation107_spill] sm:$0xff] %v4599_v48  ;;  %6113 = vst [vmem:[#allocation108_spill] sm:$0xff] %v4601_v5  ;;  %v2162_v5 = vrot.slane %v4547_v12, %v6066_v28 }
 0x2f3   : > { %2138 = vbcast.lane.b32.xlu1 %v2124_v8, 280  ;;  %2134 = vbcast.lane.b32.xlu0 %v2124_v8, 272 }
 0x2f5   : > { %v4605_v2 = vpop.permute.xlu1 %1730  ;;  %v4607_v6 = vpop.permute.xlu0 %1726 }
 0x2f6   : > { %6114 = vst [vmem:[#allocation109_spill] sm:$0xff] %v4605_v2  ;;  %6115 = vst [vmem:[#allocation110_spill] sm:$0xff] %v4607_v6 }
 0x2f7   : > { %2149 = vbcast.lane.b32.xlu1 %v2143_v55, 264  ;;  %2145 = vbcast.lane.b32.xlu0 %v2143_v55, 256 }
 0x2f9   : > { %v4609_v7 = vpop.permute.xlu1 %1741  ;;  %v4611_v3 = vpop.permute.xlu0 %1737 }
 0x2fa   : > { %6116 = vst [vmem:[#allocation111_spill] sm:$0xff] %v4609_v7  ;;  %6117 = vst [vmem:[#allocation112_spill] sm:$0xff] %v4611_v3  ;;  %v2181_v3 = vrot.slane %v4547_v12, %v6067_v47 }
 0x2fb   : > { %2157 = vbcast.lane.b32.xlu1 %v2143_v55, 280  ;;  %2153 = vbcast.lane.b32.xlu0 %v2143_v55, 272 }
 0x2fd   : > { %v4615_v48 = vpop.permute.xlu1 %1749  ;;  %v4617_v8 = vpop.permute.xlu0 %1745 }
 0x2fe   : > { %6118 = vst [vmem:[#allocation113_spill] sm:$0xff] %v4615_v48  ;;  %6119 = vst [vmem:[#allocation114_spill] sm:$0xff] %v4617_v8  ;;  %v4631_v8 = vsel %vm2265_vm10, 1.0, %v6068_v54 }
 0x2ff   : > { %2168 = vbcast.lane.b32.xlu1 %v2162_v5, 264  ;;  %2164 = vbcast.lane.b32.xlu0 %v2162_v5, 256  ;;  %v2271_v12 = vrot.slane %v4631_v8, %v3917_v4 }
 0x301   : > { %v4619_v2 = vpop.permute.xlu1 %1831  ;;  %v4621_v6 = vpop.permute.xlu0 %1827 }
 0x302   : > { %6120 = vst [vmem:[#allocation115_spill] sm:$0xff] %v4619_v2  ;;  %6121 = vst [vmem:[#allocation116_spill] sm:$0xff] %v4621_v6 }
 0x303   : > { %2176 = vbcast.lane.b32.xlu1 %v2162_v5, 280  ;;  %2172 = vbcast.lane.b32.xlu0 %v2162_v5, 272 }
 0x305   : > { %v4625_v7 = vpop.permute.xlu1 %1839  ;;  %v4627_v55 = vpop.permute.xlu0 %1835 }
 0x306   : > { %6122 = vst [vmem:[#allocation117_spill] sm:$0xff] %v4625_v7  ;;  %6123 = vst [vmem:[#allocation118_spill] sm:$0xff] %v4627_v55 }
 0x307   : > { %2187 = vbcast.lane.b32.xlu1 %v2181_v3, 264  ;;  %2183 = vbcast.lane.b32.xlu0 %v2181_v3, 256 }
 0x309   : > { %v4633_v48 = vpop.permute.xlu1 %1850  ;;  %v4635_v2 = vpop.permute.xlu0 %1846 }
 0x30a   : > { %6124 = vst [vmem:[#allocation119_spill] sm:$0xff] %v4633_v48  ;;  %6125 = vst [vmem:[#allocation120_spill] sm:$0xff] %v4635_v2  ;;  %v2290_v2 = vrot.slane %v4631_v8, %v3954_v15 }
 0x30b   : > { %2195 = vbcast.lane.b32.xlu1 %v2181_v3, 280  ;;  %2191 = vbcast.lane.b32.xlu0 %v2181_v3, 272 }
 0x30d   : > { %v4639_v5 = vpop.permute.xlu1 %1858  ;;  %v4641_v7 = vpop.permute.xlu0 %1854 }
 0x30e   : > { %6126 = vst [vmem:[#allocation121_spill] sm:$0xff] %v4639_v5  ;;  %6127 = vst [vmem:[#allocation122_spill] sm:$0xff] %v4641_v7 }
 0x30f   : > { %2277 = vbcast.lane.b32.xlu1 %v2271_v12, 264  ;;  %2273 = vbcast.lane.b32.xlu0 %v2271_v12, 256 }
 0x311   : > { %v4643_v55 = vpop.permute.xlu1 %1869  ;;  %v4645_v6 = vpop.permute.xlu0 %1865 }
 0x312   : > { %6128 = vst [vmem:[#allocation123_spill] sm:$0xff] %v4643_v55  ;;  %6129 = vst [vmem:[#allocation124_spill] sm:$0xff] %v4645_v6  ;;  %v2309_v6 = vrot.slane %v4631_v8, %v6062_v38 }
 0x313   : > { %2285 = vbcast.lane.b32.xlu1 %v2271_v12, 280  ;;  %2281 = vbcast.lane.b32.xlu0 %v2271_v12, 272 }
 0x315   : > { %v4649_v48 = vpop.permute.xlu1 %1877  ;;  %v4651_v3 = vpop.permute.xlu0 %1873 }
 0x316   : > { %6130 = vst [vmem:[#allocation125_spill] sm:$0xff] %v4649_v48  ;;  %6131 = vst [vmem:[#allocation126_spill] sm:$0xff] %v4651_v3 }
 0x317   : > { %2296 = vbcast.lane.b32.xlu1 %v2290_v2, 264  ;;  %2292 = vbcast.lane.b32.xlu0 %v2290_v2, 256 }
 0x319   : > { %v4653_v5 = vpop.permute.xlu1 %1888  ;;  %v4655_v7 = vpop.permute.xlu0 %1884 }
 0x31a   : > { %6132 = vst [vmem:[#allocation127_spill] sm:$0xff] %v4653_v5  ;;  %6133 = vst [vmem:[#allocation128_spill] sm:$0xff] %v4655_v7  ;;  %v2328_v7 = vrot.slane %v4631_v8, %v6063_v45 }
 0x31b   : > { %2304 = vbcast.lane.b32.xlu1 %v2290_v2, 280  ;;  %2300 = vbcast.lane.b32.xlu0 %v2290_v2, 272 }
 0x31d   : > { %v4659_v55 = vpop.permute.xlu1 %1896  ;;  %v4661_v12 = vpop.permute.xlu0 %1892 }
 0x31e   : > { %6134 = vst [vmem:[#allocation129_spill] sm:$0xff] %v4659_v55  ;;  %6135 = vst [vmem:[#allocation130_spill] sm:$0xff] %v4661_v12 }
 0x31f   : > { %2315 = vbcast.lane.b32.xlu1 %v2309_v6, 264  ;;  %2311 = vbcast.lane.b32.xlu0 %v2309_v6, 256 }
 0x321   : > { %v4663_v48 = vpop.permute.xlu1 %1907  ;;  %v4665_v3 = vpop.permute.xlu0 %1903 }
 0x322   : > { %6136 = vst [vmem:[#allocation131_spill] sm:$0xff] %v4663_v48  ;;  %6137 = vst [vmem:[#allocation132_spill] sm:$0xff] %v4665_v3  ;;  %v2347_v3 = vrot.slane %v4631_v8, %v6064_v42 }
 0x323   : > { %2323 = vbcast.lane.b32.xlu1 %v2309_v6, 280  ;;  %2319 = vbcast.lane.b32.xlu0 %v2309_v6, 272 }
 0x325   : > { %v4669_v5 = vpop.permute.xlu1 %1915  ;;  %v4671_v2 = vpop.permute.xlu0 %1911 }
 0x326   : > { %6138 = vst [vmem:[#allocation133_spill] sm:$0xff] %v4669_v5  ;;  %6139 = vst [vmem:[#allocation134_spill] sm:$0xff] %v4671_v2 }
 0x327   : > { %2334 = vbcast.lane.b32.xlu1 %v2328_v7, 264  ;;  %2330 = vbcast.lane.b32.xlu0 %v2328_v7, 256 }
 0x329   : > { %v4673_v55 = vpop.permute.xlu1 %1926  ;;  %v4675_v12 = vpop.permute.xlu0 %1922 }
 0x32a   : > { %6140 = vst [vmem:[#allocation135_spill] sm:$0xff] %v4673_v55  ;;  %6141 = vst [vmem:[#allocation136_spill] sm:$0xff] %v4675_v12  ;;  %v2366_v12 = vrot.slane %v4631_v8, %v6065_v9 }
 0x32b   : > { %2342 = vbcast.lane.b32.xlu1 %v2328_v7, 280  ;;  %2338 = vbcast.lane.b32.xlu0 %v2328_v7, 272 }
 0x32d   : > { %v4679_v48 = vpop.permute.xlu1 %1934  ;;  %v4681_v6 = vpop.permute.xlu0 %1930 }
 0x32e   : > { %6142 = vst [vmem:[#allocation137_spill] sm:$0xff] %v4679_v48  ;;  %6143 = vst [vmem:[#allocation138_spill] sm:$0xff] %v4681_v6 }
 0x32f   : > { %2353 = vbcast.lane.b32.xlu1 %v2347_v3, 264  ;;  %2349 = vbcast.lane.b32.xlu0 %v2347_v3, 256 }
 0x331   : > { %v4683_v5 = vpop.permute.xlu1 %1945  ;;  %v4685_v2 = vpop.permute.xlu0 %1941 }
 0x332   : > { %6144 = vst [vmem:[#allocation139_spill] sm:$0xff] %v4683_v5  ;;  %6145 = vst [vmem:[#allocation140_spill] sm:$0xff] %v4685_v2  ;;  %v2385_v2 = vrot.slane %v4631_v8, %v6066_v28 }
 0x333   : > { %2361 = vbcast.lane.b32.xlu1 %v2347_v3, 280  ;;  %2357 = vbcast.lane.b32.xlu0 %v2347_v3, 272 }
 0x335   : > { %v4689_v55 = vpop.permute.xlu1 %1953  ;;  %v4691_v7 = vpop.permute.xlu0 %1949 }
 0x336   : > { %6146 = vst [vmem:[#allocation141_spill] sm:$0xff] %v4689_v55  ;;  %6147 = vst [vmem:[#allocation142_spill] sm:$0xff] %v4691_v7 }
 0x337   : > { %2372 = vbcast.lane.b32.xlu1 %v2366_v12, 264  ;;  %2368 = vbcast.lane.b32.xlu0 %v2366_v12, 256 }
 0x339   : > { %v4693_v48 = vpop.permute.xlu1 %1964  ;;  %v4695_v6 = vpop.permute.xlu0 %1960 }
 0x33a   : > { %6148 = vst [vmem:[#allocation143_spill] sm:$0xff] %v4693_v48  ;;  %6149 = vst [vmem:[#allocation144_spill] sm:$0xff] %v4695_v6  ;;  %v2404_v6 = vrot.slane %v4631_v8, %v6067_v47 }
 0x33b   : > { %2380 = vbcast.lane.b32.xlu1 %v2366_v12, 280  ;;  %2376 = vbcast.lane.b32.xlu0 %v2366_v12, 272 }
 0x33d   : > { %v4699_v5 = vpop.permute.xlu1 %1972  ;;  %v4701_v3 = vpop.permute.xlu0 %1968 }
 0x33e   : > { %6150 = vst [vmem:[#allocation145_spill] sm:$0xff] %v4699_v5  ;;  %6151 = vst [vmem:[#allocation146_spill] sm:$0xff] %v4701_v3  ;;  %v4715_v3 = vsel %vm2488_vm11, 1.0, %v6068_v54 }
 0x33f   : > { %2391 = vbcast.lane.b32.xlu1 %v2385_v2, 264  ;;  %2387 = vbcast.lane.b32.xlu0 %v2385_v2, 256  ;;  %v2494_v8 = vrot.slane %v4715_v3, %v3917_v4  ;;  %v2513_v54 = vrot.slane %v4715_v3, %v3954_v15 }
 0x341   : > { %v4703_v55 = vpop.permute.xlu1 %2054  ;;  %v4705_v7 = vpop.permute.xlu0 %2050 }
 0x342   : > { %6152 = vst [vmem:[#allocation147_spill] sm:$0xff] %v4703_v55  ;;  %6153 = vst [vmem:[#allocation148_spill] sm:$0xff] %v4705_v7 }
 0x343   : > { %2399 = vbcast.lane.b32.xlu1 %v2385_v2, 280  ;;  %2395 = vbcast.lane.b32.xlu0 %v2385_v2, 272 }
 0x345   : > { %v4709_v48 = vpop.permute.xlu1 %2062  ;;  %v4711_v12 = vpop.permute.xlu0 %2058 }
 0x346   : > { %6154 = vst [vmem:[#allocation149_spill] sm:$0xff] %v4709_v48  ;;  %6155 = vst [vmem:[#allocation150_spill] sm:$0xff] %v4711_v12 }
 0x347   : > { %2410 = vbcast.lane.b32.xlu1 %v2404_v6, 264  ;;  %2406 = vbcast.lane.b32.xlu0 %v2404_v6, 256 }
 0x349   : > { %v4717_v5 = vpop.permute.xlu1 %2073  ;;  %v4719_v55 = vpop.permute.xlu0 %2069 }
 0x34a   : > { %6156 = vst [vmem:[#allocation151_spill] sm:$0xff] %v4717_v5  ;;  %6157 = vst [vmem:[#allocation152_spill] sm:$0xff] %v4719_v55  ;;  %v6188_v5 = vld [vmem:[#allocation22_spill] sm:$0xff] }
 0x34b   : > { %2418 = vbcast.lane.b32.xlu1 %v2404_v6, 280  ;;  %2414 = vbcast.lane.b32.xlu0 %v2404_v6, 272  ;;  %v1308_v7 = vrot.slane %v6188_v5, %v3917_v4 }
 0x34d   : > { %v4723_v2 = vpop.permute.xlu1 %2081  ;;  %v4725_v48 = vpop.permute.xlu0 %2077 }
 0x34e   : > { %6158 = vst [vmem:[#allocation153_spill] sm:$0xff] %v4723_v2  ;;  %6159 = vst [vmem:[#allocation154_spill] sm:$0xff] %v4725_v48 }
 0x34f   : > { %2500 = vbcast.lane.b32.xlu1 %v2494_v8, 264  ;;  %2496 = vbcast.lane.b32.xlu0 %v2494_v8, 256 }
 0x351   : > { %v4727_v61 = vpop.permute.xlu1 %2092  ;;  %v4729_v12 = vpop.permute.xlu0 %2088 }
 0x352   : > { %6160 = vst [vmem:[#allocation155_spill] sm:$0xff] %v4727_v61  ;;  %6161 = vst [vmem:[#allocation156_spill] sm:$0xff] %v4729_v12  ;;  %v2532_v12 = vrot.slane %v4715_v3, %v6062_v38 }
 0x353   : > { %2508 = vbcast.lane.b32.xlu1 %v2494_v8, 280  ;;  %2504 = vbcast.lane.b32.xlu0 %v2494_v8, 272 }
 0x355   : > { %v4733_v55 = vpop.permute.xlu1 %2100  ;;  %v4735_v6 = vpop.permute.xlu0 %2096 }
 0x356   : > { %6162 = vst [vmem:[#allocation157_spill] sm:$0xff] %v4733_v55  ;;  %6163 = vst [vmem:[#allocation158_spill] sm:$0xff] %v4735_v6 }
 0x357   : > { %2519 = vbcast.lane.b32.xlu1 %v2513_v54, 264  ;;  %2515 = vbcast.lane.b32.xlu0 %v2513_v54, 256 }
 0x359   : > { %v4737_v2 = vpop.permute.xlu1 %2111  ;;  %v4739_v48 = vpop.permute.xlu0 %2107 }
 0x35a   : > { %6164 = vst [vmem:[#allocation159_spill] sm:$0xff] %v4737_v2  ;;  %6165 = vst [vmem:[#allocation160_spill] sm:$0xff] %v4739_v48  ;;  %v2551_v48 = vrot.slane %v4715_v3, %v6063_v45 }
 0x35b   : > { %2527 = vbcast.lane.b32.xlu1 %v2513_v54, 280  ;;  %2523 = vbcast.lane.b32.xlu0 %v2513_v54, 272 }
 0x35d   : > { %v4743_v61 = vpop.permute.xlu1 %2119  ;;  %v4745_v8 = vpop.permute.xlu0 %2115 }
 0x35e   : > { %6166 = vst [vmem:[#allocation161_spill] sm:$0xff] %v4743_v61  ;;  %6167 = vst [vmem:[#allocation162_spill] sm:$0xff] %v4745_v8 }
 0x35f   : > { %2538 = vbcast.lane.b32.xlu1 %v2532_v12, 264  ;;  %2534 = vbcast.lane.b32.xlu0 %v2532_v12, 256 }
 0x361   : > { %v4747_v55 = vpop.permute.xlu1 %2130  ;;  %v4749_v6 = vpop.permute.xlu0 %2126 }
 0x362   : > { %6168 = vst [vmem:[#allocation163_spill] sm:$0xff] %v4747_v55  ;;  %6169 = vst [vmem:[#allocation164_spill] sm:$0xff] %v4749_v6  ;;  %v2570_v6 = vrot.slane %v4715_v3, %v6064_v42 }
 0x363   : > { %2546 = vbcast.lane.b32.xlu1 %v2532_v12, 280  ;;  %2542 = vbcast.lane.b32.xlu0 %v2532_v12, 272 }
 0x365   : > { %v4753_v2 = vpop.permute.xlu1 %2138  ;;  %v4755_v54 = vpop.permute.xlu0 %2134 }
 0x366   : > { %6170 = vst [vmem:[#allocation165_spill] sm:$0xff] %v4753_v2  ;;  %6171 = vst [vmem:[#allocation166_spill] sm:$0xff] %v4755_v54 }
 0x367   : > { %2557 = vbcast.lane.b32.xlu1 %v2551_v48, 264  ;;  %2553 = vbcast.lane.b32.xlu0 %v2551_v48, 256 }
 0x369   : > { %v4757_v61 = vpop.permute.xlu1 %2149  ;;  %v4759_v8 = vpop.permute.xlu0 %2145 }
 0x36a   : > { %6172 = vst [vmem:[#allocation167_spill] sm:$0xff] %v4757_v61  ;;  %6173 = vst [vmem:[#allocation168_spill] sm:$0xff] %v4759_v8  ;;  %v2589_v8 = vrot.slane %v4715_v3, %v6065_v9  ;;  %v6191_v9 = vld [vmem:[#allocation45_spill] sm:$0xff] }
 0x36b   : > { %2565 = vbcast.lane.b32.xlu1 %v2551_v48, 280  ;;  %2561 = vbcast.lane.b32.xlu0 %v2551_v48, 272  ;;  %v2836_v42 = vrot.slane %v6191_v9, %v3917_v4 }
 0x36d   : > { %v4763_v55 = vpop.permute.xlu1 %2157  ;;  %v4765_v12 = vpop.permute.xlu0 %2153 }
 0x36e   : > { %6174 = vst [vmem:[#allocation169_spill] sm:$0xff] %v4763_v55  ;;  %6175 = vst [vmem:[#allocation170_spill] sm:$0xff] %v4765_v12 }
 0x36f   : > { %2576 = vbcast.lane.b32.xlu1 %v2570_v6, 264  ;;  %2572 = vbcast.lane.b32.xlu0 %v2570_v6, 256 }
 0x371   : > { %v4767_v2 = vpop.permute.xlu1 %2168  ;;  %v4769_v54 = vpop.permute.xlu0 %2164 }
 0x372   : > { %6176 = vst [vmem:[#allocation171_spill] sm:$0xff] %v4767_v2  ;;  %6177 = vst [vmem:[#allocation172_spill] sm:$0xff] %v4769_v54  ;;  %v2608_v54 = vrot.slane %v4715_v3, %v6066_v28  ;;  %v4801_v28 = vrot.slane %v6188_v5, %v3954_v15 }
 0x373   : > { %2584 = vbcast.lane.b32.xlu1 %v2570_v6, 280  ;;  %2580 = vbcast.lane.b32.xlu0 %v2570_v6, 272 }
 0x375   : > { %v4773_v61 = vpop.permute.xlu1 %2176  ;;  %v4775_v48 = vpop.permute.xlu0 %2172 }
 0x376   : > { %6178 = vst [vmem:[#allocation173_spill] sm:$0xff] %v4773_v61  ;;  %6179 = vst [vmem:[#allocation174_spill] sm:$0xff] %v4775_v48 }
 0x377   : > { %2595 = vbcast.lane.b32.xlu1 %v2589_v8, 264  ;;  %2591 = vbcast.lane.b32.xlu0 %v2589_v8, 256 }
 0x379   : > { %v4777_v55 = vpop.permute.xlu1 %2187  ;;  %v4779_v12 = vpop.permute.xlu0 %2183 }
 0x37a   : > { %6180 = vst [vmem:[#allocation175_spill] sm:$0xff] %v4777_v55  ;;  %6181 = vst [vmem:[#allocation176_spill] sm:$0xff] %v4779_v12  ;;  %v2627_v12 = vrot.slane %v4715_v3, %v6067_v47  ;;  %v1311_v47 = vmul.f32 %v1308_v7, %v4368_v30  ;;  %v1318_v30 = vmul.f32 %v1308_v7, %v4391_v62 }
 0x37b   : > { %2603 = vbcast.lane.b32.xlu1 %v2589_v8, 280  ;;  %2599 = vbcast.lane.b32.xlu0 %v2589_v8, 272  ;;  %v4842_v62 = vmul.f32 %v1308_v7, %v4407_v35  ;;  %v4863_v35 = vmul.f32 %v1308_v7, %v4423_v25  ;;  %v1533_v25 = vmul.f32 %v4801_v28, %v4451_v59 }
 0x37c   : > { %v1536_v59 = vmul.f32 %v4801_v28, %v4467_v53  ;;  %v1538_v53 = vmul.f32 %v4801_v28, %v4473_v49  ;;  %v1543_v49 = vmul.f32 %v4801_v28, %v4481_v37 }
 0x37d   : > { %v4783_v2 = vpop.permute.xlu1 %2195  ;;  %v4785_v6 = vpop.permute.xlu0 %2191 }
 0x37e   : > { %6182 = vst [vmem:[#allocation177_spill] sm:$0xff] %v4783_v2  ;;  %6183 = vst [vmem:[#allocation178_spill] sm:$0xff] %v4785_v6  ;;  %v1314_v6 = vmul.f32 %v1308_v7, %v4381_v40  ;;  %v1313_v2 = vmul.f32 %v1308_v7, %v4383_v36  ;;  %v4832_v40 = vmul.f32 %v1308_v7, %v4401_v26 }
 0x37f   : > { %2614 = vbcast.lane.b32.xlu1 %v2608_v54, 264  ;;  %2610 = vbcast.lane.b32.xlu0 %v2608_v54, 256  ;;  %v4835_v36 = vmul.f32 %v1308_v7, %v4403_v24  ;;  %v4854_v26 = vmul.f32 %v1308_v7, %v4417_v29  ;;  %v4857_v24 = vmul.f32 %v1308_v7, %v4419_v50 }
 0x380   : > { %v4872_v29 = vmul.f32 %v1308_v7, %v4431_v19  ;;  %v4881_v50 = vmul.f32 %v1308_v7, %v4439_v27  ;;  %v1532_v19 = vmul.f32 %v4801_v28, %v4453_v63  ;;  %v1537_v27 = vmul.f32 %v4801_v28, %v4465_v52 }
 0x381   : > { %v4787_v61 = vpop.permute.xlu1 %2277  ;;  %v4789_v48 = vpop.permute.xlu0 %2273  ;;  %v4908_v63 = vmul.f32 %v1308_v7, %v4447_v11  ;;  %v1539_v52 = vmul.f32 %v4801_v28, %v4471_v0  ;;  %v1540_v0 = vmul.f32 %v4801_v28, %v4477_v44  ;;  %v6194_v44 = vld [vmem:[#allocation64_spill] sm:$0xff] }
 0x382   : > { %6184 = vst [vmem:[#allocation179_spill] sm:$0xff] %v4787_v61  ;;  %6185 = vst [vmem:[#allocation180_spill] sm:$0xff] %v4789_v48  ;;  %v4805_v48 = vrot.slane %v6188_v5, %v6062_v38  ;;  %v1310_v61 = vmul.f32 %v1308_v7, %v4375_v58  ;;  %v4829_v58 = vmul.f32 %v1308_v7, %v4399_v10 }
 0x383   : > { %2622 = vbcast.lane.b32.xlu1 %v2608_v54, 280  ;;  %2618 = vbcast.lane.b32.xlu0 %v2608_v54, 272  ;;  %v4851_v10 = vmul.f32 %v1308_v7, %v4413_v33  ;;  %v4869_v33 = vmul.f32 %v1308_v7, %v4429_v34  ;;  %v4890_v34 = vmul.f32 %v1308_v7, %v4441_v13 }
 0x384   : > { %v2855_v13 = vrot.slane %v6191_v9, %v3954_v15  ;;  %v1541_v15 = vmul.f32 %v4801_v28, %v4475_v51  ;;  %v4939_v51 = vadd.f32 %v1537_v27, %v1314_v6  ;;  %v6195_v6 = vld [vmem:[#allocation65_spill] sm:$0xff] }
 0x385   : > { %v4793_v55 = vpop.permute.xlu1 %2285  ;;  %v4795_v8 = vpop.permute.xlu0 %2281 }
 0x386   : > { %6186 = vst [vmem:[#allocation181_spill] sm:$0xff] %v4793_v55  ;;  %6187 = vst [vmem:[#allocation182_spill] sm:$0xff] %v4795_v8  ;;  %v1309_v8 = vmul.f32 %v1308_v7, %v4370_v32  ;;  %v1312_v55 = vmul.f32 %v1308_v7, %v4373_v39  ;;  %v4823_v32 = vmul.f32 %v1308_v7, %v4393_v1 }
 0x387   : > { %2633 = vbcast.lane.b32.xlu1 %v2627_v12, 264  ;;  %2629 = vbcast.lane.b32.xlu0 %v2627_v12, 256  ;;  %v4826_v39 = vmul.f32 %v1308_v7, %v4397_v41  ;;  %v4845_v1 = vmul.f32 %v1308_v7, %v4409_v46  ;;  %v4848_v41 = vmul.f32 %v1308_v7, %v4411_v31 }
 0x388   : > { %v4866_v31 = vmul.f32 %v1308_v7, %v4427_v22  ;;  %v4875_v46 = vmul.f32 %v1308_v7, %v4433_v20  ;;  %v1534_v20 = vmul.f32 %v4801_v28, %v4459_v17  ;;  %v4915_v17 = vadd.f32 %v1533_v25, %v1310_v61 }
 0x389   : > { %v4807_v54 = vpop.permute.xlu1 %2296  ;;  %v4809_v3 = vpop.permute.xlu0 %2292  ;;  %v4941_v25 = vadd.f32 %v1536_v59, %v1313_v2  ;;  %v1547_v2 = vmul.f32 %v4801_v28, %v6195_v6  ;;  %v6198_v59 = vld [vmem:[#allocation68_spill] sm:$0xff] }
 0x38a   : > { %6189 = vst [vmem:[#allocation183_spill] sm:$0xff] %v4807_v54  ;;  %6190 = vst [vmem:[#allocation184_spill] sm:$0xff] %v4809_v3  ;;  %v1316_v54 = vmul.f32 %v1308_v7, %v4387_v60  ;;  %v1315_v3 = vmul.f32 %v1308_v7, %v4389_v16  ;;  %v4937_v61 = vadd.f32 %v1534_v20, %v1311_v47 }
 0x38b   : > { %2641 = vbcast.lane.b32.xlu1 %v2627_v12, 280  ;;  %2637 = vbcast.lane.b32.xlu0 %v2627_v12, 272  ;;  %v4860_v12 = vmul.f32 %v1308_v7, %v4421_v23  ;;  %v4878_v23 = vmul.f32 %v1308_v7, %v4437_v18  ;;  %v1535_v18 = vmul.f32 %v4801_v28, %v4457_v57 }
 0x38c   : > { %v4911_v57 = vmul.f32 %v1308_v7, %v4449_v21  ;;  %v4929_v21 = vadd.f32 %v1532_v19, %v1309_v8  ;;  %v1545_v8 = vmul.f32 %v4801_v28, %v4485_v43  ;;  %v1544_v19 = vmul.f32 %v4801_v28, %v6194_v44  ;;  %v6200_v44 = vld [vmem:[#allocation70_spill] sm:$0xff] }
 0x38d   : > { %v4837_v60 = vpop.permute.xlu1 %2304  ;;  %v4839_v16 = vpop.permute.xlu0 %2300  ;;  %v4951_v37 = vadd.f32 %v1538_v53, %v1315_v3  ;;  %v4953_v47 = vadd.f32 %v1541_v15, %v1318_v30  ;;  %v4967_v43 = vadd.f32 %v1543_v49, %v4826_v39  ;;  %v6197_v3 = vld [vmem:[#allocation67_spill] sm:$0xff]  ;;  %v6199_v53 = vld [vmem:[#allocation69_spill] sm:$0xff]  ;;  %v1550_v6 = vmul.f32 %v4801_v28, %v6200_v44 }
 0x38e   : > { %v1549_v30 = vmul.f32 %v4801_v28, %v6197_v3  ;;  %v1551_v15 = vmul.f32 %v4801_v28, %v6199_v53  ;;  %v4986_v49 = vadd.f32 %v1544_v19, %v4835_v36  ;;  %v6202_v53 = vld [vmem:[#allocation72_spill] sm:$0xff]  ;;  %v6205_v19 = vld [vmem:[#allocation74_spill] sm:$0xff] }
 0x38f   : > { %2842 = vbcast.lane.b32.xlu1 %v2836_v42, 264  ;;  %2838 = vbcast.lane.b32.xlu0 %v2836_v42, 256 }
 0x390   : > { %v5005_v36 = vadd.f32 %v1549_v30, %v4848_v41  ;;  %v6208_v30 = vld [vmem:[#allocation77_spill] sm:$0xff] }
 0x391   : > { %v4885_v22 = vpop.permute.xlu1 %2315  ;;  %v4887_v4 = vpop.permute.xlu0 %2311 }
 0x392   : > { %6192 = vst [vmem:[#allocation185_spill] sm:$0xff] %v4887_v4  ;;  %v4905_v4 = vmul.f32 %v1308_v7, %v4443_v14  ;;  %v4923_v14 = vrot.slane %v6188_v5, %v6063_v45  ;;  %v4931_v7 = vadd.f32 %v1535_v18, %v1312_v55  ;;  %v1542_v55 = vmul.f32 %v4801_v28, %v4483_v56  ;;  %v6196_v18 = vld [vmem:[#allocation66_spill] sm:$0xff] }
 0x393   : > { %2850 = vbcast.lane.b32.xlu1 %v2836_v42, 280  ;;  %2846 = vbcast.lane.b32.xlu0 %v2836_v42, 272  ;;  %v4964_v56 = vadd.f32 %v1540_v0, %v4823_v32  ;;  %v2874_v32 = vrot.slane %v6191_v9, %v6062_v38  ;;  %v4983_v0 = vadd.f32 %v1545_v8, %v4832_v40 }
 0x394   : > { %v4980_v39 = vadd.f32 %v1542_v55, %v4829_v58  ;;  %v1552_v38 = vmul.f32 %v4801_v28, %v6202_v53  ;;  %v6203_v58 = vld [vmem:[#allocation73_spill] sm:$0xff]  ;;  %v5017_v53 = vadd.f32 %v1551_v15, %v4854_v26 }
 0x395   : > { %v4925_v11 = vpop.permute.xlu1 %2323  ;;  %v4927_v42 = vpop.permute.xlu0 %2319  ;;  %v1555_v55 = vmul.f32 %v4801_v28, %v6203_v58  ;;  %v5020_v58 = vadd.f32 %v1550_v6, %v4857_v24 }
 0x396   : > { %6193 = vst [vmem:[#allocation186_spill] sm:$0xff] %v4925_v11  ;;  %v4943_v11 = vadd.f32 %v1539_v52, %v1316_v54  ;;  %v1546_v54 = vmul.f32 %v4801_v28, %v6196_v18  ;;  %v1548_v52 = vmul.f32 %v4801_v28, %v6198_v59  ;;  %v6201_v18 = vld [vmem:[#allocation71_spill] sm:$0xff]  ;;  %v4991_v59 = vadd.f32 %v1547_v2, %v4842_v62 }
 0x397   : > { %2861 = vbcast.lane.b32.xlu1 %v2855_v13, 264  ;;  %2857 = vbcast.lane.b32.xlu0 %v2855_v13, 256  ;;  %v1553_v3 = vmul.f32 %v4801_v28, %v6201_v18  ;;  %v1554_v62 = vmul.f32 %v4801_v28, %v6205_v19  ;;  %v6206_v2 = vld [vmem:[#allocation75_spill] sm:$0xff]  ;;  %v1559_v19 = vmul.f32 %v4801_v28, %v6208_v30 }
 0x398   : > { %v5014_v18 = vadd.f32 %v1548_v52, %v4851_v10  ;;  %v5032_v26 = vadd.f32 %v1552_v38, %v4863_v35  ;;  %v5035_v24 = vadd.f32 %v1555_v55, %v4866_v31  ;;  %v6211_v52 = vld [vmem:[#allocation80_spill] sm:$0xff]  ;;  %v6214_v31 = vld [vmem:[#allocation82_spill] sm:$0xff]  ;;  %v6215_v55 = vld [vmem:[#allocation83_spill] sm:$0xff] }
 0x399   : > { %v4959_v20 = vpop.permute.xlu1 %2334  ;;  %v4961_v27 = vpop.permute.xlu0 %2330  ;;  %v5023_v41 = vadd.f32 %v1553_v3, %v4860_v12  ;;  %v1560_v15 = vmul.f32 %v4801_v28, %v6211_v52  ;;  %v6212_v12 = vld [vmem:[#allocation81_spill] sm:$0xff]  ;;  %v1562_v38 = vmul.f32 %v4801_v28, %v6214_v31  ;;  %v1756_v52 = vmul.f32 %v4805_v48, %v6215_v55  ;;  %v6219_v31 = vld [vmem:[#allocation86_spill] sm:$0xff] }
 0x39a   : > { %v1563_v6 = vmul.f32 %v4801_v28, %v6212_v12  ;;  %v6216_v12 = vld [vmem:[#allocation84_spill] sm:$0xff] }
 0x39b   : > { %2869 = vbcast.lane.b32.xlu1 %v2855_v13, 280  ;;  %2865 = vbcast.lane.b32.xlu0 %v2855_v13, 272  ;;  %v4994_v13 = vadd.f32 %v1546_v54, %v4845_v1  ;;  %v1557_v1 = vmul.f32 %v4801_v28, %v6206_v2  ;;  %v6207_v54 = vld [vmem:[#allocation76_spill] sm:$0xff]  ;;  %v6209_v2 = vld [vmem:[#allocation78_spill] sm:$0xff] }
 0x39c   : > { %v1556_v44 = vmul.f32 %v4801_v28, %v6207_v54  ;;  %v1558_v54 = vmul.f32 %v4801_v28, %v6209_v2  ;;  %v5046_v2 = vadd.f32 %v1554_v62, %v4869_v33  ;;  %v2893_v33 = vrot.slane %v6191_v9, %v6063_v45 }
 0x39d   : > { %v5000_v40 = vpop.permute.xlu1 %2342  ;;  %v5002_v8 = vpop.permute.xlu0 %2338  ;;  %v1757_v45 = vmul.f32 %v4805_v48, %v6219_v31  ;;  %v6226_v31 = vld [vmem:[#allocation27_spill] sm:$0xff] }
 0x39e   : > { %6204 = vst [vmem:[#allocation64_spill] sm:$0xff] %v5002_v8  ;;  %v6210_v8 = vld [vmem:[#allocation79_spill] sm:$0xff]  ;;  %v5052_v35 = vadd.f32 %v1556_v44, %v4875_v46  ;;  %v5066_v46 = vadd.f32 %v1558_v54, %v4881_v50  ;;  %v5074_v44 = vadd.f32 %v1560_v15, %v4905_v4  ;;  %v6224_v15 = vld [vmem:[#allocation89_spill] sm:$0xff] }
 0x39f   : > { %2880 = vbcast.lane.b32.xlu1 %v2874_v32, 264  ;;  %2876 = vbcast.lane.b32.xlu0 %v2874_v32, 256  ;;  %v1561_v10 = vmul.f32 %v4801_v28, %v6210_v8  ;;  %v5049_v8 = vadd.f32 %v1557_v1, %v4872_v29  ;;  %v5063_v29 = vadd.f32 %v1559_v19, %v4878_v23  ;;  %v6217_v28 = vld [vmem:[#allocation85_spill] sm:$0xff]  ;;  %v6220_v23 = vld [vmem:[#allocation87_spill] sm:$0xff] }
 0x3a0   : > { %v1758_v1 = vmul.f32 %v4805_v48, %v6217_v28  ;;  %6218 = vst [vmem:[#allocation66_spill] sm:$0xff] %v5074_v44  ;;  %v1760_v19 = vmul.f32 %v4805_v48, %v6220_v23  ;;  %v5104_v23 = vrot.slane %v6188_v5, %v6226_v31  ;;  %v6230_v44 = vld [vmem:[#allocation94_spill] sm:$0xff] }
 0x3a1   : > { %v5041_v3 = vpop.permute.xlu1 %2353  ;;  %v5043_v30 = vpop.permute.xlu0 %2349  ;;  %v5069_v62 = vadd.f32 %v1561_v10, %v4890_v34  ;;  %v5088_v34 = vadd.f32 %v1562_v38, %v4911_v57  ;;  %v6223_v10 = vld [vmem:[#allocation88_spill] sm:$0xff]  ;;  %v6227_v38 = vld [vmem:[#allocation91_spill] sm:$0xff] }
 0x3a2   : > { %6213 = vst [vmem:[#allocation65_spill] sm:$0xff] %v5041_v3  ;;  %v1755_v3 = vmul.f32 %v4805_v48, %v6216_v12  ;;  %v1759_v4 = vmul.f32 %v4805_v48, %v6223_v10  ;;  %v5097_v12 = vadd.f32 %v1756_v52, %v4915_v17  ;;  %v5107_v57 = vadd.f32 %v1758_v1, %v4931_v7  ;;  %v6229_v17 = vld [vmem:[#allocation93_spill] sm:$0xff]  ;;  %v6231_v7 = vld [vmem:[#allocation95_spill] sm:$0xff] }
 0x3a3   : > { %2888 = vbcast.lane.b32.xlu1 %v2874_v32, 280  ;;  %2884 = vbcast.lane.b32.xlu0 %v2874_v32, 272  ;;  %v5077_v32 = vadd.f32 %v1563_v6, %v4908_v63  ;;  %v1762_v63 = vmul.f32 %v4805_v48, %v6224_v15  ;;  %v6225_v6 = vld [vmem:[#allocation90_spill] sm:$0xff]  ;;  %v1764_v10 = vmul.f32 %v4805_v48, %v6227_v38  ;;  %v6228_v15 = vld [vmem:[#allocation92_spill] sm:$0xff] }
 0x3a4   : > { %v1761_v55 = vmul.f32 %v4805_v48, %v6225_v6  ;;  %v5100_v28 = vadd.f32 %v1755_v3, %v4929_v21  ;;  %v1763_v6 = vmul.f32 %v4805_v48, %v6228_v15  ;;  %v1766_v52 = vmul.f32 %v4805_v48, %v6229_v17 }
 0x3a5   : > { %v5083_v50 = vpop.permute.xlu1 %2361  ;;  %v5085_v54 = vpop.permute.xlu0 %2357  ;;  %v5116_v21 = vadd.f32 %v1757_v45, %v4937_v61  ;;  %v5119_v3 = vadd.f32 %v1760_v19, %v4939_v51  ;;  %v1768_v1 = vmul.f32 %v4805_v48, %v6231_v7  ;;  %v5130_v15 = vadd.f32 %v1759_v4, %v4941_v25  ;;  %v6234_v51 = vld [vmem:[#allocation96_spill] sm:$0xff]  ;;  %v6236_v7 = vld [vmem:[#allocation98_spill] sm:$0xff] }
 0x3a6   : > { %6221 = vst [vmem:[#allocation67_spill] sm:$0xff] %v5083_v50  ;;  %6222 = vst [vmem:[#allocation68_spill] sm:$0xff] %v5085_v54  ;;  %v1765_v54 = vmul.f32 %v4805_v48, %v6230_v44  ;;  %v5133_v17 = vadd.f32 %v1762_v63, %v4943_v11  ;;  %v5136_v61 = vadd.f32 %v1761_v55, %v4951_v37  ;;  %v6235_v44 = vld [vmem:[#allocation97_spill] sm:$0xff]  ;;  %v6237_v63 = vld [vmem:[#allocation99_spill] sm:$0xff] }
 0x3a7   : > { %2899 = vbcast.lane.b32.xlu1 %v2893_v33, 264  ;;  %2895 = vbcast.lane.b32.xlu0 %v2893_v33, 256  ;;  %v1767_v45 = vmul.f32 %v4805_v48, %v6234_v51  ;;  %v1770_v19 = vmul.f32 %v4805_v48, %v6235_v44  ;;  %v2912_v25 = vrot.slane %v6191_v9, %v6226_v31  ;;  %v6238_v44 = vld [vmem:[#allocation100_spill] sm:$0xff] }
 0x3a8   : > { %v5147_v11 = vadd.f32 %v1764_v10, %v4953_v47  ;;  %v5150_v37 = vadd.f32 %v1763_v6, %v4964_v56  ;;  %v5153_v4 = vadd.f32 %v1766_v52, %v4967_v43  ;;  %v1772_v55 = vmul.f32 %v4805_v48, %v6237_v63  ;;  %v6239_v47 = vld [vmem:[#allocation101_spill] sm:$0xff]  ;;  %v6242_v52 = vld [vmem:[#allocation102_spill] sm:$0xff] }
 0x3a9   : > { %v5125_v50 = vpop.permute.xlu1 %2372  ;;  %v5127_v38 = vpop.permute.xlu0 %2368  ;;  %v5158_v51 = vadd.f32 %v1765_v54, %v4980_v39  ;;  %v1771_v31 = vmul.f32 %v4805_v48, %v6238_v44  ;;  %v1774_v10 = vmul.f32 %v4805_v48, %v6239_v47  ;;  %v5172_v43 = vadd.f32 %v1767_v45, %v4986_v49  ;;  %v6243_v54 = vld [vmem:[#allocation103_spill] sm:$0xff]  ;;  %v6245_v47 = vld [vmem:[#allocation105_spill] sm:$0xff]  ;;  %v6246_v45 = vld [vmem:[#allocation106_spill] sm:$0xff] }
 0x3aa   : > { %6232 = vst [vmem:[#allocation69_spill] sm:$0xff] %v5125_v50  ;;  %6233 = vst [vmem:[#allocation70_spill] sm:$0xff] %v5127_v38  ;;  %v1769_v50 = vmul.f32 %v4805_v48, %v6236_v7  ;;  %v1773_v39 = vmul.f32 %v4805_v48, %v6242_v52  ;;  %v5181_v63 = vadd.f32 %v1770_v19, %v4991_v59  ;;  %v6249_v19 = vld [vmem:[#allocation109_spill] sm:$0xff] }
 0x3ab   : > { %2907 = vbcast.lane.b32.xlu1 %v2893_v33, 280  ;;  %2903 = vbcast.lane.b32.xlu0 %v2893_v33, 272  ;;  %v5161_v33 = vadd.f32 %v1768_v1, %v4983_v0  ;;  %v1776_v0 = vmul.f32 %v4805_v48, %v6243_v54  ;;  %v6244_v1 = vld [vmem:[#allocation104_spill] sm:$0xff]  ;;  %v5189_v49 = vadd.f32 %v1772_v55, %v5005_v36  ;;  %v6247_v54 = vld [vmem:[#allocation107_spill] sm:$0xff]  ;;  %v6250_v36 = vld [vmem:[#allocation110_spill] sm:$0xff] }
 0x3ac   : > { %v1775_v7 = vmul.f32 %v4805_v48, %v6244_v1  ;;  %v5184_v44 = vadd.f32 %v1769_v50, %v4994_v13  ;;  %v1777_v52 = vmul.f32 %v4805_v48, %v6246_v45  ;;  %v1780_v1 = vmul.f32 %v4805_v48, %v6247_v54 }
 0x3ad   : > { %v5167_v56 = vpop.permute.xlu1 %2380  ;;  %v5169_v6 = vpop.permute.xlu0 %2376  ;;  %v5198_v13 = vadd.f32 %v1771_v31, %v5014_v18  ;;  %v5201_v50 = vadd.f32 %v1774_v10, %v5017_v53  ;;  %v1781_v55 = vmul.f32 %v4805_v48, %v6250_v36  ;;  %v5212_v54 = vadd.f32 %v1773_v39, %v5020_v58  ;;  %v6253_v53 = vld [vmem:[#allocation111_spill] sm:$0xff] }
 0x3ae   : > { %6240 = vst [vmem:[#allocation71_spill] sm:$0xff] %v5167_v56  ;;  %6241 = vst [vmem:[#allocation72_spill] sm:$0xff] %v5169_v6  ;;  %v1778_v6 = vmul.f32 %v4805_v48, %v6245_v47  ;;  %v6248_v56 = vld [vmem:[#allocation108_spill] sm:$0xff]  ;;  %v1782_v47 = vmul.f32 %v4805_v48, %v6249_v19  ;;  %v5218_v18 = vadd.f32 %v1775_v7, %v5032_v26  ;;  %v6254_v19 = vld [vmem:[#allocation113_spill] sm:$0xff] }
 0x3af   : > { %2918 = vbcast.lane.b32.xlu1 %v2912_v25, 264  ;;  %2914 = vbcast.lane.b32.xlu0 %v2912_v25, 256  ;;  %v1779_v59 = vmul.f32 %v4805_v48, %v6248_v56  ;;  %v5215_v56 = vadd.f32 %v1776_v0, %v5023_v41  ;;  %v1784_v31 = vmul.f32 %v4805_v48, %v6253_v53  ;;  %v6256_v0 = vld [vmem:[#allocation114_spill] sm:$0xff]  ;;  %v6259_v7 = vld [vmem:[#allocation112_spill] sm:$0xff] }
 0x3b0   : > { %v5223_v10 = vadd.f32 %v1778_v6, %v5035_v24  ;;  %v1786_v36 = vmul.f32 %v4805_v48, %v6254_v19  ;;  %v5230_v41 = vadd.f32 %v1777_v52, %v5046_v2  ;;  %v5233_v26 = vadd.f32 %v1780_v1, %v5049_v8  ;;  %v6261_v2 = vld [vmem:[#allocation115_spill] sm:$0xff] }
 0x3b1   : > { %v5207_v38 = vpop.permute.xlu1 %2391  ;;  %v5209_v45 = vpop.permute.xlu0 %2387  ;;  %v5236_v39 = vadd.f32 %v1779_v59, %v5052_v35  ;;  %v1785_v24 = vmul.f32 %v4805_v48, %v6256_v0  ;;  %v5241_v6 = vadd.f32 %v1782_v47, %v5063_v29  ;;  %v5248_v53 = vmul.f32 %v4805_v48, %v6259_v7  ;;  %v6265_v59 = vld [vmem:[#allocation116_spill] sm:$0xff]  ;;  %v6266_v47 = vld [vmem:[#allocation117_spill] sm:$0xff] }
 0x3b2   : > { %6251 = vst [vmem:[#allocation73_spill] sm:$0xff] %v5207_v38  ;;  %6252 = vst [vmem:[#allocation74_spill] sm:$0xff] %v5209_v45  ;;  %v6255_v45 = vld [vmem:[#allocation28_spill] sm:$0xff]  ;;  %v1979_v8 = vmul.f32 %v4923_v14, %v6261_v2  ;;  %v5257_v1 = vadd.f32 %v1784_v31, %v5069_v62  ;;  %v1978_v29 = vmul.f32 %v4923_v14, %v6265_v59  ;;  %v6268_v0 = vld [vmem:[#allocation145_spill] sm:$0xff] }
 0x3b3   : > { %2926 = vbcast.lane.b32.xlu1 %v2912_v25, 280  ;;  %2922 = vbcast.lane.b32.xlu0 %v2912_v25, 272  ;;  %v2931_v58 = vrot.slane %v6191_v9, %v6255_v45  ;;  %6257 = vst [vmem:[#allocation75_spill] sm:$0xff] %v5241_v6  ;;  %v5244_v25 = vadd.f32 %v1781_v55, %v5066_v46  ;;  %6260 = vst [vmem:[#allocation77_spill] sm:$0xff] %v5248_v53  ;;  %v6267_v55 = vld [vmem:[#allocation118_spill] sm:$0xff]  ;;  %v6270_v31 = vld [vmem:[#allocation119_spill] sm:$0xff] }
 0x3b4   : > { %6264 = vst [vmem:[#allocation80_spill] sm:$0xff] %v5257_v1  ;;  %v1981_v46 = vmul.f32 %v4923_v14, %v6266_v47  ;;  %v1980_v48 = vmul.f32 %v4923_v14, %v6267_v55  ;;  %v1818_v19 = vadd.f32 %v1786_v36, %v5077_v32  ;;  %v2009_v7 = vmul.f32 %v4923_v14, %v6268_v0  ;;  %v6269_v2 = vld [vmem:[#allocation146_spill] sm:$0xff]  ;;  %v6271_v1 = vld [vmem:[#allocation120_spill] sm:$0xff]  ;;  %v6272_v36 = vld [vmem:[#allocation121_spill] sm:$0xff] }
 0x3b5   : > { %6258 = vst [vmem:[#allocation76_spill] sm:$0xff] %v5244_v25  ;;  %v5252_v52 = vpop.permute.xlu1 %2399  ;;  %v5254_v35 = vpop.permute.xlu0 %2395  ;;  %v2008_v53 = vmul.f32 %v4923_v14, %v6269_v2  ;;  %v1817_v62 = vadd.f32 %v1785_v24, %v5088_v34  ;;  %v1983_v59 = vmul.f32 %v4923_v14, %v6270_v31  ;;  %v1982_v47 = vmul.f32 %v4923_v14, %v6271_v1  ;;  %v6273_v2 = vld [vmem:[#allocation177_spill] sm:$0xff]  ;;  %v6279_v6 = vld [vmem:[#allocation147_spill] sm:$0xff] }
 0x3b6   : > { %6262 = vst [vmem:[#allocation78_spill] sm:$0xff] %v5252_v52  ;;  %6263 = vst [vmem:[#allocation79_spill] sm:$0xff] %v5254_v35  ;;  %v5277_v55 = vrot.slane %v6188_v5, %v6255_v45  ;;  %v2011_v32 = vadd.f32 %v1979_v8, %v5097_v12  ;;  %v1985_v0 = vmul.f32 %v4923_v14, %v6272_v36  ;;  %v6274_v52 = vld [vmem:[#allocation178_spill] sm:$0xff] }
 0x3b7   : > { %2937 = vbcast.lane.b32.xlu1 %v2931_v58, 264  ;;  %2933 = vbcast.lane.b32.xlu0 %v2931_v58, 256  ;;  %v2232_v35 = vmul.f32 %v5104_v23, %v6273_v2  ;;  %v2231_v34 = vmul.f32 %v5104_v23, %v6274_v52  ;;  %v2010_v1 = vadd.f32 %v1978_v29, %v5100_v28  ;;  %v6277_v12 = vld [vmem:[#allocation122_spill] sm:$0xff]  ;;  %v6278_v2 = vld [vmem:[#allocation29_spill] sm:$0xff] }
 0x3b8   : > { %v2013_v45 = vadd.f32 %v1981_v46, %v5107_v57  ;;  %v2012_v25 = vadd.f32 %v1980_v48, %v5116_v21  ;;  %v1984_v8 = vmul.f32 %v4923_v14, %v6277_v12  ;;  %v2041_v36 = vadd.f32 %v2009_v7, %v1818_v19  ;;  %v6280_v57 = vld [vmem:[#allocation148_spill] sm:$0xff] }
 0x3b9   : > { %v5286_v24 = vpop.permute.xlu1 %2410  ;;  %v5288_v31 = vpop.permute.xlu0 %2406  ;;  %v2040_v38 = vadd.f32 %v2008_v53, %v1817_v62  ;;  %v2950_v52 = vrot.slane %v6191_v9, %v6278_v2  ;;  %v2202_v28 = vmul.f32 %v5104_v23, %v6279_v6  ;;  %v2201_v21 = vmul.f32 %v5104_v23, %v6280_v57  ;;  %v6282_v7 = vld [vmem:[#allocation180_spill] sm:$0xff] }
 0x3ba   : > { %6275 = vst [vmem:[#allocation81_spill] sm:$0xff] %v5286_v24  ;;  %6276 = vst [vmem:[#allocation82_spill] sm:$0xff] %v5288_v31  ;;  %v2015_v24 = vadd.f32 %v1983_v59, %v5119_v3  ;;  %v2014_v31 = vadd.f32 %v1982_v47, %v5130_v15  ;;  %v5304_v29 = vadd.f32 %v1985_v0, %v5133_v17  ;;  %v6281_v3 = vld [vmem:[#allocation179_spill] sm:$0xff]  ;;  %v6284_v47 = vld [vmem:[#allocation150_spill] sm:$0xff] }
 0x3bb   : > { %2945 = vbcast.lane.b32.xlu1 %v2931_v58, 280  ;;  %2941 = vbcast.lane.b32.xlu0 %v2931_v58, 272  ;;  %v2264_v46 = vadd.f32 %v2232_v35, %v2041_v36  ;;  %v2263_v53 = vadd.f32 %v2231_v34, %v2040_v38  ;;  %v5308_v19 = vrot.slane %v6188_v5, %v6278_v2  ;;  %v6283_v35 = vld [vmem:[#allocation149_spill] sm:$0xff]  ;;  %v6286_v2 = vld [vmem:[#allocation123_spill] sm:$0xff] }
 0x3bc   : > { %v2425_v15 = vmul.f32 %v5277_v55, %v6281_v3  ;;  %v2424_v6 = vmul.f32 %v5277_v55, %v6282_v7  ;;  %v2016_v17 = vadd.f32 %v1984_v8, %v5136_v61  ;;  %v2204_v38 = vmul.f32 %v5104_v23, %v6283_v35  ;;  %v6288_v8 = vld [vmem:[#allocation181_spill] sm:$0xff]  ;;  %v6289_v3 = vld [vmem:[#allocation182_spill] sm:$0xff] }
 0x3bd   : > { %v2419_v48 = vpop.permute.xlu1 %2418  ;;  %v2415_v58 = vpop.permute.xlu0 %2414  ;;  %v2203_v0 = vmul.f32 %v5104_v23, %v6284_v47  ;;  %v2234_v5 = vadd.f32 %v2202_v28, %v2011_v32  ;;  %v2233_v34 = vadd.f32 %v2201_v21, %v2010_v1  ;;  %v1987_v57 = vmul.f32 %v4923_v14, %v6286_v2  ;;  %v6291_v2 = vld [vmem:[#allocation151_spill] sm:$0xff] }
 0x3be   : > { %v2455_v62 = vmul.f32 %v5277_v55, %v2419_v48  ;;  %v2454_v59 = vmul.f32 %v5277_v55, %v2415_v58  ;;  %v6287_v48 = vld [vmem:[#allocation124_spill] sm:$0xff]  ;;  %v2427_v58 = vmul.f32 %v5277_v55, %v6288_v8  ;;  %v2426_v7 = vmul.f32 %v5277_v55, %v6289_v3 }
 0x3bf   : > { %2956 = vbcast.lane.b32.xlu1 %v2950_v52, 264  ;;  %2952 = vbcast.lane.b32.xlu0 %v2950_v52, 256  ;;  %v1986_v61 = vmul.f32 %v4923_v14, %v6287_v48  ;;  %v2457_v32 = vadd.f32 %v2425_v15, %v2234_v5  ;;  %v2456_v1 = vadd.f32 %v2424_v6, %v2233_v34  ;;  %v6292_v8 = vld [vmem:[#allocation152_spill] sm:$0xff]  ;;  %v6293_v5 = vld [vmem:[#allocation125_spill] sm:$0xff] }
 0x3c0   : > { %v5321_v12 = vadd.f32 %v2455_v62, %v2264_v46  ;;  %v5323_v36 = vadd.f32 %v2454_v59, %v2263_v53  ;;  %v2236_v46 = vadd.f32 %v2204_v38, %v2013_v45  ;;  %v2235_v53 = vadd.f32 %v2203_v0, %v2012_v25  ;;  %v6290_v62 = vld [vmem:[#allocation30_spill] sm:$0xff] }
 0x3c1   : > { %v2501_v35 = vpop.permute.xlu1 %2500  ;;  %v2497_v47 = vpop.permute.xlu0 %2496  ;;  %v2969_v59 = vrot.slane %v6191_v9, %v6290_v62  ;;  %v2206_v48 = vmul.f32 %v5104_v23, %v6291_v2  ;;  %v2205_v3 = vmul.f32 %v5104_v23, %v6292_v8  ;;  %v2019_v6 = vadd.f32 %v1987_v57, %v5147_v11  ;;  %v6294_v9 = vld [vmem:[#allocation183_spill] sm:$0xff]  ;;  %v6297_v57 = vld [vmem:[#allocation153_spill] sm:$0xff] }
 0x3c2   : > { %6285 = vst [vmem:[#allocation83_spill] sm:$0xff] %v5323_v36  ;;  %v2648_v28 = vmul.f32 %v5308_v19, %v2501_v35  ;;  %v2647_v21 = vmul.f32 %v5308_v19, %v2497_v47  ;;  %v1989_v25 = vmul.f32 %v4923_v14, %v6293_v5  ;;  %v2459_v45 = vadd.f32 %v2427_v58, %v2236_v46  ;;  %v6295_v35 = vld [vmem:[#allocation184_spill] sm:$0xff]  ;;  %v6298_v58 = vld [vmem:[#allocation154_spill] sm:$0xff] }
 0x3c3   : > { %2964 = vbcast.lane.b32.xlu1 %v2950_v52, 280  ;;  %2960 = vbcast.lane.b32.xlu0 %v2950_v52, 272  ;;  %v2458_v52 = vadd.f32 %v2426_v7, %v2235_v53  ;;  %v2429_v34 = vmul.f32 %v5277_v55, %v6294_v9  ;;  %v2428_v47 = vmul.f32 %v5277_v55, %v6295_v35 }
 0x3c4   : > { %v5341_v36 = vadd.f32 %v2648_v28, %v2457_v32  ;;  %v5343_v15 = vadd.f32 %v2647_v21, %v2456_v1  ;;  %v6296_v28 = vld [vmem:[#allocation126_spill] sm:$0xff]  ;;  %v2208_v21 = vmul.f32 %v5104_v23, %v6297_v57  ;;  %v2207_v7 = vmul.f32 %v5104_v23, %v6298_v58 }
 0x3c5   : > { %v2509_v38 = vpop.permute.xlu1 %2508  ;;  %v2505_v0 = vpop.permute.xlu0 %2504  ;;  %v1988_v11 = vmul.f32 %v4923_v14, %v6296_v28  ;;  %v2238_v46 = vadd.f32 %v2206_v48, %v2015_v24  ;;  %v2237_v53 = vadd.f32 %v2205_v3, %v2014_v31  ;;  %v2018_v8 = vadd.f32 %v1986_v61, %v5150_v37  ;;  %v6300_v3 = vld [vmem:[#allocation156_spill] sm:$0xff] }
 0x3c6   : > { %v2650_v32 = vmul.f32 %v5308_v19, %v2509_v38  ;;  %v2649_v1 = vmul.f32 %v5308_v19, %v2505_v0  ;;  %v2021_v5 = vadd.f32 %v1989_v25, %v5153_v4  ;;  %v2431_v38 = vmul.f32 %v5277_v55, %v4837_v60  ;;  %v6299_v4 = vld [vmem:[#allocation155_spill] sm:$0xff] }
 0x3c7   : > { %2975 = vbcast.lane.b32.xlu1 %v2969_v59, 264  ;;  %2971 = vbcast.lane.b32.xlu0 %v2969_v59, 256  ;;  %v2430_v0 = vmul.f32 %v5277_v55, %v4839_v16  ;;  %v2461_v28 = vadd.f32 %v2429_v34, %v2238_v46  ;;  %v2460_v57 = vadd.f32 %v2428_v47, %v2237_v53  ;;  %v6302_v47 = vld [vmem:[#allocation128_spill] sm:$0xff]  ;;  %v6304_v46 = vld [vmem:[#allocation129_spill] sm:$0xff] }
 0x3c8   : > { %v5360_v62 = vadd.f32 %v2650_v32, %v2459_v45  ;;  %v5362_v2 = vadd.f32 %v2649_v1, %v2458_v52  ;;  %v2020_v48 = vadd.f32 %v1988_v11, %v5158_v51  ;;  %v2240_v37 = vadd.f32 %v2208_v21, %v5304_v29  ;;  %v6301_v52 = vld [vmem:[#allocation127_spill] sm:$0xff]  ;;  %v6303_v11 = vld [vmem:[#allocation185_spill] sm:$0xff] }
 0x3c9   : > { %v2520_v9 = vpop.permute.xlu1 %2519  ;;  %v2516_v35 = vpop.permute.xlu0 %2515  ;;  %v2239_v61 = vadd.f32 %v2207_v7, %v2016_v17  ;;  %v2210_v60 = vmul.f32 %v5104_v23, %v6299_v4  ;;  %v2209_v16 = vmul.f32 %v5104_v23, %v6300_v3  ;;  %v1991_v34 = vmul.f32 %v4923_v14, %v6301_v52  ;;  %v6308_v3 = vld [vmem:[#allocation186_spill] sm:$0xff] }
 0x3ca   : > { %v2652_v24 = vmul.f32 %v5308_v19, %v2520_v9  ;;  %v2651_v31 = vmul.f32 %v5308_v19, %v2516_v35  ;;  %v1990_v51 = vmul.f32 %v4923_v14, %v6302_v47  ;;  %v2463_v29 = vadd.f32 %v2431_v38, %v2240_v37  ;;  %v6305_v9 = vld [vmem:[#allocation130_spill] sm:$0xff]  ;;  %v6306_v38 = vld [vmem:[#allocation157_spill] sm:$0xff] }
 0x3cb   : > { %2983 = vbcast.lane.b32.xlu1 %v2969_v59, 280  ;;  %2979 = vbcast.lane.b32.xlu0 %v2969_v59, 272  ;;  %v2462_v17 = vadd.f32 %v2430_v0, %v2239_v61  ;;  %v2433_v1 = vmul.f32 %v5277_v55, %v4885_v22  ;;  %v2432_v21 = vmul.f32 %v5277_v55, %v6303_v11 }
 0x3cc   : > { %v5378_v25 = vadd.f32 %v2652_v24, %v2461_v28  ;;  %v5380_v45 = vadd.f32 %v2651_v31, %v2460_v57  ;;  %v1993_v53 = vmul.f32 %v4923_v14, %v6304_v46  ;;  %v1992_v35 = vmul.f32 %v4923_v14, %v6305_v9  ;;  %v6307_v28 = vld [vmem:[#allocation158_spill] sm:$0xff] }
 0x3cd   : > { %v2528_v32 = vpop.permute.xlu1 %2527  ;;  %v2524_v59 = vpop.permute.xlu0 %2523  ;;  %v2212_v0 = vmul.f32 %v5104_v23, %v6306_v38  ;;  %v2211_v57 = vmul.f32 %v5104_v23, %v6307_v28  ;;  %v2242_v22 = vadd.f32 %v2210_v60, %v2019_v6  ;;  %v2241_v24 = vadd.f32 %v2209_v16, %v2018_v8  ;;  %v6313_v28 = vld [vmem:[#allocation133_spill] sm:$0xff] }
 0x3ce   : > { %v2654_v58 = vmul.f32 %v5308_v19, %v2528_v32  ;;  %v2653_v7 = vmul.f32 %v5308_v19, %v2524_v59  ;;  %v2023_v61 = vadd.f32 %v1991_v34, %v5161_v33  ;;  %v2022_v4 = vadd.f32 %v1990_v51, %v5172_v43  ;;  %v6309_v34 = vld [vmem:[#allocation159_spill] sm:$0xff] }
 0x3cf   : > { %v2435_v52 = vmul.f32 %v5277_v55, %v6308_v3  ;;  %v2434_v47 = vmul.f32 %v5277_v55, %v4927_v42  ;;  %v2465_v11 = vadd.f32 %v2433_v1, %v2242_v22  ;;  %v2464_v46 = vadd.f32 %v2432_v21, %v2241_v24  ;;  %v6311_v21 = vld [vmem:[#allocation131_spill] sm:$0xff]  ;;  %v6314_v22 = vld [vmem:[#allocation134_spill] sm:$0xff]  ;;  %v6315_v3 = vld [vmem:[#allocation161_spill] sm:$0xff] }
 0x3d0   : > { %v5400_v31 = vadd.f32 %v2654_v58, %v2463_v29  ;;  %v5402_v37 = vadd.f32 %v2653_v7, %v2462_v17  ;;  %v2025_v60 = vadd.f32 %v1993_v53, %v5181_v63  ;;  %v2024_v33 = vadd.f32 %v1992_v35, %v5184_v44  ;;  %v6310_v29 = vld [vmem:[#allocation160_spill] sm:$0xff] }
 0x3d1   : > { %v2539_v32 = vpop.permute.xlu1 %2538  ;;  %v2535_v59 = vpop.permute.xlu0 %2534  ;;  %v2244_v16 = vadd.f32 %v2212_v0, %v2021_v5  ;;  %v2243_v43 = vadd.f32 %v2211_v57, %v2020_v48  ;;  %v2214_v51 = vmul.f32 %v5104_v23, %v6309_v34  ;;  %v2213_v42 = vmul.f32 %v5104_v23, %v6310_v29  ;;  %v6312_v7 = vld [vmem:[#allocation132_spill] sm:$0xff] }
 0x3d2   : > { %v2656_v6 = vmul.f32 %v5308_v19, %v2539_v32  ;;  %v2655_v8 = vmul.f32 %v5308_v19, %v2535_v59  ;;  %v1995_v58 = vmul.f32 %v4923_v14, %v6311_v21  ;;  %v1994_v63 = vmul.f32 %v4923_v14, %v6312_v7 }
 0x3d3   : > { %v2467_v53 = vadd.f32 %v2435_v52, %v2244_v16  ;;  %v2466_v44 = vadd.f32 %v2434_v47, %v2243_v43  ;;  %v2437_v9 = vmul.f32 %v5277_v55, %v4959_v20  ;;  %v2436_v35 = vmul.f32 %v5277_v55, %v4961_v27  ;;  %v6316_v47 = vld [vmem:[#allocation162_spill] sm:$0xff]  ;;  %v6317_v16 = vld [vmem:[#allocation64_spill] sm:$0xff] }
 0x3d4   : > { %v5418_v17 = vadd.f32 %v2656_v6, %v2465_v11  ;;  %v5420_v1 = vadd.f32 %v2655_v8, %v2464_v46  ;;  %v1997_v57 = vmul.f32 %v4923_v14, %v6313_v28  ;;  %v1996_v24 = vmul.f32 %v4923_v14, %v6314_v22 }
 0x3d5   : > { %v2547_v5 = vpop.permute.xlu1 %2546  ;;  %v2543_v48 = vpop.permute.xlu0 %2542  ;;  %v2216_v52 = vmul.f32 %v5104_v23, %v6315_v3  ;;  %v2215_v32 = vmul.f32 %v5104_v23, %v6316_v47  ;;  %v2246_v20 = vadd.f32 %v2214_v51, %v2023_v61  ;;  %v2245_v59 = vadd.f32 %v2213_v42, %v2022_v4  ;;  %v6323_v3 = vld [vmem:[#allocation137_spill] sm:$0xff]  ;;  %v6324_v47 = vld [vmem:[#allocation138_spill] sm:$0xff] }
 0x3d6   : > { %v2658_v38 = vmul.f32 %v5308_v19, %v2547_v5  ;;  %v2657_v0 = vmul.f32 %v5308_v19, %v2543_v48  ;;  %v2027_v46 = vadd.f32 %v1995_v58, %v5189_v49  ;;  %v2026_v6 = vadd.f32 %v1994_v63, %v5198_v13  ;;  %v6318_v58 = vld [vmem:[#allocation163_spill] sm:$0xff]  ;;  %v6319_v63 = vld [vmem:[#allocation164_spill] sm:$0xff] }
 0x3d7   : > { %v2439_v8 = vmul.f32 %v5277_v55, %v5000_v40  ;;  %v2438_v43 = vmul.f32 %v5277_v55, %v6317_v16  ;;  %v2469_v21 = vadd.f32 %v2437_v9, %v2246_v20  ;;  %v2468_v7 = vadd.f32 %v2436_v35, %v2245_v59  ;;  %v6320_v48 = vld [vmem:[#allocation135_spill] sm:$0xff]  ;;  %v6321_v35 = vld [vmem:[#allocation136_spill] sm:$0xff]  ;;  %v6325_v20 = vld [vmem:[#allocation165_spill] sm:$0xff] }
 0x3d8   : > { %v5440_v11 = vadd.f32 %v2658_v38, %v2467_v53  ;;  %v5442_v27 = vadd.f32 %v2657_v0, %v2466_v44  ;;  %v2029_v51 = vadd.f32 %v1997_v57, %v5201_v50  ;;  %v2028_v49 = vadd.f32 %v1996_v24, %v5212_v54  ;;  %v6322_v0 = vld [vmem:[#allocation65_spill] sm:$0xff] }
 0x3d9   : > { %v2558_v34 = vpop.permute.xlu1 %2557  ;;  %v2554_v29 = vpop.permute.xlu0 %2553  ;;  %v2248_v42 = vadd.f32 %v2216_v52, %v2025_v60  ;;  %v2247_v13 = vadd.f32 %v2215_v32, %v2024_v33  ;;  %v2218_v40 = vmul.f32 %v5104_v23, %v6318_v58  ;;  %v2217_v53 = vmul.f32 %v5104_v23, %v6319_v63 }
 0x3da   : > { %v2660_v61 = vmul.f32 %v5308_v19, %v2558_v34  ;;  %v2659_v4 = vmul.f32 %v5308_v19, %v2554_v29  ;;  %v1999_v9 = vmul.f32 %v4923_v14, %v6320_v48  ;;  %v1998_v50 = vmul.f32 %v4923_v14, %v6321_v35 }
 0x3db   : > { %v2471_v38 = vadd.f32 %v2439_v8, %v2248_v42  ;;  %v2470_v54 = vadd.f32 %v2438_v43, %v2247_v13  ;;  %v2441_v28 = vmul.f32 %v5277_v55, %v6322_v0  ;;  %v2440_v57 = vmul.f32 %v5277_v55, %v5043_v30  ;;  %v6326_v8 = vld [vmem:[#allocation166_spill] sm:$0xff]  ;;  %v6328_v42 = vld [vmem:[#allocation68_spill] sm:$0xff]  ;;  %v6331_v0 = vld [vmem:[#allocation139_spill] sm:$0xff] }
 0x3dc   : > { %v5458_v44 = vadd.f32 %v2660_v61, %v2469_v21  ;;  %v5460_v5 = vadd.f32 %v2659_v4, %v2468_v7  ;;  %v2001_v52 = vmul.f32 %v4923_v14, %v6323_v3  ;;  %v2000_v32 = vmul.f32 %v4923_v14, %v6324_v47  ;;  %v6327_v61 = vld [vmem:[#allocation67_spill] sm:$0xff]  ;;  %v6333_v3 = vld [vmem:[#allocation70_spill] sm:$0xff] }
 0x3dd   : > { %v2566_v60 = vpop.permute.xlu1 %2565  ;;  %v2562_v33 = vpop.permute.xlu0 %2561  ;;  %v2220_v59 = vmul.f32 %v5104_v23, %v6325_v20  ;;  %v2219_v16 = vmul.f32 %v5104_v23, %v6326_v8  ;;  %v2250_v43 = vadd.f32 %v2218_v40, %v2027_v46  ;;  %v2249_v34 = vadd.f32 %v2217_v53, %v2026_v6  ;;  %v6335_v8 = vld [vmem:[#allocation169_spill] sm:$0xff] }
 0x3de   : > { %v2662_v22 = vmul.f32 %v5308_v19, %v2566_v60  ;;  %v2661_v24 = vmul.f32 %v5308_v19, %v2562_v33  ;;  %v2031_v21 = vadd.f32 %v1999_v9, %v5215_v56  ;;  %v2030_v7 = vadd.f32 %v1998_v50, %v5218_v18  ;;  %v6329_v9 = vld [vmem:[#allocation167_spill] sm:$0xff] }
 0x3df   : > { %v2443_v4 = vmul.f32 %v5277_v55, %v6327_v61  ;;  %v2442_v13 = vmul.f32 %v5277_v55, %v6328_v42  ;;  %v2473_v48 = vadd.f32 %v2441_v28, %v2250_v43  ;;  %v2472_v35 = vadd.f32 %v2440_v57, %v2249_v34  ;;  %v6336_v43 = vld [vmem:[#allocation170_spill] sm:$0xff] }
 0x3e0   : > { %v5480_v29 = vadd.f32 %v2662_v22, %v2471_v38  ;;  %v5482_v30 = vadd.f32 %v2661_v24, %v2470_v54  ;;  %v2033_v40 = vadd.f32 %v2001_v52, %v5223_v10  ;;  %v2252_v53 = vadd.f32 %v2220_v59, %v2029_v51  ;;  %v6330_v38 = vld [vmem:[#allocation168_spill] sm:$0xff] }
 0x3e1   : > { %v2577_v58 = vpop.permute.xlu1 %2576  ;;  %v2573_v63 = vpop.permute.xlu0 %2572  ;;  %v2251_v56 = vadd.f32 %v2219_v16, %v2028_v49  ;;  %v2222_v18 = vmul.f32 %v5104_v23, %v6329_v9  ;;  %v2032_v50 = vadd.f32 %v2000_v32, %v5230_v41  ;;  %v2221_v54 = vmul.f32 %v5104_v23, %v6330_v38  ;;  %v6332_v49 = vld [vmem:[#allocation69_spill] sm:$0xff]  ;;  %v6334_v32 = vld [vmem:[#allocation140_spill] sm:$0xff] }
 0x3e2   : > { %v2664_v46 = vmul.f32 %v5308_v19, %v2577_v58  ;;  %v2663_v6 = vmul.f32 %v5308_v19, %v2573_v63  ;;  %v2003_v28 = vmul.f32 %v4923_v14, %v6331_v0  ;;  %v2475_v57 = vadd.f32 %v2443_v4, %v2252_v53  ;;  %v6340_v0 = vld [vmem:[#allocation142_spill] sm:$0xff] }
 0x3e3   : > { %v2474_v22 = vadd.f32 %v2442_v13, %v2251_v56  ;;  %v2445_v24 = vmul.f32 %v5277_v55, %v6332_v49  ;;  %v2444_v41 = vmul.f32 %v5277_v55, %v6333_v3  ;;  %v2002_v20 = vmul.f32 %v4923_v14, %v6334_v32 }
 0x3e4   : > { %v5498_v60 = vadd.f32 %v2664_v46, %v2473_v48  ;;  %v5500_v33 = vadd.f32 %v2663_v6, %v2472_v35  ;;  %v2254_v59 = vadd.f32 %v2222_v18, %v2031_v21  ;;  %v2224_v16 = vmul.f32 %v5104_v23, %v6335_v8  ;;  %v6337_v48 = vld [vmem:[#allocation141_spill] sm:$0xff]  ;;  %v6338_v46 = vld [vmem:[#allocation71_spill] sm:$0xff]  ;;  %v6339_v6 = vld [vmem:[#allocation72_spill] sm:$0xff] }
 0x3e5   : > { %v2585_v10 = vpop.permute.xlu1 %2584  ;;  %v2581_v51 = vpop.permute.xlu0 %2580  ;;  %v2223_v34 = vmul.f32 %v5104_v23, %v6336_v43  ;;  %v2253_v61 = vadd.f32 %v2221_v54, %v2030_v7  ;;  %v3694_v13 = vmov 1966171168   ;;  %v2035_v63 = vadd.f32 %v2003_v28, %v5233_v26 }
 0x3e6   : > { %v2666_v52 = vmul.f32 %v5308_v19, %v2585_v10  ;;  %v2665_v47 = vmul.f32 %v5308_v19, %v2581_v51  ;;  %v2714_v58 = vunpack.c.l.s4 %v3694_v13  ;;  %v2005_v35 = vmul.f32 %v4923_v14, %v6337_v48  ;;  %v6342_v51 = vld [vmem:[#allocation172_spill] sm:$0xff] }
 0x3e7   : > { %v2447_v21 = vmul.f32 %v5277_v55, %v6338_v46  ;;  %v2446_v53 = vmul.f32 %v5277_v55, %v6339_v6  ;;  %v2477_v7 = vadd.f32 %v2445_v24, %v2254_v59  ;;  %v2476_v18 = vadd.f32 %v2444_v41, %v2253_v61  ;;  %v6346_v46 = vld [vmem:[#allocation76_spill] sm:$0xff] }
 0x3e8   : > { %v5516_v4 = vadd.f32 %v2666_v52, %v2475_v57  ;;  %v5518_v42 = vadd.f32 %v2665_v47, %v2474_v22  ;;  %v2004_v26 = vmul.f32 %v4923_v14, %v6340_v0  ;;  %v2256_v28 = vadd.f32 %v2224_v16, %v2033_v40  ;;  %v6341_v22 = vld [vmem:[#allocation171_spill] sm:$0xff]  ;;  %v6351_v0 = vld [vmem:[#allocation144_spill] sm:$0xff] }
 0x3e9   : > { %v2596_v56 = vpop.permute.xlu1 %2595  ;;  %v2592_v9 = vpop.permute.xlu0 %2591  ;;  %v2255_v57 = vadd.f32 %v2223_v34, %v2032_v50  ;;  %v2226_v10 = vmul.f32 %v5104_v23, %v6341_v22  ;;  %v2225_v49 = vmul.f32 %v5104_v23, %v6342_v51  ;;  %v2715_v24 = vunpack.c.0.s8 %v2714_v58  ;;  %v6343_v47 = vld [vmem:[#allocation75_spill] sm:$0xff]  ;;  %v6344_v50 = vld [vmem:[#allocation73_spill] sm:$0xff]  ;;  %v6345_v34 = vld [vmem:[#allocation74_spill] sm:$0xff] }
 0x3ea   : > { %v2668_v38 = vmul.f32 %v5308_v19, %v2596_v56  ;;  %v2667_v54 = vmul.f32 %v5308_v19, %v2592_v9  ;;  %v2034_v41 = vadd.f32 %v2002_v20, %v5236_v39  ;;  %v2037_v32 = vadd.f32 %v2005_v35, %v6343_v47  ;;  %v6347_v39 = vld [vmem:[#allocation173_spill] sm:$0xff]  ;;  %v6348_v35 = vld [vmem:[#allocation174_spill] sm:$0xff] }
 0x3eb   : > { %v2479_v59 = vadd.f32 %v2447_v21, %v2256_v28  ;;  %v2478_v8 = vadd.f32 %v2446_v53, %v2255_v57  ;;  %v2449_v16 = vmul.f32 %v5277_v55, %v6344_v50  ;;  %v2448_v61 = vmul.f32 %v5277_v55, %v6345_v34  ;;  %v6353_v57 = vld [vmem:[#allocation79_spill] sm:$0xff] }
 0x3ec   : > { %v5535_v3 = vadd.f32 %v2668_v38, %v2477_v7  ;;  %v5537_v52 = vadd.f32 %v2667_v54, %v2476_v18  ;;  %v2036_v58 = vadd.f32 %v2004_v26, %v6346_v46  ;;  %v2258_v6 = vadd.f32 %v2226_v10, %v2035_v63  ;;  %v6349_v7 = vld [vmem:[#allocation16_spill] sm:$0xff]  ;;  %v6350_v38 = vld [vmem:[#allocation143_spill] sm:$0xff]  ;;  %v6352_v26 = vld [vmem:[#allocation78_spill] sm:$0xff] }
 0x3ed   : > { %v2604_v43 = vpop.permute.xlu1 %2603  ;;  %v2600_v40 = vpop.permute.xlu0 %2599  ;;  %v2228_v20 = vmul.f32 %v5104_v23, %v6347_v39  ;;  %v2227_v21 = vmul.f32 %v5104_v23, %v6348_v35  ;;  %v2257_v53 = vadd.f32 %v2225_v49, %v2034_v41  ;;  %v5557_v18 = vsub.s32 %v2715_v24, %v6349_v7 }
 0x3ee   : > { %v2670_v13 = vmul.f32 %v5308_v19, %v2604_v43  ;;  %v2669_v48 = vmul.f32 %v5308_v19, %v2600_v40  ;;  %v2007_v54 = vmul.f32 %v4923_v14, %v6350_v38  ;;  %v2006_v63 = vmul.f32 %v4923_v14, %v6351_v0  ;;  %v6356_v14 = vld [vmem:[#allocation175_spill] sm:$0xff]  ;;  %v6361_v0 = vld [vmem:[#allocation82_spill] sm:$0xff] }
 0x3ef   : > { %v2451_v28 = vmul.f32 %v5277_v55, %v6352_v26  ;;  %v2450_v22 = vmul.f32 %v5277_v55, %v6353_v57  ;;  %v2481_v49 = vadd.f32 %v2449_v16, %v2258_v6  ;;  %v2480_v41 = vadd.f32 %v2448_v61, %v2257_v53  ;;  %v6358_v16 = vld [vmem:[#allocation24_spill] sm:$0xff] }
 0x3f0   : > { %v5552_v56 = vadd.f32 %v2670_v13, %v2479_v59  ;;  %v5554_v9 = vadd.f32 %v2669_v48, %v2478_v8  ;;  %v6354_v59 = vld [vmem:[#allocation66_spill] sm:$0xff]  ;;  %v6355_v8 = vld [vmem:[#allocation77_spill] sm:$0xff]  ;;  %v2260_v40 = vadd.f32 %v2228_v20, %v2037_v32  ;;  %v2259_v50 = vadd.f32 %v2227_v21, %v2036_v58  ;;  %v6357_v13 = vld [vmem:[#allocation176_spill] sm:$0xff] }
 0x3f1   : > { %v2615_v10 = vpop.permute.xlu1 %2614  ;;  %v2611_v51 = vpop.permute.xlu0 %2610  ;;  %v1815_v43 = vadd.f32 %v6355_v8, %v6354_v59  ;;  %v2230_v34 = vmul.f32 %v5104_v23, %v6356_v14  ;;  %v2229_v48 = vmul.f32 %v5104_v23, %v6357_v13  ;;  %v2719_v61 = vrot.slane %v6358_v16, %v5557_v18  ;;  %v6359_v6 = vld [vmem:[#allocation80_spill] sm:$0xff]  ;;  %v6360_v20 = vld [vmem:[#allocation81_spill] sm:$0xff] }
 0x3f2   : > { %v2672_v47 = vmul.f32 %v5308_v19, %v2615_v10  ;;  %v2671_v24 = vmul.f32 %v5308_v19, %v2611_v51  ;;  %v2039_v35 = vadd.f32 %v2007_v54, %v6359_v6  ;;  %v2483_v7 = vadd.f32 %v2451_v28, %v2260_v40  ;;  %v6362_v40 = vld [vmem:[#allocation17_spill] sm:$0xff]  ;;  %v6363_v6 = vld [vmem:[#allocation23_spill] sm:$0xff] }
 0x3f3   : > { %v2038_v53 = vadd.f32 %v2006_v63, %v1815_v43  ;;  %v2482_v38 = vadd.f32 %v2450_v22, %v2259_v50  ;;  %v2453_v21 = vmul.f32 %v5277_v55, %v6360_v20  ;;  %v2452_v23 = vmul.f32 %v5277_v55, %v6361_v0  ;;  %v6366_v20 = vld [vmem:[#allocation18_spill] sm:$0xff] }
 0x3f4   : > { %v5575_v46 = vadd.f32 %v2672_v47, %v2481_v49  ;;  %v5577_v39 = vadd.f32 %v2671_v24, %v2480_v41  ;;  %v2262_v10 = vadd.f32 %v2230_v34, %v2039_v35  ;;  %v2735_v63 = vrot.slane %v2719_v61, %v5557_v18 }
 0x3f5   : > { %v2623_v32 = vpop.permute.xlu1 %2622  ;;  %v2619_v58 = vpop.permute.xlu0 %2618  ;;  %v2261_v51 = vadd.f32 %v2229_v48, %v2038_v53  ;;  %v2727_v59 = vcombine.high %v2719_v61, %v2719_v61  ;;  %v5604_v35 = vrot.slane %v6363_v6, %v6362_v40 }
 0x3f6   : > { %v2674_v26 = vmul.f32 %v5308_v19, %v2623_v32  ;;  %v2673_v57 = vmul.f32 %v5308_v19, %v2619_v58  ;;  %v2485_v41 = vadd.f32 %v2453_v21, %v2262_v10  ;;  %v2764_v50 = vrot.slane %v2735_v63, %v6362_v40  ;;  %v6365_v32 = vld [vmem:[#allocation19_spill] sm:$0xff] }
 0x3f7   : > { %v2484_v47 = vadd.f32 %v2452_v23, %v2261_v51  ;;  %v5607_v53 = vrot.slane %v2727_v59, %v5557_v18  ;;  %v2757_v6 = vcombine.high %v2735_v63, %v2735_v63 }
 0x3f8   : > { %v5588_v49 = vadd.f32 %v2674_v26, %v2483_v7  ;;  %v5590_v54 = vadd.f32 %v2673_v57, %v2482_v38  ;;  %v6364_v7 = vld [vmem:[#allocation83_spill] sm:$0xff]  ;;  %v2802_v58 = vadd.f32 %v2764_v50, %v6365_v32  ;;  %v2801_v21 = vadd.f32 %v2764_v50, %v6366_v20 }
 0x3f9   : > { %v2634_v28 = vpop.permute.xlu1 %2633  ;;  %v2630_v22 = vpop.permute.xlu0 %2629  ;;  %v2768_v57 = vrot.slane %v5607_v53, %v6362_v40 }
 0x3fa   : > { %v2676_v24 = vmul.f32 %v5308_v19, %v2634_v28  ;;  %v2675_v55 = vmul.f32 %v5308_v19, %v2630_v22  ;;  %v6368_v22 = vld [vmem:[#allocation20_spill] sm:$0xff] }
 0x3fc   : > { %v5595_v8 = vadd.f32 %v2676_v24, %v2485_v41  ;;  %v5597_v43 = vadd.f32 %v2675_v55, %v2484_v47  ;;  %v2803_v41 = vadd.f32 %v2764_v50, %v6368_v22 }
 0x3fd   : > { %v2642_v14 = vpop.permute.xlu1 %2641  ;;  %v2638_v34 = vpop.permute.xlu0 %2637 }
 0x3fe   : > { %v2678_v13 = vmul.f32 %v5308_v19, %v2642_v14  ;;  %v2677_v48 = vmul.f32 %v5308_v19, %v2638_v34 }
 0x400   : > { %v5610_v61 = vadd.f32 %v2678_v13, %v5321_v12  ;;  %v5613_v38 = vadd.f32 %v2677_v48, %v6364_v7  ;;  %v6367_v12 = vld [vmem:[#allocation21_spill] sm:$0xff]  ;;  %v2806_v13 = vadd.f32 %v2768_v57, %v6365_v32  ;;  %v2805_v48 = vadd.f32 %v2768_v57, %v6366_v20  ;;  %v6369_v7 = vld [vmem:[#allocation32_spill] sm:$0xff] }
 0x401   : > { %v2843_v0 = vpop.permute.xlu1 %2842  ;;  %v2839_v23 = vpop.permute.xlu0 %2838  ;;  %v2804_v28 = vadd.f32 %v2764_v50, %v6367_v12 }
 0x402   : > { %v2992_v19 = vmul.f32 %v5604_v35, %v2843_v0  ;;  %v2991_v26 = vmul.f32 %v5604_v35, %v2839_v23 }
 0x404   : > { %v3024_v10 = vadd.f32 %v2992_v19, %v2802_v58  ;;  %v3023_v51 = vadd.f32 %v2991_v26, %v2801_v21  ;;  %v6370_v58 = vld [vmem:[#allocation31_spill] sm:$0xff] }
 0x405   : > { %v2851_v47 = vpop.permute.xlu1 %2850  ;;  %v2847_v24 = vpop.permute.xlu0 %2846 }
 0x406   : > { %v3056_v55 = vadd.f32 %v3024_v10, %v5341_v36  ;;  %v3055_v59 = vadd.f32 %v3023_v51, %v5343_v15  ;;  %v2994_v14 = vmul.f32 %v5604_v35, %v2851_v47  ;;  %v2993_v34 = vmul.f32 %v5604_v35, %v2847_v24  ;;  %v6371_v47 = vld [vmem:[#allocation34_spill] sm:$0xff] }
 0x407   : > { %v2808_v51 = vadd.f32 %v2768_v57, %v6367_v12 }
 0x408   : > { %v3088_v50 = vmul.f32 %v3056_v55, %v6369_v7  ;;  %v3087_v21 = vmul.f32 %v3055_v59, %v6370_v58  ;;  %v3026_v0 = vadd.f32 %v2994_v14, %v2804_v28  ;;  %v3025_v23 = vadd.f32 %v2993_v34, %v2803_v41  ;;  %v6372_v55 = vld [vmem:[#allocation33_spill] sm:$0xff] }
 0x409   : > { %v2862_v19 = vpop.permute.xlu1 %2861  ;;  %v2858_v36 = vpop.permute.xlu0 %2857  ;;  %v2807_v28 = vadd.f32 %v2768_v57, %v6368_v22  ;;  %v2772_v41 = vrot.slane %v2757_v6, %v6362_v40 }
 0x40a   : > { %3121 = vst.msk [vmem:[%s4078_s16 + $0x8] sm:$0xff] %vm3119_vm12, %v3088_v50  ;;  %3120 = vst.msk [vmem:[%s4078_s16] sm:$0xff] %vm3119_vm12, %v3087_v21  ;;  %v3058_v15 = vadd.f32 %v3026_v0, %v5360_v62  ;;  %v3057_v26 = vadd.f32 %v3025_v23, %v5362_v2  ;;  %v2996_v63 = vmul.f32 %v5604_v35, %v2862_v19  ;;  %v6373_v0 = vld [vmem:[#allocation36_spill] sm:$0xff]  ;;  %v6374_v19 = vld [vmem:[#allocation35_spill] sm:$0xff] }
 0x40b   : > { %v2995_v10 = vmul.f32 %v5604_v35, %v2858_v36  ;;  %v2810_v58 = vadd.f32 %v2772_v41, %v6365_v32  ;;  %v2712_v21 = vcombine.high %v6358_v16, %v6358_v16 }
 0x40c   : > { %v3090_v24 = vmul.f32 %v3058_v15, %v6371_v47  ;;  %v3089_v59 = vmul.f32 %v3057_v26, %v6372_v55  ;;  %v3028_v14 = vadd.f32 %v2996_v63, %v2806_v13  ;;  %v2809_v13 = vadd.f32 %v2772_v41, %v6366_v20  ;;  %v6375_v55 = vld [vmem:[#allocation38_spill] sm:$0xff] }
 0x40d   : > { %v3027_v34 = vadd.f32 %v2995_v10, %v2805_v48  ;;  %v2870_v7 = vpop.permute.xlu1 %2869  ;;  %v2866_v62 = vpop.permute.xlu0 %2865  ;;  %v2759_v48 = vcombine.high %v5607_v53, %v5607_v53  ;;  %v2812_v47 = vadd.f32 %v2772_v41, %v6367_v12 }
 0x40e   : > { %3123 = vst.msk [vmem:[%s4078_s16 + $0x18] sm:$0xff] %vm3119_vm12, %v3090_v24  ;;  %3122 = vst.msk [vmem:[%s4078_s16 + $0x10] sm:$0xff] %vm3119_vm12, %v3089_v59  ;;  %v3060_v2 = vadd.f32 %v3028_v14, %v5378_v25  ;;  %v2998_v6 = vmul.f32 %v5604_v35, %v2870_v7  ;;  %v2997_v50 = vmul.f32 %v5604_v35, %v2866_v62  ;;  %v6376_v14 = vld [vmem:[#allocation37_spill] sm:$0xff] }
 0x40f   : > { %v3059_v57 = vadd.f32 %v3027_v34, %v5380_v45  ;;  %v2726_v24 = vrot.slane %v2712_v21, %v5557_v18 }
 0x410   : > { %v3092_v23 = vmul.f32 %v3060_v2, %v6373_v0  ;;  %v3030_v36 = vadd.f32 %v2998_v6, %v2808_v51  ;;  %v3029_v45 = vadd.f32 %v2997_v50, %v2807_v28  ;;  %v2811_v51 = vadd.f32 %v2772_v41, %v6368_v22  ;;  %v6378_v0 = vld [vmem:[#allocation39_spill] sm:$0xff] }
 0x411   : > { %v3091_v25 = vmul.f32 %v3059_v57, %v6374_v19  ;;  %v2881_v15 = vpop.permute.xlu1 %2880  ;;  %v2877_v26 = vpop.permute.xlu0 %2876  ;;  %v2776_v28 = vrot.slane %v2759_v48, %v6362_v40  ;;  %v6377_v48 = vld [vmem:[#allocation40_spill] sm:$0xff] }
 0x412   : > { %3125 = vst.msk [vmem:[%s4078_s16 + $0x28] sm:$0xff] %vm3119_vm12, %v3092_v23  ;;  %v3062_v63 = vadd.f32 %v3030_v36, %v5400_v31  ;;  %v3061_v53 = vadd.f32 %v3029_v45, %v5402_v37  ;;  %v3000_v16 = vmul.f32 %v5604_v35, %v2881_v15  ;;  %v2999_v10 = vmul.f32 %v5604_v35, %v2877_v26 }
 0x413   : > { %3124 = vst.msk [vmem:[%s4078_s16 + $0x20] sm:$0xff] %vm3119_vm12, %v3091_v25  ;;  %v2814_v50 = vadd.f32 %v2776_v28, %v6365_v32 }
 0x414   : > { %v3094_v59 = vmul.f32 %v3062_v63, %v6375_v55  ;;  %v3093_v34 = vmul.f32 %v3061_v53, %v6376_v14  ;;  %v3032_v7 = vadd.f32 %v3000_v16, %v2810_v58  ;;  %v3031_v31 = vadd.f32 %v2999_v10, %v2809_v13  ;;  %v6380_v55 = vld [vmem:[#allocation41_spill] sm:$0xff] }
 0x415   : > { %v2889_v62 = vpop.permute.xlu1 %2888  ;;  %v2885_v37 = vpop.permute.xlu0 %2884  ;;  %v2813_v58 = vadd.f32 %v2776_v28, %v6366_v20  ;;  %v5685_v13 = vrot.slane %v2726_v24, %v5557_v18  ;;  %v2816_v63 = vadd.f32 %v2776_v28, %v6367_v12  ;;  %v2815_v53 = vadd.f32 %v2776_v28, %v6368_v22 }
 0x416   : > { %3127 = vst.msk [vmem:[%s4078_s16 + $0x38] sm:$0xff] %vm3119_vm12, %v3094_v59  ;;  %3126 = vst.msk [vmem:[%s4078_s16 + $0x30] sm:$0xff] %vm3119_vm12, %v3093_v34  ;;  %v3064_v41 = vadd.f32 %v3032_v7, %v5418_v17  ;;  %v3063_v2 = vadd.f32 %v3031_v31, %v5420_v1  ;;  %v3002_v57 = vmul.f32 %v5604_v35, %v2889_v62 }
 0x417   : > { %v3001_v6 = vmul.f32 %v5604_v35, %v2885_v37  ;;  %v2780_v16 = vrot.slane %v5685_v13, %v6362_v40  ;;  %v2728_v10 = vcombine.high %v2726_v24, %v2726_v24 }
 0x418   : > { %v3096_v21 = vmul.f32 %v3064_v41, %v6377_v48  ;;  %v3095_v23 = vmul.f32 %v3063_v2, %v6378_v0  ;;  %v3034_v19 = vadd.f32 %v3002_v57, %v2812_v47  ;;  %v6379_v47 = vld [vmem:[#allocation42_spill] sm:$0xff]  ;;  %v6381_v2 = vld [vmem:[#allocation44_spill] sm:$0xff] }
 0x419   : > { %v3033_v25 = vadd.f32 %v3001_v6, %v2811_v51  ;;  %v2900_v17 = vpop.permute.xlu1 %2899  ;;  %v2896_v36 = vpop.permute.xlu0 %2895  ;;  %v2818_v62 = vadd.f32 %v2780_v16, %v6365_v32  ;;  %v2817_v37 = vadd.f32 %v2780_v16, %v6366_v20  ;;  %v5714_v41 = vrot.slane %v2728_v10, %v5557_v18  ;;  %v6382_v6 = vld [vmem:[#allocation43_spill] sm:$0xff] }
 0x41a   : > { %3129 = vst.msk [vmem:[%s4078_s16 + $0x48] sm:$0xff] %vm3119_vm12, %v3096_v21  ;;  %3128 = vst.msk [vmem:[%s4078_s16 + $0x40] sm:$0xff] %vm3119_vm12, %v3095_v23  ;;  %v3066_v1 = vadd.f32 %v3034_v19, %v5440_v11  ;;  %v3004_v15 = vmul.f32 %v5604_v35, %v2900_v17  ;;  %v3003_v26 = vmul.f32 %v5604_v35, %v2896_v36  ;;  %v6383_v36 = vld [vmem:[#allocation47_spill] sm:$0xff] }
 0x41b   : > { %v3065_v45 = vadd.f32 %v3033_v25, %v5442_v27  ;;  %v2820_v19 = vadd.f32 %v2780_v16, %v6367_v12  ;;  %v2819_v25 = vadd.f32 %v2780_v16, %v6368_v22  ;;  %v2784_v17 = vrot.slane %v5714_v41, %v6362_v40 }
 0x41c   : > { %v3098_v51 = vmul.f32 %v3066_v1, %v6379_v47  ;;  %v3036_v14 = vadd.f32 %v3004_v15, %v2814_v50  ;;  %v3035_v11 = vadd.f32 %v3003_v26, %v2813_v58 }
 0x41d   : > { %v3097_v59 = vmul.f32 %v3065_v45, %v6380_v55  ;;  %v2908_v34 = vpop.permute.xlu1 %2907  ;;  %v2904_v27 = vpop.permute.xlu0 %2903  ;;  %v6384_v45 = vld [vmem:[#allocation46_spill] sm:$0xff]  ;;  %v2821_v55 = vadd.f32 %v2784_v17, %v6366_v20 }
 0x41e   : > { %3131 = vst.msk [vmem:[%s4078_s16 + $0x58] sm:$0xff] %vm3119_vm12, %v3098_v51  ;;  %v3068_v28 = vadd.f32 %v3036_v14, %v5458_v44  ;;  %v3067_v7 = vadd.f32 %v3035_v11, %v5460_v5  ;;  %v3006_v24 = vmul.f32 %v5604_v35, %v2908_v34  ;;  %v3005_v31 = vmul.f32 %v5604_v35, %v2904_v27  ;;  %v6385_v14 = vld [vmem:[#allocation49_spill] sm:$0xff]  ;;  %v6386_v34 = vld [vmem:[#allocation48_spill] sm:$0xff] }
 0x41f   : > { %3130 = vst.msk [vmem:[%s4078_s16 + $0x50] sm:$0xff] %vm3119_vm12, %v3097_v59  ;;  %v2822_v51 = vadd.f32 %v2784_v17, %v6365_v32  ;;  %v2758_v59 = vcombine.high %v5685_v13, %v5685_v13 }
 0x420   : > { %v3100_v57 = vmul.f32 %v3068_v28, %v6381_v2  ;;  %v3099_v50 = vmul.f32 %v3067_v7, %v6382_v6  ;;  %v3038_v58 = vadd.f32 %v3006_v24, %v2816_v63  ;;  %v3037_v48 = vadd.f32 %v3005_v31, %v2815_v53  ;;  %v6387_v6 = vld [vmem:[#allocation51_spill] sm:$0xff] }
 0x421   : > { %v2919_v44 = vpop.permute.xlu1 %2918  ;;  %v2915_v21 = vpop.permute.xlu0 %2914  ;;  %v2823_v2 = vadd.f32 %v2784_v17, %v6368_v22 }
 0x422   : > { %3133 = vst.msk [vmem:[%s4078_s16 + $0x68] sm:$0xff] %vm3119_vm12, %v3100_v57  ;;  %3132 = vst.msk [vmem:[%s4078_s16 + $0x60] sm:$0xff] %vm3119_vm12, %v3099_v50  ;;  %v3070_v5 = vadd.f32 %v3038_v58, %v5480_v29  ;;  %v3069_v0 = vadd.f32 %v3037_v48, %v5482_v30  ;;  %v3008_v18 = vmul.f32 %v5604_v35, %v2919_v44  ;;  %v6388_v58 = vld [vmem:[#allocation50_spill] sm:$0xff] }
 0x423   : > { %v3007_v23 = vmul.f32 %v5604_v35, %v2915_v21  ;;  %v2788_v57 = vrot.slane %v2758_v59, %v6362_v40  ;;  %v6392_v59 = vld [vmem:[#allocation54_spill] sm:$0xff] }
 0x424   : > { %v3102_v1 = vmul.f32 %v3070_v5, %v6383_v36  ;;  %v3101_v15 = vmul.f32 %v3069_v0, %v6384_v45  ;;  %v3040_v26 = vadd.f32 %v3008_v18, %v2818_v62  ;;  %v6389_v36 = vld [vmem:[#allocation53_spill] sm:$0xff]  ;;  %v6390_v45 = vld [vmem:[#allocation52_spill] sm:$0xff] }
 0x425   : > { %v3039_v63 = vadd.f32 %v3007_v23, %v2817_v37  ;;  %v2927_v29 = vpop.permute.xlu1 %2926  ;;  %v2923_v53 = vpop.permute.xlu0 %2922  ;;  %v2824_v37 = vadd.f32 %v2784_v17, %v6367_v12  ;;  %v2760_v17 = vcombine.high %v5714_v41, %v5714_v41 }
 0x426   : > { %3135 = vst.msk [vmem:[%s4078_s16 + $0x78] sm:$0xff] %vm3119_vm12, %v3102_v1  ;;  %3134 = vst.msk [vmem:[%s4078_s16 + $0x70] sm:$0xff] %vm3119_vm12, %v3101_v15  ;;  %v3072_v30 = vadd.f32 %v3040_v26, %v5498_v60  ;;  %v3010_v10 = vmul.f32 %v5604_v35, %v2927_v29  ;;  %v3009_v47 = vmul.f32 %v5604_v35, %v2923_v53 }
 0x427   : > { %v3071_v16 = vadd.f32 %v3039_v63, %v5500_v33 }
 0x428   : > { %v3104_v11 = vmul.f32 %v3072_v30, %v6385_v14  ;;  %v3042_v28 = vadd.f32 %v3010_v10, %v2820_v19  ;;  %v3041_v7 = vadd.f32 %v3009_v47, %v2819_v25  ;;  %v2826_v19 = vadd.f32 %v2788_v57, %v6365_v32 }
 0x429   : > { %v3103_v27 = vmul.f32 %v3071_v16, %v6386_v34  ;;  %v2938_v60 = vpop.permute.xlu1 %2937  ;;  %v2934_v24 = vpop.permute.xlu0 %2933  ;;  %v2825_v25 = vadd.f32 %v2788_v57, %v6366_v20  ;;  %v2828_v16 = vadd.f32 %v2788_v57, %v6367_v12  ;;  %v2827_v10 = vadd.f32 %v2788_v57, %v6368_v22 }
 0x42a   : > { %3137 = vst.msk [vmem:[%s4078_s16 + $0x88] sm:$0xff] %vm3119_vm12, %v3104_v11  ;;  %v3074_v33 = vadd.f32 %v3042_v28, %v5516_v4  ;;  %v3073_v31 = vadd.f32 %v3041_v7, %v5518_v42  ;;  %v3012_v13 = vmul.f32 %v5604_v35, %v2938_v60  ;;  %v3011_v62 = vmul.f32 %v5604_v35, %v2934_v24 }
 0x42b   : > { %3136 = vst.msk [vmem:[%s4078_s16 + $0x80] sm:$0xff] %vm3119_vm12, %v3103_v27  ;;  %v2792_v47 = vrot.slane %v2760_v17, %v6362_v40 }
 0x42c   : > { %v3106_v50 = vmul.f32 %v3074_v33, %v6387_v6  ;;  %v3105_v48 = vmul.f32 %v3073_v31, %v6388_v58  ;;  %v3044_v44 = vadd.f32 %v3012_v13, %v2822_v51  ;;  %v3043_v21 = vadd.f32 %v3011_v62, %v2821_v55  ;;  %v6391_v51 = vld [vmem:[#allocation55_spill] sm:$0xff]  ;;  %v6393_v33 = vld [vmem:[#allocation57_spill] sm:$0xff]  ;;  %v6394_v13 = vld [vmem:[#allocation56_spill] sm:$0xff] }
 0x42d   : > { %v2946_v5 = vpop.permute.xlu1 %2945  ;;  %v2942_v4 = vpop.permute.xlu0 %2941  ;;  %v2830_v60 = vadd.f32 %v2792_v47, %v6365_v32  ;;  %v2829_v24 = vadd.f32 %v2792_v47, %v6366_v20  ;;  %v2831_v58 = vadd.f32 %v2792_v47, %v6368_v22 }
 0x42e   : > { %3139 = vst.msk [vmem:[%s4078_s16 + $0x98] sm:$0xff] %vm3119_vm12, %v3106_v50  ;;  %3138 = vst.msk [vmem:[%s4078_s16 + $0x90] sm:$0xff] %vm3119_vm12, %v3105_v48  ;;  %v3076_v42 = vadd.f32 %v3044_v44, %v5535_v3  ;;  %v3075_v0 = vadd.f32 %v3043_v21, %v5537_v52  ;;  %v3014_v18 = vmul.f32 %v5604_v35, %v2946_v5  ;;  %v6395_v48 = vld [vmem:[#allocation59_spill] sm:$0xff]  ;;  %v6396_v21 = vld [vmem:[#allocation58_spill] sm:$0xff] }
 0x42f   : > { %v3013_v23 = vmul.f32 %v5604_v35, %v2942_v4  ;;  %v2832_v50 = vadd.f32 %v2792_v47, %v6367_v12 }
 0x430   : > { %v3108_v1 = vmul.f32 %v3076_v42, %v6389_v36  ;;  %v3107_v15 = vmul.f32 %v3075_v0, %v6390_v45  ;;  %v3046_v26 = vadd.f32 %v3014_v18, %v2824_v37 }
 0x431   : > { %v3045_v63 = vadd.f32 %v3013_v23, %v2823_v2  ;;  %v2957_v3 = vpop.permute.xlu1 %2956  ;;  %v2953_v29 = vpop.permute.xlu0 %2952  ;;  %v6397_v23 = vld [vmem:[#allocation61_spill] sm:$0xff] }
 0x432   : > { %3141 = vst.msk [vmem:[%s4078_s16 + $0xa8] sm:$0xff] %vm3119_vm12, %v3108_v1  ;;  %3140 = vst.msk [vmem:[%s4078_s16 + $0xa0] sm:$0xff] %vm3119_vm12, %v3107_v15  ;;  %v3078_v52 = vadd.f32 %v3046_v26, %v5552_v56  ;;  %v3016_v41 = vmul.f32 %v5604_v35, %v2957_v3  ;;  %v3015_v30 = vmul.f32 %v5604_v35, %v2953_v29  ;;  %v6399_v15 = vld [vmem:[#allocation63_spill] sm:$0xff]  ;;  %v6400_v26 = vld [vmem:[#allocation62_spill] sm:$0xff] }
 0x433   : > { %v3077_v53 = vadd.f32 %v3045_v63, %v5554_v9 }
 0x434   : > { %v3110_v55 = vmul.f32 %v3078_v52, %v6391_v51  ;;  %v3048_v11 = vadd.f32 %v3016_v41, %v2826_v19  ;;  %v3047_v34 = vadd.f32 %v3015_v30, %v2825_v25  ;;  %v6398_v25 = vld [vmem:[#allocation60_spill] sm:$0xff] }
 0x435   : > { %v3109_v14 = vmul.f32 %v3077_v53, %v6392_v59  ;;  %v2965_v27 = vpop.permute.xlu1 %2964  ;;  %v2961_v56 = vpop.permute.xlu0 %2960 }
 0x436   : > { %3143 = vst.msk [vmem:[%s4078_s16 + $0xb8] sm:$0xff] %vm3119_vm12, %v3110_v55  ;;  %v3080_v9 = vadd.f32 %v3048_v11, %v5575_v46  ;;  %v3079_v28 = vadd.f32 %v3047_v34, %v5577_v39  ;;  %v3018_v40 = vmul.f32 %v5604_v35, %v2965_v27  ;;  %v3017_v7 = vmul.f32 %v5604_v35, %v2961_v56 }
 0x437   : > { %3142 = vst.msk [vmem:[%s4078_s16 + $0xb0] sm:$0xff] %vm3119_vm12, %v3109_v14 }
 0x438   : > { %v3112_v31 = vmul.f32 %v3080_v9, %v6393_v33  ;;  %v3111_v62 = vmul.f32 %v3079_v28, %v6394_v13  ;;  %v3050_v37 = vadd.f32 %v3018_v40, %v2828_v16  ;;  %v3049_v2 = vadd.f32 %v3017_v7, %v2827_v10 }
 0x439   : > { %v2976_v57 = vpop.permute.xlu1 %2975  ;;  %v2972_v6 = vpop.permute.xlu0 %2971 }
 0x43a   : > { %3145 = vst.msk [vmem:[%s4078_s16 + $0xc8] sm:$0xff] %vm3119_vm12, %v3112_v31  ;;  %3144 = vst.msk [vmem:[%s4078_s16 + $0xc0] sm:$0xff] %vm3119_vm12, %v3111_v62  ;;  %v3082_v46 = vadd.f32 %v3050_v37, %v5588_v49  ;;  %v3081_v39 = vadd.f32 %v3049_v2, %v5590_v54  ;;  %v3020_v32 = vmul.f32 %v5604_v35, %v2976_v57 }
 0x43b   : > { %v3019_v20 = vmul.f32 %v5604_v35, %v2972_v6 }
 0x43c   : > { %v3114_v44 = vmul.f32 %v3082_v46, %v6395_v48  ;;  %v3113_v5 = vmul.f32 %v3081_v39, %v6396_v21  ;;  %v3052_v4 = vadd.f32 %v3020_v32, %v2830_v60 }
 0x43d   : > { %v3051_v42 = vadd.f32 %v3019_v20, %v2829_v24  ;;  %v2984_v0 = vpop.permute.xlu1 %2983  ;;  %v2980_v49 = vpop.permute.xlu0 %2979 }
 0x43e   : > { %3147 = vst.msk [vmem:[%s4078_s16 + $0xd8] sm:$0xff] %vm3119_vm12, %v3114_v44  ;;  %3146 = vst.msk [vmem:[%s4078_s16 + $0xd0] sm:$0xff] %vm3119_vm12, %v3113_v5  ;;  %v3084_v54 = vadd.f32 %v3052_v4, %v5595_v8  ;;  %v3022_v22 = vmul.f32 %v5604_v35, %v2984_v0  ;;  %v3021_v18 = vmul.f32 %v5604_v35, %v2980_v49 }
 0x43f   : > { %v3083_v12 = vadd.f32 %v3051_v42, %v5597_v43 }
 0x440   : > { %v3116_v19 = vmul.f32 %v3084_v54, %v6397_v23  ;;  %v3054_v36 = vadd.f32 %v3022_v22, %v2832_v50  ;;  %v3053_v1 = vadd.f32 %v3021_v18, %v2831_v58 }
 0x441   : > { %v3115_v17 = vmul.f32 %v3083_v12, %v6398_v25 }
 0x442   : > { %3149 = vst.msk [vmem:[%s4078_s16 + $0xe8] sm:$0xff] %vm3119_vm12, %v3116_v19  ;;  %v3086_v45 = vadd.f32 %v3054_v36, %v5610_v61  ;;  %v3085_v8 = vadd.f32 %v3053_v1, %v5613_v38 }
 0x443   : > { %3148 = vst.msk [vmem:[%s4078_s16 + $0xe0] sm:$0xff] %vm3119_vm12, %v3115_v17 }
 0x444   : > { %v3118_v43 = vmul.f32 %v3086_v45, %v6399_v15  ;;  %v3117_v63 = vmul.f32 %v3085_v8, %v6400_v26 }
 0x446   : > { %3151 = vst.msk [vmem:[%s4078_s16 + $0xf8] sm:$0xff] %vm3119_vm12, %v3118_v43  ;;  %3150 = vst.msk [vmem:[%s4078_s16 + $0xf0] sm:$0xff] %vm3119_vm12, %v3117_v63 }
 0x447 PF: > { %s6401_s20 = sld [smem:[#allocation15_spill]]  ;;  %s3379_s22 = sshll.u32 %s3667_s30, 5 }
 0x448   : > { %s3374_s17 = sshll.u32 %s3671_s8, 7  ;;  %s3171_s7 = sshll.u32 %s4078_s16, 4  ;;  %s5835_s7 = int_to_ptr.vmem [resolvable:$true] %s3171_s7 }
 0x449   : > { %s3168_s15 = sadd.s32 %s3379_s22, %s3374_s17  ;;  %s6402_s27 = sld [smem:[#allocation191_spill]] }
 0x44a   : > { %s3375_s6 = sshll.u32 %s3168_s15, 7  ;;  %s3153_s24 = scalar_lea.sflag [#allocation4], %s3901_s10 }
 0x44b   : > { %s3559_s21 = scalar_lea.vmem %s5835_s7, 4096  ;;  %s3695_s30 = smov [#allocation7]  }
 0x44c   : > { %p3560_p8 = scmp.ne.s32.totalorder %s5835_s7, %s3559_s21  ;;  %s3563_s8 = sshll.u32 %s3695_s30, 4  ;;  %s3564_s8 = int_to_ptr.vmem [resolvable:$false] %s3563_s8 }
 0x44d   : > { %p6404_p9 = scmp.ne.s32.totalorder %s6401_s20, 0  ;;  %s3565_s16 = scalar_lea.vmem %s3564_s8, 8192 }
 0x44e   : > { %p3566_p1 = scmp.lt.s32.totalorder %s5835_s7, %s3564_s8  ;;  %p3567_p5 = scmp.lt.s32.totalorder %s3565_s16, %s3559_s21 }
 0x44f   : > { %s6403_s18 = smov %s6402_s27  ;;  %s5840_s23 = scalar_lea.hbm %s6402_s27, %s3375_s6 }
 0x450   : > { %p3561_p10 = pnand %p3560_p8, %p6404_p9  ;;  %p3568_p0 = por %p3567_p5, %p3566_p1 }
 0x452   : > { %p3562_p11 = pneg %p3561_p10 }
 0x454   : > { %p3569_p6 = pnand %p3568_p0, %p3562_p11 }
 0x456   : > { %3572 = shalt.err (!%p3569_p6)
}
 0x457   : > { %s3573_s5 = scalar_lea.hbm %s5840_s23, 4096  ;;  %s3577_s17 = scalar_lea.hbm %s6403_s18, 32768 }
 0x458   : > { %p3574_p7 = scmp.ne.s32.totalorder %s5840_s23, %s3573_s5  ;;  %p3578_p4 = scmp.lt.s32.totalorder %s5840_s23, %s6403_s18 }
 0x459   : > { %p3579_p12 = scmp.lt.s32.totalorder %s3577_s17, %s3573_s5 }
 0x45a   : > { %p3575_p2 = pnand %p3574_p7, %p6404_p9 }
 0x45b   : > { %p3580_p13 = por %p3579_p12, %p3578_p4 }
 0x45c   : > { %p3576_p3 = pneg %p3575_p2 }
 0x45e   : > { %p3581_p8 = pnand %p3580_p13, %p3576_p3 }
 0x460   : > { %3584 = shalt.err (!%p3581_p8)
}
 0x461   : > { %s3696_s3 = smov 128   ;;  %s3697_s14 = smov 8  }
 0x462   : > { %3384 = dma.vmem_to_hbm [thread:$0]  (%p6404_p9), %s5835_s7, 4096, %s5840_s23, %s3153_s24, %s3696_s3, %s3696_s3, %s3697_s14  }
 0x463 PF: > { %s6405_s27 = sld [smem:[#allocation11_spill]]  ;;  %p3398_p10 = scmp.ge.s32.totalorder %s3683_s11, 2 }
 0x464   : > { %p6406_p11 = scmp.ne.s32.totalorder %s6004_s12, 0 }
 0x466   : > { %p3394_p1 = pnand %p3398_p10, %p6406_p11 }
 0x468   : > { %p3395_p5 = pneg %p3394_p1 }
 0x469   : > { %s3186_s21 = sand.u32 1, %s6405_s27  }
 0x46a   : > { %s3187_s30 = scalar_lea.sflag [#allocation4], %s3186_s21 }
 0x46b   : > { %3638 = dma.done.wait (%p3395_p5), %s3187_s30, 4096  }
 0x46c   : > { %3640 = vsyncadd (%p3395_p5), %s3187_s30, 4294963200  ;;  %s26_s11 = sadd.s32 1, %s3683_s11   ;;  %s6407_s8 = sld [smem:[#allocation12_spill]] }
 0x46d   : > { %p23_p0 = scmp.ge.s32.totalorder %s26_s11, 10   ;;  %s6408_s10 = sld [smem:[#allocation13_spill]] }
 0x46e   : > { %s6409_s20 = sld [smem:[#allocation14_spill]]  ;;  %s6410_s24 = smov %s3647_s25 }
 0x46f   : > { %s6411_s25 = smov %s3651_s26  ;;  %s6412_s26 = smov %s3868_s19 }
 0x470   : > { %s6413_s27 = smov %s3659_s28  ;;  %s6414_s28 = smov %s3663_s29 }
 0x471   : > { %s6415_s29 = smov %s3865_s1  ;;  %s6416_s30 = smov %s3675_s9 }
 0x472   :  { %25 = sbr.rel (!%p23_p0) target bundleno = 17 (0x11), region = 123 }
 0x473   : > { %s6417_s9 = smov %s6408_s10 }
 0x474   : > { %s6418_s10 = smov %s6409_s20 }
 0x477   :  { %3192 = vsyncpa [#allocation3], 1 }
 0x478   :  { %3194 = vsyncpa [#allocation3 + $0x1], 1 }
 0x479   :  { %3195 = vsyncpa [#allocation6], 1 }
 0x47a   :  { %3197 = vsyncpa [#allocation6 + $0x1], 1 }
 0x47b   :  { %3198 = vsyncpa [#allocation4], 1 }
 0x47c   :  { %3200 = vsyncpa [#allocation4 + $0x1], 1 }

</bundles_post_ra>
